<compile_context>
chip_gen: v7x
topology: tpu7x:2x2x1
jax: 0.10.0
libtpu: 0.0.40
codegen_flags: <defaults>
</compile_context>

<pallas_src>
import functools

import jax
import jax.numpy as jnp
from jax import lax
from jax.experimental import pallas as pl
from jax.experimental.pallas import tpu as pltpu


def _layer_ids_f32(idx, L, N):
    """Map a node-index iota to its layer id (float32), division-free."""
    lid = jnp.zeros(idx.shape, jnp.float32)
    for l in range(1, L):
        lid = lid + (idx >= l * N).astype(jnp.float32)
    return lid


def _topk_pool_decoder_kernel(h_ref, ht_ref, w_ref, b_ref, o_ref, *, L, N, K, D, O):
    LN = L * N
    LK = L * K
    LKO = LK * O

    h = h_ref[...]                                      # (LN, D)
    ht = ht_ref[...]                                    # (D, LN)

    # ---- SortPooling key: per-node max feature (== last ascending-sorted) ----
    key_col = jnp.max(h, axis=-1, keepdims=True)        # (LN, 1)  node on sublanes
    key_row = jnp.max(ht, axis=0, keepdims=True)        # (1, LN)  node on lanes

    # ---- one-shot per-layer descending rank (smallest node id wins ties) ----
    ii = lax.broadcasted_iota(jnp.int32, (LN, LN), 0)   # candidate i (rows)
    jj = lax.broadcasted_iota(jnp.int32, (LN, LN), 1)   # node j      (cols)
    same_layer = _layer_ids_f32(ii, L, N) == _layer_ids_f32(jj, L, N)
    beats = (key_col > key_row) | ((key_col == key_row) & (ii < jj))
    beats = jnp.logical_and(beats, same_layer)          # i precedes j, same layer
    rank = jnp.sum(beats.astype(jnp.float32), axis=0, keepdims=True)   # (1, LN)

    # ---- one-hot selection matrix: slot p = layer(j)*K + rank(j), rank < K ----
    pp = lax.broadcasted_iota(jnp.int32, (LK, LN), 0).astype(jnp.float32)
    jc = lax.broadcasted_iota(jnp.int32, (LK, LN), 1)
    slot = _layer_ids_f32(jc, L, N) * K + rank          # (LK, LN) via broadcast
    sel = jnp.logical_and(pp == slot, rank < K)
    smat = jnp.where(sel, 1.0, 0.0)                     # (LK, LN) 0/1 float

    # ---- gather the L*K selected node rows with one MXU matmul ----
    pooled = jnp.dot(smat, h, preferred_element_type=jnp.float32)      # (LK, D)

    # ---- stable ascending sort of each selected row (rank + scatter) ----
    col = lax.broadcasted_iota(jnp.int32, (LK, D), 1)
    rank2 = jnp.zeros((LK, D), jnp.int32)
    for m in range(D):
        pm = pooled[:, m:m + 1]                         # (LK, 1)
        less = (pm < pooled).astype(jnp.int32)
        tie = jnp.logical_and(pm == pooled, m < col).astype(jnp.int32)
        rank2 = rank2 + less + tie
    hsort = jnp.zeros((LK, D), jnp.float32)
    for j in range(D):
        hit = rank2[:, j:j + 1] == col                  # (LK, D)
        hsort = hsort + jnp.where(hit, pooled[:, j:j + 1], 0.0)

    # ---- fused Linear over all layers & slots: one MXU contraction ----
    # g_full[p, p'*O + o] = sum_d hsort[p, d] * W[p', d, o]; keep p == p' blocks.
    g_full = jnp.dot(hsort, w_ref[...], preferred_element_type=jnp.float32)  # (LK, LKO)
    prow = lax.broadcasted_iota(jnp.int32, (LK, LKO), 0)
    qcol = lax.broadcasted_iota(jnp.int32, (LK, LKO), 1)
    keep = jnp.logical_and(qcol >= prow * O, qcol < prow * O + O)
    part = jnp.sum(jnp.where(keep, g_full, 0.0), axis=0, keepdims=True)      # (1, LKO)

    out = b_ref[...]                                    # (1, O) pre-summed bias
    for p in range(LK):
        out = out + part[:, p * O:(p + 1) * O]
    # Dropout: identity (eval mode).
    o_ref[...] = out


def topk_pool_decoder(feats, w, b):
    """feats: (B, L, N, D); w: (L, K, D, O); b: (L, 1, O)  ->  (B, 1, O)."""
    B, L, N, D = feats.shape
    _, K, _, O = w.shape
    LN, LK = L * N, L * K
    LKO = LK * O

    h = feats.reshape(B, LN, D).astype(jnp.float32)
    ht = jnp.transpose(h, (0, 2, 1))                    # layout plumbing only
    wbig = jnp.transpose(w.reshape(LK, D, O), (1, 0, 2)).reshape(D, LKO)
    bsum = jnp.sum(b, axis=0)                           # (1, O)

    kernel = functools.partial(_topk_pool_decoder_kernel, L=L, N=N, K=K, D=D, O=O)
    return pl.pallas_call(
        kernel,
        grid=(B,),
        in_specs=[
            pl.BlockSpec((None, LN, D), lambda g: (g, 0, 0)),
            pl.BlockSpec((None, D, LN), lambda g: (g, 0, 0)),
            pl.BlockSpec((D, LKO), lambda g: (0, 0)),
            pl.BlockSpec((1, O), lambda g: (0, 0)),
        ],
        out_specs=pl.BlockSpec((None, 1, O), lambda g: (g, 0, 0)),
        out_shape=jax.ShapeDtypeStruct((B, 1, O), jnp.float32),
        compiler_params=pltpu.CompilerParams(
            dimension_semantics=("parallel",)),
    )(h, ht, wbig, bsum)


def reference(feats, w, b):
    """Pure-JAX reference of the same forward pass (for validation)."""
    B, L, N, D = feats.shape
    K, O = w.shape[1], w.shape[3]
    outs = []
    for g in range(B):
        acc = jnp.zeros((1, O), jnp.float32)
        for l in range(L):
            hs = jnp.sort(feats[g, l], axis=-1)          # ascending per node
            topk = jnp.argsort(-hs[:, -1])[:K]           # stable: smallest id wins ties
            pooled = hs[topk]                            # (K, D) sorted rows
            acc = acc + jnp.einsum("kd,kdo->o", pooled, w[l])[None, :] + b[l]
        outs.append(acc)
    return jnp.stack(outs, axis=0)                       # (B, 1, O)


if __name__ == "__main__":
    # L layers of dimension D each -> k = min(L, 3); B graphs with N nodes each.
    B, L, N, D, O = 2, 3, 16, 32, 8
    K = min(L, 3)

    key = jax.random.PRNGKey(0)
    kf, kw, kb = jax.random.split(key, 3)
    feats = jax.random.normal(kf, (B, L, N, D), dtype=jnp.float32)
    bound = 1.0 / float((K * D) ** 0.5)                  # PyTorch Linear-style init
    w = jax.random.uniform(kw, (L, K, D, O), jnp.float32, -bound, bound)
    b = jax.random.uniform(kb, (L, 1, O), jnp.float32, -bound, bound)

    out = jax.block_until_ready(topk_pool_decoder(feats, w, b))
    ref = reference(feats, w, b)
    assert jnp.allclose(out, ref, atol=1e-4, rtol=1e-4), (out, ref)
    print("KERNEL_OK")
</pallas_src>

<mosaic_0001>
module attributes {stable_mosaic.version = 11 : i64} {
  func.func @_topk_pool_decoder_kernel(%arg0: i32, %arg1: memref<1x48x32xf32, #tpu.memory_space<vmem>>, %arg2: memref<1x32x48xf32, #tpu.memory_space<vmem>>, %arg3: memref<32x72xf32, #tpu.memory_space<vmem>>, %arg4: memref<1x8xf32, #tpu.memory_space<vmem>>, %arg5: memref<1x1x8xf32, #tpu.memory_space<vmem>>) attributes {dimension_semantics = [#tpu.dimension_semantics<parallel>], iteration_bounds = array<i64: 2>, scalar_prefetch = 0 : i64, scratch_operands = 0 : i64, tpu.core_type = #tpu.core_type<tc>, window_params = [{transform_indices = @transform_0, window_bounds = array<i64: 1, 48, 32>}, {transform_indices = @transform_1, window_bounds = array<i64: 1, 32, 48>}, {pipeline_mode = #tpu.pipeline_mode<synchronous>, transform_indices = @transform_2, window_bounds = array<i64: 32, 72>}, {pipeline_mode = #tpu.pipeline_mode<synchronous>, transform_indices = @transform_3, window_bounds = array<i64: 1, 8>}, {transform_indices = @transform_4, window_bounds = array<i64: 1, 1, 8>}]} {
    %c0 = arith.constant 0 : index
    %c0_0 = arith.constant 0 : index
    %c0_1 = arith.constant 0 : index
    %0 = vector.load %arg1[%c0, %c0_0, %c0_1] : memref<1x48x32xf32, #tpu.memory_space<vmem>>, vector<1x48x32xf32>
    %1 = vector.shape_cast %0 : vector<1x48x32xf32> to vector<48x32xf32>
    %c0_2 = arith.constant 0 : index
    %c0_3 = arith.constant 0 : index
    %c0_4 = arith.constant 0 : index
    %2 = vector.load %arg2[%c0_2, %c0_3, %c0_4] : memref<1x32x48xf32, #tpu.memory_space<vmem>>, vector<1x32x48xf32>
    %3 = vector.shape_cast %2 : vector<1x32x48xf32> to vector<32x48xf32>
    %cst = arith.constant dense<0xFF800000> : vector<48xf32>
    %4 = vector.multi_reduction <maximumf>, %1, %cst [1] : vector<48x32xf32> to vector<48xf32>
    %5 = vector.shape_cast %4 : vector<48xf32> to vector<48x1xf32>
    %cst_5 = arith.constant dense<0xFF800000> : vector<48xf32>
    %6 = vector.multi_reduction <maximumf>, %3, %cst_5 [0] : vector<32x48xf32> to vector<48xf32>
    %7 = vector.shape_cast %6 : vector<48xf32> to vector<1x48xf32>
    %8 = tpu.iota {dimensions = array<i32: 0>} : vector<48x48xi32>
    %9 = tpu.iota {dimensions = array<i32: 1>} : vector<48x48xi32>
    %cst_6 = arith.constant 0.000000e+00 : f32
    %10 = vector.broadcast %cst_6 : f32 to vector<48x48xf32>
    %c16_i32 = arith.constant 16 : i32
    %11 = vector.broadcast %c16_i32 : i32 to vector<48x48xi32>
    %12 = arith.cmpi sge, %8, %11 : vector<48x48xi32>
    %13 = arith.extui %12 : vector<48x48xi1> to vector<48x48xi32>
    %14 = arith.sitofp %13 : vector<48x48xi32> to vector<48x48xf32>
    %15 = arith.addf %10, %14 : vector<48x48xf32>
    %c32_i32 = arith.constant 32 : i32
    %16 = vector.broadcast %c32_i32 : i32 to vector<48x48xi32>
    %17 = arith.cmpi sge, %8, %16 : vector<48x48xi32>
    %18 = arith.extui %17 : vector<48x48xi1> to vector<48x48xi32>
    %19 = arith.sitofp %18 : vector<48x48xi32> to vector<48x48xf32>
    %20 = arith.addf %15, %19 : vector<48x48xf32>
    %cst_7 = arith.constant 0.000000e+00 : f32
    %21 = vector.broadcast %cst_7 : f32 to vector<48x48xf32>
    %c16_i32_8 = arith.constant 16 : i32
    %22 = vector.broadcast %c16_i32_8 : i32 to vector<48x48xi32>
    %23 = arith.cmpi sge, %9, %22 : vector<48x48xi32>
    %24 = arith.extui %23 : vector<48x48xi1> to vector<48x48xi32>
    %25 = arith.sitofp %24 : vector<48x48xi32> to vector<48x48xf32>
    %26 = arith.addf %21, %25 : vector<48x48xf32>
    %c32_i32_9 = arith.constant 32 : i32
    %27 = vector.broadcast %c32_i32_9 : i32 to vector<48x48xi32>
    %28 = arith.cmpi sge, %9, %27 : vector<48x48xi32>
    %29 = arith.extui %28 : vector<48x48xi1> to vector<48x48xi32>
    %30 = arith.sitofp %29 : vector<48x48xi32> to vector<48x48xf32>
    %31 = arith.addf %26, %30 : vector<48x48xf32>
    %32 = arith.cmpf oeq, %20, %31 : vector<48x48xf32>
    %33 = vector.broadcast %5 : vector<48x1xf32> to vector<48x48xf32>
    %34 = vector.broadcast %7 : vector<1x48xf32> to vector<48x48xf32>
    %35 = arith.cmpf ogt, %33, %34 : vector<48x48xf32>
    %36 = vector.broadcast %5 : vector<48x1xf32> to vector<48x48xf32>
    %37 = vector.broadcast %7 : vector<1x48xf32> to vector<48x48xf32>
    %38 = arith.cmpf oeq, %36, %37 : vector<48x48xf32>
    %39 = arith.cmpi slt, %8, %9 : vector<48x48xi32>
    %40 = arith.andi %38, %39 : vector<48x48xi1>
    %41 = arith.ori %35, %40 : vector<48x48xi1>
    %42 = arith.andi %41, %32 : vector<48x48xi1>
    %43 = arith.extui %42 : vector<48x48xi1> to vector<48x48xi32>
    %44 = arith.sitofp %43 : vector<48x48xi32> to vector<48x48xf32>
    %cst_10 = arith.constant dense<0.000000e+00> : vector<48xf32>
    %45 = vector.multi_reduction <add>, %44, %cst_10 [0] : vector<48x48xf32> to vector<48xf32>
    %46 = vector.shape_cast %45 : vector<48xf32> to vector<1x48xf32>
    %47 = tpu.iota {dimensions = array<i32: 0>} : vector<9x48xi32>
    %48 = arith.sitofp %47 : vector<9x48xi32> to vector<9x48xf32>
    %49 = tpu.iota {dimensions = array<i32: 1>} : vector<9x48xi32>
    %cst_11 = arith.constant 0.000000e+00 : f32
    %50 = vector.broadcast %cst_11 : f32 to vector<9x48xf32>
    %c16_i32_12 = arith.constant 16 : i32
    %51 = vector.broadcast %c16_i32_12 : i32 to vector<9x48xi32>
    %52 = arith.cmpi sge, %49, %51 : vector<9x48xi32>
    %53 = arith.extui %52 : vector<9x48xi1> to vector<9x48xi32>
    %54 = arith.sitofp %53 : vector<9x48xi32> to vector<9x48xf32>
    %55 = arith.addf %50, %54 : vector<9x48xf32>
    %c32_i32_13 = arith.constant 32 : i32
    %56 = vector.broadcast %c32_i32_13 : i32 to vector<9x48xi32>
    %57 = arith.cmpi sge, %49, %56 : vector<9x48xi32>
    %58 = arith.extui %57 : vector<9x48xi1> to vector<9x48xi32>
    %59 = arith.sitofp %58 : vector<9x48xi32> to vector<9x48xf32>
    %60 = arith.addf %55, %59 : vector<9x48xf32>
    %cst_14 = arith.constant 3.000000e+00 : f32
    %61 = vector.broadcast %cst_14 : f32 to vector<9x48xf32>
    %62 = arith.mulf %60, %61 : vector<9x48xf32>
    %63 = vector.broadcast %46 : vector<1x48xf32> to vector<9x48xf32>
    %64 = arith.addf %62, %63 : vector<9x48xf32>
    %65 = arith.cmpf oeq, %48, %64 : vector<9x48xf32>
    %cst_15 = arith.constant 3.000000e+00 : f32
    %66 = vector.broadcast %cst_15 : f32 to vector<1x48xf32>
    %67 = arith.cmpf olt, %46, %66 : vector<1x48xf32>
    %68 = vector.broadcast %67 : vector<1x48xi1> to vector<9x48xi1>
    %69 = arith.andi %65, %68 : vector<9x48xi1>
    %cst_16 = arith.constant 1.000000e+00 : f32
    %cst_17 = arith.constant 0.000000e+00 : f32
    %70 = vector.broadcast %cst_16 : f32 to vector<9x48xf32>
    %71 = vector.broadcast %cst_17 : f32 to vector<9x48xf32>
    %72 = arith.select %69, %70, %71 : vector<9x48xi1>, vector<9x48xf32>
    %cst_18 = arith.constant dense<0.000000e+00> : vector<9x32xf32>
    %73 = tpu.matmul %72, %1, %cst_18 {dimension_numbers = #tpu.dot_dimension_numbers<[1], [0], [0], [1], [0, 0, 1, 1], [], []>} : vector<9x48xf32>, vector<48x32xf32>, vector<9x32xf32> -> vector<9x32xf32>
    %74 = tpu.iota {dimensions = array<i32: 1>} : vector<9x32xi32>
    %c0_i32 = arith.constant 0 : i32
    %75 = vector.broadcast %c0_i32 : i32 to vector<9x32xi32>
    %76 = vector.extract_strided_slice %73 {offsets = [0, 0], sizes = [9, 1], strides = [1, 1]} : vector<9x32xf32> to vector<9x1xf32>
    %77 = vector.broadcast %76 : vector<9x1xf32> to vector<9x32xf32>
    %78 = arith.cmpf olt, %77, %73 : vector<9x32xf32>
    %79 = arith.extui %78 : vector<9x32xi1> to vector<9x32xi32>
    %80 = vector.broadcast %76 : vector<9x1xf32> to vector<9x32xf32>
    %81 = arith.cmpf oeq, %80, %73 : vector<9x32xf32>
    %c0_i32_19 = arith.constant 0 : i32
    %82 = vector.broadcast %c0_i32_19 : i32 to vector<9x32xi32>
    %83 = arith.cmpi sgt, %74, %82 : vector<9x32xi32>
    %84 = arith.andi %81, %83 : vector<9x32xi1>
    %85 = arith.extui %84 : vector<9x32xi1> to vector<9x32xi32>
    %86 = arith.addi %75, %79 : vector<9x32xi32>
    %87 = arith.addi %86, %85 : vector<9x32xi32>
    %88 = vector.extract_strided_slice %73 {offsets = [0, 1], sizes = [9, 1], strides = [1, 1]} : vector<9x32xf32> to vector<9x1xf32>
    %89 = vector.broadcast %88 : vector<9x1xf32> to vector<9x32xf32>
    %90 = arith.cmpf olt, %89, %73 : vector<9x32xf32>
    %91 = arith.extui %90 : vector<9x32xi1> to vector<9x32xi32>
    %92 = vector.broadcast %88 : vector<9x1xf32> to vector<9x32xf32>
    %93 = arith.cmpf oeq, %92, %73 : vector<9x32xf32>
    %c1_i32 = arith.constant 1 : i32
    %94 = vector.broadcast %c1_i32 : i32 to vector<9x32xi32>
    %95 = arith.cmpi sgt, %74, %94 : vector<9x32xi32>
    %96 = arith.andi %93, %95 : vector<9x32xi1>
    %97 = arith.extui %96 : vector<9x32xi1> to vector<9x32xi32>
    %98 = arith.addi %87, %91 : vector<9x32xi32>
    %99 = arith.addi %98, %97 : vector<9x32xi32>
    %100 = vector.extract_strided_slice %73 {offsets = [0, 2], sizes = [9, 1], strides = [1, 1]} : vector<9x32xf32> to vector<9x1xf32>
    %101 = vector.broadcast %100 : vector<9x1xf32> to vector<9x32xf32>
    %102 = arith.cmpf olt, %101, %73 : vector<9x32xf32>
    %103 = arith.extui %102 : vector<9x32xi1> to vector<9x32xi32>
    %104 = vector.broadcast %100 : vector<9x1xf32> to vector<9x32xf32>
    %105 = arith.cmpf oeq, %104, %73 : vector<9x32xf32>
    %c2_i32 = arith.constant 2 : i32
    %106 = vector.broadcast %c2_i32 : i32 to vector<9x32xi32>
    %107 = arith.cmpi sgt, %74, %106 : vector<9x32xi32>
    %108 = arith.andi %105, %107 : vector<9x32xi1>
    %109 = arith.extui %108 : vector<9x32xi1> to vector<9x32xi32>
    %110 = arith.addi %99, %103 : vector<9x32xi32>
    %111 = arith.addi %110, %109 : vector<9x32xi32>
    %112 = vector.extract_strided_slice %73 {offsets = [0, 3], sizes = [9, 1], strides = [1, 1]} : vector<9x32xf32> to vector<9x1xf32>
    %113 = vector.broadcast %112 : vector<9x1xf32> to vector<9x32xf32>
    %114 = arith.cmpf olt, %113, %73 : vector<9x32xf32>
    %115 = arith.extui %114 : vector<9x32xi1> to vector<9x32xi32>
    %116 = vector.broadcast %112 : vector<9x1xf32> to vector<9x32xf32>
    %117 = arith.cmpf oeq, %116, %73 : vector<9x32xf32>
    %c3_i32 = arith.constant 3 : i32
    %118 = vector.broadcast %c3_i32 : i32 to vector<9x32xi32>
    %119 = arith.cmpi sgt, %74, %118 : vector<9x32xi32>
    %120 = arith.andi %117, %119 : vector<9x32xi1>
    %121 = arith.extui %120 : vector<9x32xi1> to vector<9x32xi32>
    %122 = arith.addi %111, %115 : vector<9x32xi32>
    %123 = arith.addi %122, %121 : vector<9x32xi32>
    %124 = vector.extract_strided_slice %73 {offsets = [0, 4], sizes = [9, 1], strides = [1, 1]} : vector<9x32xf32> to vector<9x1xf32>
    %125 = vector.broadcast %124 : vector<9x1xf32> to vector<9x32xf32>
    %126 = arith.cmpf olt, %125, %73 : vector<9x32xf32>
    %127 = arith.extui %126 : vector<9x32xi1> to vector<9x32xi32>
    %128 = vector.broadcast %124 : vector<9x1xf32> to vector<9x32xf32>
    %129 = arith.cmpf oeq, %128, %73 : vector<9x32xf32>
    %c4_i32 = arith.constant 4 : i32
    %130 = vector.broadcast %c4_i32 : i32 to vector<9x32xi32>
    %131 = arith.cmpi sgt, %74, %130 : vector<9x32xi32>
    %132 = arith.andi %129, %131 : vector<9x32xi1>
    %133 = arith.extui %132 : vector<9x32xi1> to vector<9x32xi32>
    %134 = arith.addi %123, %127 : vector<9x32xi32>
    %135 = arith.addi %134, %133 : vector<9x32xi32>
    %136 = vector.extract_strided_slice %73 {offsets = [0, 5], sizes = [9, 1], strides = [1, 1]} : vector<9x32xf32> to vector<9x1xf32>
    %137 = vector.broadcast %136 : vector<9x1xf32> to vector<9x32xf32>
    %138 = arith.cmpf olt, %137, %73 : vector<9x32xf32>
    %139 = arith.extui %138 : vector<9x32xi1> to vector<9x32xi32>
    %140 = vector.broadcast %136 : vector<9x1xf32> to vector<9x32xf32>
    %141 = arith.cmpf oeq, %140, %73 : vector<9x32xf32>
    %c5_i32 = arith.constant 5 : i32
    %142 = vector.broadcast %c5_i32 : i32 to vector<9x32xi32>
    %143 = arith.cmpi sgt, %74, %142 : vector<9x32xi32>
    %144 = arith.andi %141, %143 : vector<9x32xi1>
    %145 = arith.extui %144 : vector<9x32xi1> to vector<9x32xi32>
    %146 = arith.addi %135, %139 : vector<9x32xi32>
    %147 = arith.addi %146, %145 : vector<9x32xi32>
    %148 = vector.extract_strided_slice %73 {offsets = [0, 6], sizes = [9, 1], strides = [1, 1]} : vector<9x32xf32> to vector<9x1xf32>
    %149 = vector.broadcast %148 : vector<9x1xf32> to vector<9x32xf32>
    %150 = arith.cmpf olt, %149, %73 : vector<9x32xf32>
    %151 = arith.extui %150 : vector<9x32xi1> to vector<9x32xi32>
    %152 = vector.broadcast %148 : vector<9x1xf32> to vector<9x32xf32>
    %153 = arith.cmpf oeq, %152, %73 : vector<9x32xf32>
    %c6_i32 = arith.constant 6 : i32
    %154 = vector.broadcast %c6_i32 : i32 to vector<9x32xi32>
    %155 = arith.cmpi sgt, %74, %154 : vector<9x32xi32>
    %156 = arith.andi %153, %155 : vector<9x32xi1>
    %157 = arith.extui %156 : vector<9x32xi1> to vector<9x32xi32>
    %158 = arith.addi %147, %151 : vector<9x32xi32>
    %159 = arith.addi %158, %157 : vector<9x32xi32>
    %160 = vector.extract_strided_slice %73 {offsets = [0, 7], sizes = [9, 1], strides = [1, 1]} : vector<9x32xf32> to vector<9x1xf32>
    %161 = vector.broadcast %160 : vector<9x1xf32> to vector<9x32xf32>
    %162 = arith.cmpf olt, %161, %73 : vector<9x32xf32>
    %163 = arith.extui %162 : vector<9x32xi1> to vector<9x32xi32>
    %164 = vector.broadcast %160 : vector<9x1xf32> to vector<9x32xf32>
    %165 = arith.cmpf oeq, %164, %73 : vector<9x32xf32>
    %c7_i32 = arith.constant 7 : i32
    %166 = vector.broadcast %c7_i32 : i32 to vector<9x32xi32>
    %167 = arith.cmpi sgt, %74, %166 : vector<9x32xi32>
    %168 = arith.andi %165, %167 : vector<9x32xi1>
    %169 = arith.extui %168 : vector<9x32xi1> to vector<9x32xi32>
    %170 = arith.addi %159, %163 : vector<9x32xi32>
    %171 = arith.addi %170, %169 : vector<9x32xi32>
    %172 = vector.extract_strided_slice %73 {offsets = [0, 8], sizes = [9, 1], strides = [1, 1]} : vector<9x32xf32> to vector<9x1xf32>
    %173 = vector.broadcast %172 : vector<9x1xf32> to vector<9x32xf32>
    %174 = arith.cmpf olt, %173, %73 : vector<9x32xf32>
    %175 = arith.extui %174 : vector<9x32xi1> to vector<9x32xi32>
    %176 = vector.broadcast %172 : vector<9x1xf32> to vector<9x32xf32>
    %177 = arith.cmpf oeq, %176, %73 : vector<9x32xf32>
    %c8_i32 = arith.constant 8 : i32
    %178 = vector.broadcast %c8_i32 : i32 to vector<9x32xi32>
    %179 = arith.cmpi sgt, %74, %178 : vector<9x32xi32>
    %180 = arith.andi %177, %179 : vector<9x32xi1>
    %181 = arith.extui %180 : vector<9x32xi1> to vector<9x32xi32>
    %182 = arith.addi %171, %175 : vector<9x32xi32>
    %183 = arith.addi %182, %181 : vector<9x32xi32>
    %184 = vector.extract_strided_slice %73 {offsets = [0, 9], sizes = [9, 1], strides = [1, 1]} : vector<9x32xf32> to vector<9x1xf32>
    %185 = vector.broadcast %184 : vector<9x1xf32> to vector<9x32xf32>
    %186 = arith.cmpf olt, %185, %73 : vector<9x32xf32>
    %187 = arith.extui %186 : vector<9x32xi1> to vector<9x32xi32>
    %188 = vector.broadcast %184 : vector<9x1xf32> to vector<9x32xf32>
    %189 = arith.cmpf oeq, %188, %73 : vector<9x32xf32>
    %c9_i32 = arith.constant 9 : i32
    %190 = vector.broadcast %c9_i32 : i32 to vector<9x32xi32>
    %191 = arith.cmpi sgt, %74, %190 : vector<9x32xi32>
    %192 = arith.andi %189, %191 : vector<9x32xi1>
    %193 = arith.extui %192 : vector<9x32xi1> to vector<9x32xi32>
    %194 = arith.addi %183, %187 : vector<9x32xi32>
    %195 = arith.addi %194, %193 : vector<9x32xi32>
    %196 = vector.extract_strided_slice %73 {offsets = [0, 10], sizes = [9, 1], strides = [1, 1]} : vector<9x32xf32> to vector<9x1xf32>
    %197 = vector.broadcast %196 : vector<9x1xf32> to vector<9x32xf32>
    %198 = arith.cmpf olt, %197, %73 : vector<9x32xf32>
    %199 = arith.extui %198 : vector<9x32xi1> to vector<9x32xi32>
    %200 = vector.broadcast %196 : vector<9x1xf32> to vector<9x32xf32>
    %201 = arith.cmpf oeq, %200, %73 : vector<9x32xf32>
    %c10_i32 = arith.constant 10 : i32
    %202 = vector.broadcast %c10_i32 : i32 to vector<9x32xi32>
    %203 = arith.cmpi sgt, %74, %202 : vector<9x32xi32>
    %204 = arith.andi %201, %203 : vector<9x32xi1>
    %205 = arith.extui %204 : vector<9x32xi1> to vector<9x32xi32>
    %206 = arith.addi %195, %199 : vector<9x32xi32>
    %207 = arith.addi %206, %205 : vector<9x32xi32>
    %208 = vector.extract_strided_slice %73 {offsets = [0, 11], sizes = [9, 1], strides = [1, 1]} : vector<9x32xf32> to vector<9x1xf32>
    %209 = vector.broadcast %208 : vector<9x1xf32> to vector<9x32xf32>
    %210 = arith.cmpf olt, %209, %73 : vector<9x32xf32>
    %211 = arith.extui %210 : vector<9x32xi1> to vector<9x32xi32>
    %212 = vector.broadcast %208 : vector<9x1xf32> to vector<9x32xf32>
    %213 = arith.cmpf oeq, %212, %73 : vector<9x32xf32>
    %c11_i32 = arith.constant 11 : i32
    %214 = vector.broadcast %c11_i32 : i32 to vector<9x32xi32>
    %215 = arith.cmpi sgt, %74, %214 : vector<9x32xi32>
    %216 = arith.andi %213, %215 : vector<9x32xi1>
    %217 = arith.extui %216 : vector<9x32xi1> to vector<9x32xi32>
    %218 = arith.addi %207, %211 : vector<9x32xi32>
    %219 = arith.addi %218, %217 : vector<9x32xi32>
    %220 = vector.extract_strided_slice %73 {offsets = [0, 12], sizes = [9, 1], strides = [1, 1]} : vector<9x32xf32> to vector<9x1xf32>
    %221 = vector.broadcast %220 : vector<9x1xf32> to vector<9x32xf32>
    %222 = arith.cmpf olt, %221, %73 : vector<9x32xf32>
    %223 = arith.extui %222 : vector<9x32xi1> to vector<9x32xi32>
    %224 = vector.broadcast %220 : vector<9x1xf32> to vector<9x32xf32>
    %225 = arith.cmpf oeq, %224, %73 : vector<9x32xf32>
    %c12_i32 = arith.constant 12 : i32
    %226 = vector.broadcast %c12_i32 : i32 to vector<9x32xi32>
    %227 = arith.cmpi sgt, %74, %226 : vector<9x32xi32>
    %228 = arith.andi %225, %227 : vector<9x32xi1>
    %229 = arith.extui %228 : vector<9x32xi1> to vector<9x32xi32>
    %230 = arith.addi %219, %223 : vector<9x32xi32>
    %231 = arith.addi %230, %229 : vector<9x32xi32>
    %232 = vector.extract_strided_slice %73 {offsets = [0, 13], sizes = [9, 1], strides = [1, 1]} : vector<9x32xf32> to vector<9x1xf32>
    %233 = vector.broadcast %232 : vector<9x1xf32> to vector<9x32xf32>
    %234 = arith.cmpf olt, %233, %73 : vector<9x32xf32>
    %235 = arith.extui %234 : vector<9x32xi1> to vector<9x32xi32>
    %236 = vector.broadcast %232 : vector<9x1xf32> to vector<9x32xf32>
    %237 = arith.cmpf oeq, %236, %73 : vector<9x32xf32>
    %c13_i32 = arith.constant 13 : i32
    %238 = vector.broadcast %c13_i32 : i32 to vector<9x32xi32>
    %239 = arith.cmpi sgt, %74, %238 : vector<9x32xi32>
    %240 = arith.andi %237, %239 : vector<9x32xi1>
    %241 = arith.extui %240 : vector<9x32xi1> to vector<9x32xi32>
    %242 = arith.addi %231, %235 : vector<9x32xi32>
    %243 = arith.addi %242, %241 : vector<9x32xi32>
    %244 = vector.extract_strided_slice %73 {offsets = [0, 14], sizes = [9, 1], strides = [1, 1]} : vector<9x32xf32> to vector<9x1xf32>
    %245 = vector.broadcast %244 : vector<9x1xf32> to vector<9x32xf32>
    %246 = arith.cmpf olt, %245, %73 : vector<9x32xf32>
    %247 = arith.extui %246 : vector<9x32xi1> to vector<9x32xi32>
    %248 = vector.broadcast %244 : vector<9x1xf32> to vector<9x32xf32>
    %249 = arith.cmpf oeq, %248, %73 : vector<9x32xf32>
    %c14_i32 = arith.constant 14 : i32
    %250 = vector.broadcast %c14_i32 : i32 to vector<9x32xi32>
    %251 = arith.cmpi sgt, %74, %250 : vector<9x32xi32>
    %252 = arith.andi %249, %251 : vector<9x32xi1>
    %253 = arith.extui %252 : vector<9x32xi1> to vector<9x32xi32>
    %254 = arith.addi %243, %247 : vector<9x32xi32>
    %255 = arith.addi %254, %253 : vector<9x32xi32>
    %256 = vector.extract_strided_slice %73 {offsets = [0, 15], sizes = [9, 1], strides = [1, 1]} : vector<9x32xf32> to vector<9x1xf32>
    %257 = vector.broadcast %256 : vector<9x1xf32> to vector<9x32xf32>
    %258 = arith.cmpf olt, %257, %73 : vector<9x32xf32>
    %259 = arith.extui %258 : vector<9x32xi1> to vector<9x32xi32>
    %260 = vector.broadcast %256 : vector<9x1xf32> to vector<9x32xf32>
    %261 = arith.cmpf oeq, %260, %73 : vector<9x32xf32>
    %c15_i32 = arith.constant 15 : i32
    %262 = vector.broadcast %c15_i32 : i32 to vector<9x32xi32>
    %263 = arith.cmpi sgt, %74, %262 : vector<9x32xi32>
    %264 = arith.andi %261, %263 : vector<9x32xi1>
    %265 = arith.extui %264 : vector<9x32xi1> to vector<9x32xi32>
    %266 = arith.addi %255, %259 : vector<9x32xi32>
    %267 = arith.addi %266, %265 : vector<9x32xi32>
    %268 = vector.extract_strided_slice %73 {offsets = [0, 16], sizes = [9, 1], strides = [1, 1]} : vector<9x32xf32> to vector<9x1xf32>
    %269 = vector.broadcast %268 : vector<9x1xf32> to vector<9x32xf32>
    %270 = arith.cmpf olt, %269, %73 : vector<9x32xf32>
    %271 = arith.extui %270 : vector<9x32xi1> to vector<9x32xi32>
    %272 = vector.broadcast %268 : vector<9x1xf32> to vector<9x32xf32>
    %273 = arith.cmpf oeq, %272, %73 : vector<9x32xf32>
    %c16_i32_20 = arith.constant 16 : i32
    %274 = vector.broadcast %c16_i32_20 : i32 to vector<9x32xi32>
    %275 = arith.cmpi sgt, %74, %274 : vector<9x32xi32>
    %276 = arith.andi %273, %275 : vector<9x32xi1>
    %277 = arith.extui %276 : vector<9x32xi1> to vector<9x32xi32>
    %278 = arith.addi %267, %271 : vector<9x32xi32>
    %279 = arith.addi %278, %277 : vector<9x32xi32>
    %280 = vector.extract_strided_slice %73 {offsets = [0, 17], sizes = [9, 1], strides = [1, 1]} : vector<9x32xf32> to vector<9x1xf32>
    %281 = vector.broadcast %280 : vector<9x1xf32> to vector<9x32xf32>
    %282 = arith.cmpf olt, %281, %73 : vector<9x32xf32>
    %283 = arith.extui %282 : vector<9x32xi1> to vector<9x32xi32>
    %284 = vector.broadcast %280 : vector<9x1xf32> to vector<9x32xf32>
    %285 = arith.cmpf oeq, %284, %73 : vector<9x32xf32>
    %c17_i32 = arith.constant 17 : i32
    %286 = vector.broadcast %c17_i32 : i32 to vector<9x32xi32>
    %287 = arith.cmpi sgt, %74, %286 : vector<9x32xi32>
    %288 = arith.andi %285, %287 : vector<9x32xi1>
    %289 = arith.extui %288 : vector<9x32xi1> to vector<9x32xi32>
    %290 = arith.addi %279, %283 : vector<9x32xi32>
    %291 = arith.addi %290, %289 : vector<9x32xi32>
    %292 = vector.extract_strided_slice %73 {offsets = [0, 18], sizes = [9, 1], strides = [1, 1]} : vector<9x32xf32> to vector<9x1xf32>
    %293 = vector.broadcast %292 : vector<9x1xf32> to vector<9x32xf32>
    %294 = arith.cmpf olt, %293, %73 : vector<9x32xf32>
    %295 = arith.extui %294 : vector<9x32xi1> to vector<9x32xi32>
    %296 = vector.broadcast %292 : vector<9x1xf32> to vector<9x32xf32>
    %297 = arith.cmpf oeq, %296, %73 : vector<9x32xf32>
    %c18_i32 = arith.constant 18 : i32
    %298 = vector.broadcast %c18_i32 : i32 to vector<9x32xi32>
    %299 = arith.cmpi sgt, %74, %298 : vector<9x32xi32>
    %300 = arith.andi %297, %299 : vector<9x32xi1>
    %301 = arith.extui %300 : vector<9x32xi1> to vector<9x32xi32>
    %302 = arith.addi %291, %295 : vector<9x32xi32>
    %303 = arith.addi %302, %301 : vector<9x32xi32>
    %304 = vector.extract_strided_slice %73 {offsets = [0, 19], sizes = [9, 1], strides = [1, 1]} : vector<9x32xf32> to vector<9x1xf32>
    %305 = vector.broadcast %304 : vector<9x1xf32> to vector<9x32xf32>
    %306 = arith.cmpf olt, %305, %73 : vector<9x32xf32>
    %307 = arith.extui %306 : vector<9x32xi1> to vector<9x32xi32>
    %308 = vector.broadcast %304 : vector<9x1xf32> to vector<9x32xf32>
    %309 = arith.cmpf oeq, %308, %73 : vector<9x32xf32>
    %c19_i32 = arith.constant 19 : i32
    %310 = vector.broadcast %c19_i32 : i32 to vector<9x32xi32>
    %311 = arith.cmpi sgt, %74, %310 : vector<9x32xi32>
    %312 = arith.andi %309, %311 : vector<9x32xi1>
    %313 = arith.extui %312 : vector<9x32xi1> to vector<9x32xi32>
    %314 = arith.addi %303, %307 : vector<9x32xi32>
    %315 = arith.addi %314, %313 : vector<9x32xi32>
    %316 = vector.extract_strided_slice %73 {offsets = [0, 20], sizes = [9, 1], strides = [1, 1]} : vector<9x32xf32> to vector<9x1xf32>
    %317 = vector.broadcast %316 : vector<9x1xf32> to vector<9x32xf32>
    %318 = arith.cmpf olt, %317, %73 : vector<9x32xf32>
    %319 = arith.extui %318 : vector<9x32xi1> to vector<9x32xi32>
    %320 = vector.broadcast %316 : vector<9x1xf32> to vector<9x32xf32>
    %321 = arith.cmpf oeq, %320, %73 : vector<9x32xf32>
    %c20_i32 = arith.constant 20 : i32
    %322 = vector.broadcast %c20_i32 : i32 to vector<9x32xi32>
    %323 = arith.cmpi sgt, %74, %322 : vector<9x32xi32>
    %324 = arith.andi %321, %323 : vector<9x32xi1>
    %325 = arith.extui %324 : vector<9x32xi1> to vector<9x32xi32>
    %326 = arith.addi %315, %319 : vector<9x32xi32>
    %327 = arith.addi %326, %325 : vector<9x32xi32>
    %328 = vector.extract_strided_slice %73 {offsets = [0, 21], sizes = [9, 1], strides = [1, 1]} : vector<9x32xf32> to vector<9x1xf32>
    %329 = vector.broadcast %328 : vector<9x1xf32> to vector<9x32xf32>
    %330 = arith.cmpf olt, %329, %73 : vector<9x32xf32>
    %331 = arith.extui %330 : vector<9x32xi1> to vector<9x32xi32>
    %332 = vector.broadcast %328 : vector<9x1xf32> to vector<9x32xf32>
    %333 = arith.cmpf oeq, %332, %73 : vector<9x32xf32>
    %c21_i32 = arith.constant 21 : i32
    %334 = vector.broadcast %c21_i32 : i32 to vector<9x32xi32>
    %335 = arith.cmpi sgt, %74, %334 : vector<9x32xi32>
    %336 = arith.andi %333, %335 : vector<9x32xi1>
    %337 = arith.extui %336 : vector<9x32xi1> to vector<9x32xi32>
    %338 = arith.addi %327, %331 : vector<9x32xi32>
    %339 = arith.addi %338, %337 : vector<9x32xi32>
    %340 = vector.extract_strided_slice %73 {offsets = [0, 22], sizes = [9, 1], strides = [1, 1]} : vector<9x32xf32> to vector<9x1xf32>
    %341 = vector.broadcast %340 : vector<9x1xf32> to vector<9x32xf32>
    %342 = arith.cmpf olt, %341, %73 : vector<9x32xf32>
    %343 = arith.extui %342 : vector<9x32xi1> to vector<9x32xi32>
    %344 = vector.broadcast %340 : vector<9x1xf32> to vector<9x32xf32>
    %345 = arith.cmpf oeq, %344, %73 : vector<9x32xf32>
    %c22_i32 = arith.constant 22 : i32
    %346 = vector.broadcast %c22_i32 : i32 to vector<9x32xi32>
    %347 = arith.cmpi sgt, %74, %346 : vector<9x32xi32>
    %348 = arith.andi %345, %347 : vector<9x32xi1>
    %349 = arith.extui %348 : vector<9x32xi1> to vector<9x32xi32>
    %350 = arith.addi %339, %343 : vector<9x32xi32>
    %351 = arith.addi %350, %349 : vector<9x32xi32>
    %352 = vector.extract_strided_slice %73 {offsets = [0, 23], sizes = [9, 1], strides = [1, 1]} : vector<9x32xf32> to vector<9x1xf32>
    %353 = vector.broadcast %352 : vector<9x1xf32> to vector<9x32xf32>
    %354 = arith.cmpf olt, %353, %73 : vector<9x32xf32>
    %355 = arith.extui %354 : vector<9x32xi1> to vector<9x32xi32>
    %356 = vector.broadcast %352 : vector<9x1xf32> to vector<9x32xf32>
    %357 = arith.cmpf oeq, %356, %73 : vector<9x32xf32>
    %c23_i32 = arith.constant 23 : i32
    %358 = vector.broadcast %c23_i32 : i32 to vector<9x32xi32>
    %359 = arith.cmpi sgt, %74, %358 : vector<9x32xi32>
    %360 = arith.andi %357, %359 : vector<9x32xi1>
    %361 = arith.extui %360 : vector<9x32xi1> to vector<9x32xi32>
    %362 = arith.addi %351, %355 : vector<9x32xi32>
    %363 = arith.addi %362, %361 : vector<9x32xi32>
    %364 = vector.extract_strided_slice %73 {offsets = [0, 24], sizes = [9, 1], strides = [1, 1]} : vector<9x32xf32> to vector<9x1xf32>
    %365 = vector.broadcast %364 : vector<9x1xf32> to vector<9x32xf32>
    %366 = arith.cmpf olt, %365, %73 : vector<9x32xf32>
    %367 = arith.extui %366 : vector<9x32xi1> to vector<9x32xi32>
    %368 = vector.broadcast %364 : vector<9x1xf32> to vector<9x32xf32>
    %369 = arith.cmpf oeq, %368, %73 : vector<9x32xf32>
    %c24_i32 = arith.constant 24 : i32
    %370 = vector.broadcast %c24_i32 : i32 to vector<9x32xi32>
    %371 = arith.cmpi sgt, %74, %370 : vector<9x32xi32>
    %372 = arith.andi %369, %371 : vector<9x32xi1>
    %373 = arith.extui %372 : vector<9x32xi1> to vector<9x32xi32>
    %374 = arith.addi %363, %367 : vector<9x32xi32>
    %375 = arith.addi %374, %373 : vector<9x32xi32>
    %376 = vector.extract_strided_slice %73 {offsets = [0, 25], sizes = [9, 1], strides = [1, 1]} : vector<9x32xf32> to vector<9x1xf32>
    %377 = vector.broadcast %376 : vector<9x1xf32> to vector<9x32xf32>
    %378 = arith.cmpf olt, %377, %73 : vector<9x32xf32>
    %379 = arith.extui %378 : vector<9x32xi1> to vector<9x32xi32>
    %380 = vector.broadcast %376 : vector<9x1xf32> to vector<9x32xf32>
    %381 = arith.cmpf oeq, %380, %73 : vector<9x32xf32>
    %c25_i32 = arith.constant 25 : i32
    %382 = vector.broadcast %c25_i32 : i32 to vector<9x32xi32>
    %383 = arith.cmpi sgt, %74, %382 : vector<9x32xi32>
    %384 = arith.andi %381, %383 : vector<9x32xi1>
    %385 = arith.extui %384 : vector<9x32xi1> to vector<9x32xi32>
    %386 = arith.addi %375, %379 : vector<9x32xi32>
    %387 = arith.addi %386, %385 : vector<9x32xi32>
    %388 = vector.extract_strided_slice %73 {offsets = [0, 26], sizes = [9, 1], strides = [1, 1]} : vector<9x32xf32> to vector<9x1xf32>
    %389 = vector.broadcast %388 : vector<9x1xf32> to vector<9x32xf32>
    %390 = arith.cmpf olt, %389, %73 : vector<9x32xf32>
    %391 = arith.extui %390 : vector<9x32xi1> to vector<9x32xi32>
    %392 = vector.broadcast %388 : vector<9x1xf32> to vector<9x32xf32>
    %393 = arith.cmpf oeq, %392, %73 : vector<9x32xf32>
    %c26_i32 = arith.constant 26 : i32
    %394 = vector.broadcast %c26_i32 : i32 to vector<9x32xi32>
    %395 = arith.cmpi sgt, %74, %394 : vector<9x32xi32>
    %396 = arith.andi %393, %395 : vector<9x32xi1>
    %397 = arith.extui %396 : vector<9x32xi1> to vector<9x32xi32>
    %398 = arith.addi %387, %391 : vector<9x32xi32>
    %399 = arith.addi %398, %397 : vector<9x32xi32>
    %400 = vector.extract_strided_slice %73 {offsets = [0, 27], sizes = [9, 1], strides = [1, 1]} : vector<9x32xf32> to vector<9x1xf32>
    %401 = vector.broadcast %400 : vector<9x1xf32> to vector<9x32xf32>
    %402 = arith.cmpf olt, %401, %73 : vector<9x32xf32>
    %403 = arith.extui %402 : vector<9x32xi1> to vector<9x32xi32>
    %404 = vector.broadcast %400 : vector<9x1xf32> to vector<9x32xf32>
    %405 = arith.cmpf oeq, %404, %73 : vector<9x32xf32>
    %c27_i32 = arith.constant 27 : i32
    %406 = vector.broadcast %c27_i32 : i32 to vector<9x32xi32>
    %407 = arith.cmpi sgt, %74, %406 : vector<9x32xi32>
    %408 = arith.andi %405, %407 : vector<9x32xi1>
    %409 = arith.extui %408 : vector<9x32xi1> to vector<9x32xi32>
    %410 = arith.addi %399, %403 : vector<9x32xi32>
    %411 = arith.addi %410, %409 : vector<9x32xi32>
    %412 = vector.extract_strided_slice %73 {offsets = [0, 28], sizes = [9, 1], strides = [1, 1]} : vector<9x32xf32> to vector<9x1xf32>
    %413 = vector.broadcast %412 : vector<9x1xf32> to vector<9x32xf32>
    %414 = arith.cmpf olt, %413, %73 : vector<9x32xf32>
    %415 = arith.extui %414 : vector<9x32xi1> to vector<9x32xi32>
    %416 = vector.broadcast %412 : vector<9x1xf32> to vector<9x32xf32>
    %417 = arith.cmpf oeq, %416, %73 : vector<9x32xf32>
    %c28_i32 = arith.constant 28 : i32
    %418 = vector.broadcast %c28_i32 : i32 to vector<9x32xi32>
    %419 = arith.cmpi sgt, %74, %418 : vector<9x32xi32>
    %420 = arith.andi %417, %419 : vector<9x32xi1>
    %421 = arith.extui %420 : vector<9x32xi1> to vector<9x32xi32>
    %422 = arith.addi %411, %415 : vector<9x32xi32>
    %423 = arith.addi %422, %421 : vector<9x32xi32>
    %424 = vector.extract_strided_slice %73 {offsets = [0, 29], sizes = [9, 1], strides = [1, 1]} : vector<9x32xf32> to vector<9x1xf32>
    %425 = vector.broadcast %424 : vector<9x1xf32> to vector<9x32xf32>
    %426 = arith.cmpf olt, %425, %73 : vector<9x32xf32>
    %427 = arith.extui %426 : vector<9x32xi1> to vector<9x32xi32>
    %428 = vector.broadcast %424 : vector<9x1xf32> to vector<9x32xf32>
    %429 = arith.cmpf oeq, %428, %73 : vector<9x32xf32>
    %c29_i32 = arith.constant 29 : i32
    %430 = vector.broadcast %c29_i32 : i32 to vector<9x32xi32>
    %431 = arith.cmpi sgt, %74, %430 : vector<9x32xi32>
    %432 = arith.andi %429, %431 : vector<9x32xi1>
    %433 = arith.extui %432 : vector<9x32xi1> to vector<9x32xi32>
    %434 = arith.addi %423, %427 : vector<9x32xi32>
    %435 = arith.addi %434, %433 : vector<9x32xi32>
    %436 = vector.extract_strided_slice %73 {offsets = [0, 30], sizes = [9, 1], strides = [1, 1]} : vector<9x32xf32> to vector<9x1xf32>
    %437 = vector.broadcast %436 : vector<9x1xf32> to vector<9x32xf32>
    %438 = arith.cmpf olt, %437, %73 : vector<9x32xf32>
    %439 = arith.extui %438 : vector<9x32xi1> to vector<9x32xi32>
    %440 = vector.broadcast %436 : vector<9x1xf32> to vector<9x32xf32>
    %441 = arith.cmpf oeq, %440, %73 : vector<9x32xf32>
    %c30_i32 = arith.constant 30 : i32
    %442 = vector.broadcast %c30_i32 : i32 to vector<9x32xi32>
    %443 = arith.cmpi sgt, %74, %442 : vector<9x32xi32>
    %444 = arith.andi %441, %443 : vector<9x32xi1>
    %445 = arith.extui %444 : vector<9x32xi1> to vector<9x32xi32>
    %446 = arith.addi %435, %439 : vector<9x32xi32>
    %447 = arith.addi %446, %445 : vector<9x32xi32>
    %448 = vector.extract_strided_slice %73 {offsets = [0, 31], sizes = [9, 1], strides = [1, 1]} : vector<9x32xf32> to vector<9x1xf32>
    %449 = vector.broadcast %448 : vector<9x1xf32> to vector<9x32xf32>
    %450 = arith.cmpf olt, %449, %73 : vector<9x32xf32>
    %451 = arith.extui %450 : vector<9x32xi1> to vector<9x32xi32>
    %452 = vector.broadcast %448 : vector<9x1xf32> to vector<9x32xf32>
    %453 = arith.cmpf oeq, %452, %73 : vector<9x32xf32>
    %c31_i32 = arith.constant 31 : i32
    %454 = vector.broadcast %c31_i32 : i32 to vector<9x32xi32>
    %455 = arith.cmpi sgt, %74, %454 : vector<9x32xi32>
    %456 = arith.andi %453, %455 : vector<9x32xi1>
    %457 = arith.extui %456 : vector<9x32xi1> to vector<9x32xi32>
    %458 = arith.addi %447, %451 : vector<9x32xi32>
    %459 = arith.addi %458, %457 : vector<9x32xi32>
    %cst_21 = arith.constant 0.000000e+00 : f32
    %460 = vector.broadcast %cst_21 : f32 to vector<9x32xf32>
    %461 = vector.extract_strided_slice %459 {offsets = [0, 0], sizes = [9, 1], strides = [1, 1]} : vector<9x32xi32> to vector<9x1xi32>
    %462 = vector.broadcast %461 : vector<9x1xi32> to vector<9x32xi32>
    %463 = arith.cmpi eq, %462, %74 : vector<9x32xi32>
    %464 = vector.extract_strided_slice %73 {offsets = [0, 0], sizes = [9, 1], strides = [1, 1]} : vector<9x32xf32> to vector<9x1xf32>
    %cst_22 = arith.constant 0.000000e+00 : f32
    %465 = vector.shape_cast %464 : vector<9x1xf32> to vector<9x1xf32>
    %466 = vector.broadcast %465 : vector<9x1xf32> to vector<9x32xf32>
    %467 = vector.broadcast %cst_22 : f32 to vector<9x32xf32>
    %468 = arith.select %463, %466, %467 : vector<9x32xi1>, vector<9x32xf32>
    %469 = arith.addf %460, %468 : vector<9x32xf32>
    %470 = vector.extract_strided_slice %459 {offsets = [0, 1], sizes = [9, 1], strides = [1, 1]} : vector<9x32xi32> to vector<9x1xi32>
    %471 = vector.broadcast %470 : vector<9x1xi32> to vector<9x32xi32>
    %472 = arith.cmpi eq, %471, %74 : vector<9x32xi32>
    %473 = vector.extract_strided_slice %73 {offsets = [0, 1], sizes = [9, 1], strides = [1, 1]} : vector<9x32xf32> to vector<9x1xf32>
    %cst_23 = arith.constant 0.000000e+00 : f32
    %474 = vector.shape_cast %473 : vector<9x1xf32> to vector<9x1xf32>
    %475 = vector.broadcast %474 : vector<9x1xf32> to vector<9x32xf32>
    %476 = vector.broadcast %cst_23 : f32 to vector<9x32xf32>
    %477 = arith.select %472, %475, %476 : vector<9x32xi1>, vector<9x32xf32>
    %478 = arith.addf %469, %477 : vector<9x32xf32>
    %479 = vector.extract_strided_slice %459 {offsets = [0, 2], sizes = [9, 1], strides = [1, 1]} : vector<9x32xi32> to vector<9x1xi32>
    %480 = vector.broadcast %479 : vector<9x1xi32> to vector<9x32xi32>
    %481 = arith.cmpi eq, %480, %74 : vector<9x32xi32>
    %482 = vector.extract_strided_slice %73 {offsets = [0, 2], sizes = [9, 1], strides = [1, 1]} : vector<9x32xf32> to vector<9x1xf32>
    %cst_24 = arith.constant 0.000000e+00 : f32
    %483 = vector.shape_cast %482 : vector<9x1xf32> to vector<9x1xf32>
    %484 = vector.broadcast %483 : vector<9x1xf32> to vector<9x32xf32>
    %485 = vector.broadcast %cst_24 : f32 to vector<9x32xf32>
    %486 = arith.select %481, %484, %485 : vector<9x32xi1>, vector<9x32xf32>
    %487 = arith.addf %478, %486 : vector<9x32xf32>
    %488 = vector.extract_strided_slice %459 {offsets = [0, 3], sizes = [9, 1], strides = [1, 1]} : vector<9x32xi32> to vector<9x1xi32>
    %489 = vector.broadcast %488 : vector<9x1xi32> to vector<9x32xi32>
    %490 = arith.cmpi eq, %489, %74 : vector<9x32xi32>
    %491 = vector.extract_strided_slice %73 {offsets = [0, 3], sizes = [9, 1], strides = [1, 1]} : vector<9x32xf32> to vector<9x1xf32>
    %cst_25 = arith.constant 0.000000e+00 : f32
    %492 = vector.shape_cast %491 : vector<9x1xf32> to vector<9x1xf32>
    %493 = vector.broadcast %492 : vector<9x1xf32> to vector<9x32xf32>
    %494 = vector.broadcast %cst_25 : f32 to vector<9x32xf32>
    %495 = arith.select %490, %493, %494 : vector<9x32xi1>, vector<9x32xf32>
    %496 = arith.addf %487, %495 : vector<9x32xf32>
    %497 = vector.extract_strided_slice %459 {offsets = [0, 4], sizes = [9, 1], strides = [1, 1]} : vector<9x32xi32> to vector<9x1xi32>
    %498 = vector.broadcast %497 : vector<9x1xi32> to vector<9x32xi32>
    %499 = arith.cmpi eq, %498, %74 : vector<9x32xi32>
    %500 = vector.extract_strided_slice %73 {offsets = [0, 4], sizes = [9, 1], strides = [1, 1]} : vector<9x32xf32> to vector<9x1xf32>
    %cst_26 = arith.constant 0.000000e+00 : f32
    %501 = vector.shape_cast %500 : vector<9x1xf32> to vector<9x1xf32>
    %502 = vector.broadcast %501 : vector<9x1xf32> to vector<9x32xf32>
    %503 = vector.broadcast %cst_26 : f32 to vector<9x32xf32>
    %504 = arith.select %499, %502, %503 : vector<9x32xi1>, vector<9x32xf32>
    %505 = arith.addf %496, %504 : vector<9x32xf32>
    %506 = vector.extract_strided_slice %459 {offsets = [0, 5], sizes = [9, 1], strides = [1, 1]} : vector<9x32xi32> to vector<9x1xi32>
    %507 = vector.broadcast %506 : vector<9x1xi32> to vector<9x32xi32>
    %508 = arith.cmpi eq, %507, %74 : vector<9x32xi32>
    %509 = vector.extract_strided_slice %73 {offsets = [0, 5], sizes = [9, 1], strides = [1, 1]} : vector<9x32xf32> to vector<9x1xf32>
    %cst_27 = arith.constant 0.000000e+00 : f32
    %510 = vector.shape_cast %509 : vector<9x1xf32> to vector<9x1xf32>
    %511 = vector.broadcast %510 : vector<9x1xf32> to vector<9x32xf32>
    %512 = vector.broadcast %cst_27 : f32 to vector<9x32xf32>
    %513 = arith.select %508, %511, %512 : vector<9x32xi1>, vector<9x32xf32>
    %514 = arith.addf %505, %513 : vector<9x32xf32>
    %515 = vector.extract_strided_slice %459 {offsets = [0, 6], sizes = [9, 1], strides = [1, 1]} : vector<9x32xi32> to vector<9x1xi32>
    %516 = vector.broadcast %515 : vector<9x1xi32> to vector<9x32xi32>
    %517 = arith.cmpi eq, %516, %74 : vector<9x32xi32>
    %518 = vector.extract_strided_slice %73 {offsets = [0, 6], sizes = [9, 1], strides = [1, 1]} : vector<9x32xf32> to vector<9x1xf32>
    %cst_28 = arith.constant 0.000000e+00 : f32
    %519 = vector.shape_cast %518 : vector<9x1xf32> to vector<9x1xf32>
    %520 = vector.broadcast %519 : vector<9x1xf32> to vector<9x32xf32>
    %521 = vector.broadcast %cst_28 : f32 to vector<9x32xf32>
    %522 = arith.select %517, %520, %521 : vector<9x32xi1>, vector<9x32xf32>
    %523 = arith.addf %514, %522 : vector<9x32xf32>
    %524 = vector.extract_strided_slice %459 {offsets = [0, 7], sizes = [9, 1], strides = [1, 1]} : vector<9x32xi32> to vector<9x1xi32>
    %525 = vector.broadcast %524 : vector<9x1xi32> to vector<9x32xi32>
    %526 = arith.cmpi eq, %525, %74 : vector<9x32xi32>
    %527 = vector.extract_strided_slice %73 {offsets = [0, 7], sizes = [9, 1], strides = [1, 1]} : vector<9x32xf32> to vector<9x1xf32>
    %cst_29 = arith.constant 0.000000e+00 : f32
    %528 = vector.shape_cast %527 : vector<9x1xf32> to vector<9x1xf32>
    %529 = vector.broadcast %528 : vector<9x1xf32> to vector<9x32xf32>
    %530 = vector.broadcast %cst_29 : f32 to vector<9x32xf32>
    %531 = arith.select %526, %529, %530 : vector<9x32xi1>, vector<9x32xf32>
    %532 = arith.addf %523, %531 : vector<9x32xf32>
    %533 = vector.extract_strided_slice %459 {offsets = [0, 8], sizes = [9, 1], strides = [1, 1]} : vector<9x32xi32> to vector<9x1xi32>
    %534 = vector.broadcast %533 : vector<9x1xi32> to vector<9x32xi32>
    %535 = arith.cmpi eq, %534, %74 : vector<9x32xi32>
    %536 = vector.extract_strided_slice %73 {offsets = [0, 8], sizes = [9, 1], strides = [1, 1]} : vector<9x32xf32> to vector<9x1xf32>
    %cst_30 = arith.constant 0.000000e+00 : f32
    %537 = vector.shape_cast %536 : vector<9x1xf32> to vector<9x1xf32>
    %538 = vector.broadcast %537 : vector<9x1xf32> to vector<9x32xf32>
    %539 = vector.broadcast %cst_30 : f32 to vector<9x32xf32>
    %540 = arith.select %535, %538, %539 : vector<9x32xi1>, vector<9x32xf32>
    %541 = arith.addf %532, %540 : vector<9x32xf32>
    %542 = vector.extract_strided_slice %459 {offsets = [0, 9], sizes = [9, 1], strides = [1, 1]} : vector<9x32xi32> to vector<9x1xi32>
    %543 = vector.broadcast %542 : vector<9x1xi32> to vector<9x32xi32>
    %544 = arith.cmpi eq, %543, %74 : vector<9x32xi32>
    %545 = vector.extract_strided_slice %73 {offsets = [0, 9], sizes = [9, 1], strides = [1, 1]} : vector<9x32xf32> to vector<9x1xf32>
    %cst_31 = arith.constant 0.000000e+00 : f32
    %546 = vector.shape_cast %545 : vector<9x1xf32> to vector<9x1xf32>
    %547 = vector.broadcast %546 : vector<9x1xf32> to vector<9x32xf32>
    %548 = vector.broadcast %cst_31 : f32 to vector<9x32xf32>
    %549 = arith.select %544, %547, %548 : vector<9x32xi1>, vector<9x32xf32>
    %550 = arith.addf %541, %549 : vector<9x32xf32>
    %551 = vector.extract_strided_slice %459 {offsets = [0, 10], sizes = [9, 1], strides = [1, 1]} : vector<9x32xi32> to vector<9x1xi32>
    %552 = vector.broadcast %551 : vector<9x1xi32> to vector<9x32xi32>
    %553 = arith.cmpi eq, %552, %74 : vector<9x32xi32>
    %554 = vector.extract_strided_slice %73 {offsets = [0, 10], sizes = [9, 1], strides = [1, 1]} : vector<9x32xf32> to vector<9x1xf32>
    %cst_32 = arith.constant 0.000000e+00 : f32
    %555 = vector.shape_cast %554 : vector<9x1xf32> to vector<9x1xf32>
    %556 = vector.broadcast %555 : vector<9x1xf32> to vector<9x32xf32>
    %557 = vector.broadcast %cst_32 : f32 to vector<9x32xf32>
    %558 = arith.select %553, %556, %557 : vector<9x32xi1>, vector<9x32xf32>
    %559 = arith.addf %550, %558 : vector<9x32xf32>
    %560 = vector.extract_strided_slice %459 {offsets = [0, 11], sizes = [9, 1], strides = [1, 1]} : vector<9x32xi32> to vector<9x1xi32>
    %561 = vector.broadcast %560 : vector<9x1xi32> to vector<9x32xi32>
    %562 = arith.cmpi eq, %561, %74 : vector<9x32xi32>
    %563 = vector.extract_strided_slice %73 {offsets = [0, 11], sizes = [9, 1], strides = [1, 1]} : vector<9x32xf32> to vector<9x1xf32>
    %cst_33 = arith.constant 0.000000e+00 : f32
    %564 = vector.shape_cast %563 : vector<9x1xf32> to vector<9x1xf32>
    %565 = vector.broadcast %564 : vector<9x1xf32> to vector<9x32xf32>
    %566 = vector.broadcast %cst_33 : f32 to vector<9x32xf32>
    %567 = arith.select %562, %565, %566 : vector<9x32xi1>, vector<9x32xf32>
    %568 = arith.addf %559, %567 : vector<9x32xf32>
    %569 = vector.extract_strided_slice %459 {offsets = [0, 12], sizes = [9, 1], strides = [1, 1]} : vector<9x32xi32> to vector<9x1xi32>
    %570 = vector.broadcast %569 : vector<9x1xi32> to vector<9x32xi32>
    %571 = arith.cmpi eq, %570, %74 : vector<9x32xi32>
    %572 = vector.extract_strided_slice %73 {offsets = [0, 12], sizes = [9, 1], strides = [1, 1]} : vector<9x32xf32> to vector<9x1xf32>
    %cst_34 = arith.constant 0.000000e+00 : f32
    %573 = vector.shape_cast %572 : vector<9x1xf32> to vector<9x1xf32>
    %574 = vector.broadcast %573 : vector<9x1xf32> to vector<9x32xf32>
    %575 = vector.broadcast %cst_34 : f32 to vector<9x32xf32>
    %576 = arith.select %571, %574, %575 : vector<9x32xi1>, vector<9x32xf32>
    %577 = arith.addf %568, %576 : vector<9x32xf32>
    %578 = vector.extract_strided_slice %459 {offsets = [0, 13], sizes = [9, 1], strides = [1, 1]} : vector<9x32xi32> to vector<9x1xi32>
    %579 = vector.broadcast %578 : vector<9x1xi32> to vector<9x32xi32>
    %580 = arith.cmpi eq, %579, %74 : vector<9x32xi32>
    %581 = vector.extract_strided_slice %73 {offsets = [0, 13], sizes = [9, 1], strides = [1, 1]} : vector<9x32xf32> to vector<9x1xf32>
    %cst_35 = arith.constant 0.000000e+00 : f32
    %582 = vector.shape_cast %581 : vector<9x1xf32> to vector<9x1xf32>
    %583 = vector.broadcast %582 : vector<9x1xf32> to vector<9x32xf32>
    %584 = vector.broadcast %cst_35 : f32 to vector<9x32xf32>
    %585 = arith.select %580, %583, %584 : vector<9x32xi1>, vector<9x32xf32>
    %586 = arith.addf %577, %585 : vector<9x32xf32>
    %587 = vector.extract_strided_slice %459 {offsets = [0, 14], sizes = [9, 1], strides = [1, 1]} : vector<9x32xi32> to vector<9x1xi32>
    %588 = vector.broadcast %587 : vector<9x1xi32> to vector<9x32xi32>
    %589 = arith.cmpi eq, %588, %74 : vector<9x32xi32>
    %590 = vector.extract_strided_slice %73 {offsets = [0, 14], sizes = [9, 1], strides = [1, 1]} : vector<9x32xf32> to vector<9x1xf32>
    %cst_36 = arith.constant 0.000000e+00 : f32
    %591 = vector.shape_cast %590 : vector<9x1xf32> to vector<9x1xf32>
    %592 = vector.broadcast %591 : vector<9x1xf32> to vector<9x32xf32>
    %593 = vector.broadcast %cst_36 : f32 to vector<9x32xf32>
    %594 = arith.select %589, %592, %593 : vector<9x32xi1>, vector<9x32xf32>
    %595 = arith.addf %586, %594 : vector<9x32xf32>
    %596 = vector.extract_strided_slice %459 {offsets = [0, 15], sizes = [9, 1], strides = [1, 1]} : vector<9x32xi32> to vector<9x1xi32>
    %597 = vector.broadcast %596 : vector<9x1xi32> to vector<9x32xi32>
    %598 = arith.cmpi eq, %597, %74 : vector<9x32xi32>
    %599 = vector.extract_strided_slice %73 {offsets = [0, 15], sizes = [9, 1], strides = [1, 1]} : vector<9x32xf32> to vector<9x1xf32>
    %cst_37 = arith.constant 0.000000e+00 : f32
    %600 = vector.shape_cast %599 : vector<9x1xf32> to vector<9x1xf32>
    %601 = vector.broadcast %600 : vector<9x1xf32> to vector<9x32xf32>
    %602 = vector.broadcast %cst_37 : f32 to vector<9x32xf32>
    %603 = arith.select %598, %601, %602 : vector<9x32xi1>, vector<9x32xf32>
    %604 = arith.addf %595, %603 : vector<9x32xf32>
    %605 = vector.extract_strided_slice %459 {offsets = [0, 16], sizes = [9, 1], strides = [1, 1]} : vector<9x32xi32> to vector<9x1xi32>
    %606 = vector.broadcast %605 : vector<9x1xi32> to vector<9x32xi32>
    %607 = arith.cmpi eq, %606, %74 : vector<9x32xi32>
    %608 = vector.extract_strided_slice %73 {offsets = [0, 16], sizes = [9, 1], strides = [1, 1]} : vector<9x32xf32> to vector<9x1xf32>
    %cst_38 = arith.constant 0.000000e+00 : f32
    %609 = vector.shape_cast %608 : vector<9x1xf32> to vector<9x1xf32>
    %610 = vector.broadcast %609 : vector<9x1xf32> to vector<9x32xf32>
    %611 = vector.broadcast %cst_38 : f32 to vector<9x32xf32>
    %612 = arith.select %607, %610, %611 : vector<9x32xi1>, vector<9x32xf32>
    %613 = arith.addf %604, %612 : vector<9x32xf32>
    %614 = vector.extract_strided_slice %459 {offsets = [0, 17], sizes = [9, 1], strides = [1, 1]} : vector<9x32xi32> to vector<9x1xi32>
    %615 = vector.broadcast %614 : vector<9x1xi32> to vector<9x32xi32>
    %616 = arith.cmpi eq, %615, %74 : vector<9x32xi32>
    %617 = vector.extract_strided_slice %73 {offsets = [0, 17], sizes = [9, 1], strides = [1, 1]} : vector<9x32xf32> to vector<9x1xf32>
    %cst_39 = arith.constant 0.000000e+00 : f32
    %618 = vector.shape_cast %617 : vector<9x1xf32> to vector<9x1xf32>
    %619 = vector.broadcast %618 : vector<9x1xf32> to vector<9x32xf32>
    %620 = vector.broadcast %cst_39 : f32 to vector<9x32xf32>
    %621 = arith.select %616, %619, %620 : vector<9x32xi1>, vector<9x32xf32>
    %622 = arith.addf %613, %621 : vector<9x32xf32>
    %623 = vector.extract_strided_slice %459 {offsets = [0, 18], sizes = [9, 1], strides = [1, 1]} : vector<9x32xi32> to vector<9x1xi32>
    %624 = vector.broadcast %623 : vector<9x1xi32> to vector<9x32xi32>
    %625 = arith.cmpi eq, %624, %74 : vector<9x32xi32>
    %626 = vector.extract_strided_slice %73 {offsets = [0, 18], sizes = [9, 1], strides = [1, 1]} : vector<9x32xf32> to vector<9x1xf32>
    %cst_40 = arith.constant 0.000000e+00 : f32
    %627 = vector.shape_cast %626 : vector<9x1xf32> to vector<9x1xf32>
    %628 = vector.broadcast %627 : vector<9x1xf32> to vector<9x32xf32>
    %629 = vector.broadcast %cst_40 : f32 to vector<9x32xf32>
    %630 = arith.select %625, %628, %629 : vector<9x32xi1>, vector<9x32xf32>
    %631 = arith.addf %622, %630 : vector<9x32xf32>
    %632 = vector.extract_strided_slice %459 {offsets = [0, 19], sizes = [9, 1], strides = [1, 1]} : vector<9x32xi32> to vector<9x1xi32>
    %633 = vector.broadcast %632 : vector<9x1xi32> to vector<9x32xi32>
    %634 = arith.cmpi eq, %633, %74 : vector<9x32xi32>
    %635 = vector.extract_strided_slice %73 {offsets = [0, 19], sizes = [9, 1], strides = [1, 1]} : vector<9x32xf32> to vector<9x1xf32>
    %cst_41 = arith.constant 0.000000e+00 : f32
    %636 = vector.shape_cast %635 : vector<9x1xf32> to vector<9x1xf32>
    %637 = vector.broadcast %636 : vector<9x1xf32> to vector<9x32xf32>
    %638 = vector.broadcast %cst_41 : f32 to vector<9x32xf32>
    %639 = arith.select %634, %637, %638 : vector<9x32xi1>, vector<9x32xf32>
    %640 = arith.addf %631, %639 : vector<9x32xf32>
    %641 = vector.extract_strided_slice %459 {offsets = [0, 20], sizes = [9, 1], strides = [1, 1]} : vector<9x32xi32> to vector<9x1xi32>
    %642 = vector.broadcast %641 : vector<9x1xi32> to vector<9x32xi32>
    %643 = arith.cmpi eq, %642, %74 : vector<9x32xi32>
    %644 = vector.extract_strided_slice %73 {offsets = [0, 20], sizes = [9, 1], strides = [1, 1]} : vector<9x32xf32> to vector<9x1xf32>
    %cst_42 = arith.constant 0.000000e+00 : f32
    %645 = vector.shape_cast %644 : vector<9x1xf32> to vector<9x1xf32>
    %646 = vector.broadcast %645 : vector<9x1xf32> to vector<9x32xf32>
    %647 = vector.broadcast %cst_42 : f32 to vector<9x32xf32>
    %648 = arith.select %643, %646, %647 : vector<9x32xi1>, vector<9x32xf32>
    %649 = arith.addf %640, %648 : vector<9x32xf32>
    %650 = vector.extract_strided_slice %459 {offsets = [0, 21], sizes = [9, 1], strides = [1, 1]} : vector<9x32xi32> to vector<9x1xi32>
    %651 = vector.broadcast %650 : vector<9x1xi32> to vector<9x32xi32>
    %652 = arith.cmpi eq, %651, %74 : vector<9x32xi32>
    %653 = vector.extract_strided_slice %73 {offsets = [0, 21], sizes = [9, 1], strides = [1, 1]} : vector<9x32xf32> to vector<9x1xf32>
    %cst_43 = arith.constant 0.000000e+00 : f32
    %654 = vector.shape_cast %653 : vector<9x1xf32> to vector<9x1xf32>
    %655 = vector.broadcast %654 : vector<9x1xf32> to vector<9x32xf32>
    %656 = vector.broadcast %cst_43 : f32 to vector<9x32xf32>
    %657 = arith.select %652, %655, %656 : vector<9x32xi1>, vector<9x32xf32>
    %658 = arith.addf %649, %657 : vector<9x32xf32>
    %659 = vector.extract_strided_slice %459 {offsets = [0, 22], sizes = [9, 1], strides = [1, 1]} : vector<9x32xi32> to vector<9x1xi32>
    %660 = vector.broadcast %659 : vector<9x1xi32> to vector<9x32xi32>
    %661 = arith.cmpi eq, %660, %74 : vector<9x32xi32>
    %662 = vector.extract_strided_slice %73 {offsets = [0, 22], sizes = [9, 1], strides = [1, 1]} : vector<9x32xf32> to vector<9x1xf32>
    %cst_44 = arith.constant 0.000000e+00 : f32
    %663 = vector.shape_cast %662 : vector<9x1xf32> to vector<9x1xf32>
    %664 = vector.broadcast %663 : vector<9x1xf32> to vector<9x32xf32>
    %665 = vector.broadcast %cst_44 : f32 to vector<9x32xf32>
    %666 = arith.select %661, %664, %665 : vector<9x32xi1>, vector<9x32xf32>
    %667 = arith.addf %658, %666 : vector<9x32xf32>
    %668 = vector.extract_strided_slice %459 {offsets = [0, 23], sizes = [9, 1], strides = [1, 1]} : vector<9x32xi32> to vector<9x1xi32>
    %669 = vector.broadcast %668 : vector<9x1xi32> to vector<9x32xi32>
    %670 = arith.cmpi eq, %669, %74 : vector<9x32xi32>
    %671 = vector.extract_strided_slice %73 {offsets = [0, 23], sizes = [9, 1], strides = [1, 1]} : vector<9x32xf32> to vector<9x1xf32>
    %cst_45 = arith.constant 0.000000e+00 : f32
    %672 = vector.shape_cast %671 : vector<9x1xf32> to vector<9x1xf32>
    %673 = vector.broadcast %672 : vector<9x1xf32> to vector<9x32xf32>
    %674 = vector.broadcast %cst_45 : f32 to vector<9x32xf32>
    %675 = arith.select %670, %673, %674 : vector<9x32xi1>, vector<9x32xf32>
    %676 = arith.addf %667, %675 : vector<9x32xf32>
    %677 = vector.extract_strided_slice %459 {offsets = [0, 24], sizes = [9, 1], strides = [1, 1]} : vector<9x32xi32> to vector<9x1xi32>
    %678 = vector.broadcast %677 : vector<9x1xi32> to vector<9x32xi32>
    %679 = arith.cmpi eq, %678, %74 : vector<9x32xi32>
    %680 = vector.extract_strided_slice %73 {offsets = [0, 24], sizes = [9, 1], strides = [1, 1]} : vector<9x32xf32> to vector<9x1xf32>
    %cst_46 = arith.constant 0.000000e+00 : f32
    %681 = vector.shape_cast %680 : vector<9x1xf32> to vector<9x1xf32>
    %682 = vector.broadcast %681 : vector<9x1xf32> to vector<9x32xf32>
    %683 = vector.broadcast %cst_46 : f32 to vector<9x32xf32>
    %684 = arith.select %679, %682, %683 : vector<9x32xi1>, vector<9x32xf32>
    %685 = arith.addf %676, %684 : vector<9x32xf32>
    %686 = vector.extract_strided_slice %459 {offsets = [0, 25], sizes = [9, 1], strides = [1, 1]} : vector<9x32xi32> to vector<9x1xi32>
    %687 = vector.broadcast %686 : vector<9x1xi32> to vector<9x32xi32>
    %688 = arith.cmpi eq, %687, %74 : vector<9x32xi32>
    %689 = vector.extract_strided_slice %73 {offsets = [0, 25], sizes = [9, 1], strides = [1, 1]} : vector<9x32xf32> to vector<9x1xf32>
    %cst_47 = arith.constant 0.000000e+00 : f32
    %690 = vector.shape_cast %689 : vector<9x1xf32> to vector<9x1xf32>
    %691 = vector.broadcast %690 : vector<9x1xf32> to vector<9x32xf32>
    %692 = vector.broadcast %cst_47 : f32 to vector<9x32xf32>
    %693 = arith.select %688, %691, %692 : vector<9x32xi1>, vector<9x32xf32>
    %694 = arith.addf %685, %693 : vector<9x32xf32>
    %695 = vector.extract_strided_slice %459 {offsets = [0, 26], sizes = [9, 1], strides = [1, 1]} : vector<9x32xi32> to vector<9x1xi32>
    %696 = vector.broadcast %695 : vector<9x1xi32> to vector<9x32xi32>
    %697 = arith.cmpi eq, %696, %74 : vector<9x32xi32>
    %698 = vector.extract_strided_slice %73 {offsets = [0, 26], sizes = [9, 1], strides = [1, 1]} : vector<9x32xf32> to vector<9x1xf32>
    %cst_48 = arith.constant 0.000000e+00 : f32
    %699 = vector.shape_cast %698 : vector<9x1xf32> to vector<9x1xf32>
    %700 = vector.broadcast %699 : vector<9x1xf32> to vector<9x32xf32>
    %701 = vector.broadcast %cst_48 : f32 to vector<9x32xf32>
    %702 = arith.select %697, %700, %701 : vector<9x32xi1>, vector<9x32xf32>
    %703 = arith.addf %694, %702 : vector<9x32xf32>
    %704 = vector.extract_strided_slice %459 {offsets = [0, 27], sizes = [9, 1], strides = [1, 1]} : vector<9x32xi32> to vector<9x1xi32>
    %705 = vector.broadcast %704 : vector<9x1xi32> to vector<9x32xi32>
    %706 = arith.cmpi eq, %705, %74 : vector<9x32xi32>
    %707 = vector.extract_strided_slice %73 {offsets = [0, 27], sizes = [9, 1], strides = [1, 1]} : vector<9x32xf32> to vector<9x1xf32>
    %cst_49 = arith.constant 0.000000e+00 : f32
    %708 = vector.shape_cast %707 : vector<9x1xf32> to vector<9x1xf32>
    %709 = vector.broadcast %708 : vector<9x1xf32> to vector<9x32xf32>
    %710 = vector.broadcast %cst_49 : f32 to vector<9x32xf32>
    %711 = arith.select %706, %709, %710 : vector<9x32xi1>, vector<9x32xf32>
    %712 = arith.addf %703, %711 : vector<9x32xf32>
    %713 = vector.extract_strided_slice %459 {offsets = [0, 28], sizes = [9, 1], strides = [1, 1]} : vector<9x32xi32> to vector<9x1xi32>
    %714 = vector.broadcast %713 : vector<9x1xi32> to vector<9x32xi32>
    %715 = arith.cmpi eq, %714, %74 : vector<9x32xi32>
    %716 = vector.extract_strided_slice %73 {offsets = [0, 28], sizes = [9, 1], strides = [1, 1]} : vector<9x32xf32> to vector<9x1xf32>
    %cst_50 = arith.constant 0.000000e+00 : f32
    %717 = vector.shape_cast %716 : vector<9x1xf32> to vector<9x1xf32>
    %718 = vector.broadcast %717 : vector<9x1xf32> to vector<9x32xf32>
    %719 = vector.broadcast %cst_50 : f32 to vector<9x32xf32>
    %720 = arith.select %715, %718, %719 : vector<9x32xi1>, vector<9x32xf32>
    %721 = arith.addf %712, %720 : vector<9x32xf32>
    %722 = vector.extract_strided_slice %459 {offsets = [0, 29], sizes = [9, 1], strides = [1, 1]} : vector<9x32xi32> to vector<9x1xi32>
    %723 = vector.broadcast %722 : vector<9x1xi32> to vector<9x32xi32>
    %724 = arith.cmpi eq, %723, %74 : vector<9x32xi32>
    %725 = vector.extract_strided_slice %73 {offsets = [0, 29], sizes = [9, 1], strides = [1, 1]} : vector<9x32xf32> to vector<9x1xf32>
    %cst_51 = arith.constant 0.000000e+00 : f32
    %726 = vector.shape_cast %725 : vector<9x1xf32> to vector<9x1xf32>
    %727 = vector.broadcast %726 : vector<9x1xf32> to vector<9x32xf32>
    %728 = vector.broadcast %cst_51 : f32 to vector<9x32xf32>
    %729 = arith.select %724, %727, %728 : vector<9x32xi1>, vector<9x32xf32>
    %730 = arith.addf %721, %729 : vector<9x32xf32>
    %731 = vector.extract_strided_slice %459 {offsets = [0, 30], sizes = [9, 1], strides = [1, 1]} : vector<9x32xi32> to vector<9x1xi32>
    %732 = vector.broadcast %731 : vector<9x1xi32> to vector<9x32xi32>
    %733 = arith.cmpi eq, %732, %74 : vector<9x32xi32>
    %734 = vector.extract_strided_slice %73 {offsets = [0, 30], sizes = [9, 1], strides = [1, 1]} : vector<9x32xf32> to vector<9x1xf32>
    %cst_52 = arith.constant 0.000000e+00 : f32
    %735 = vector.shape_cast %734 : vector<9x1xf32> to vector<9x1xf32>
    %736 = vector.broadcast %735 : vector<9x1xf32> to vector<9x32xf32>
    %737 = vector.broadcast %cst_52 : f32 to vector<9x32xf32>
    %738 = arith.select %733, %736, %737 : vector<9x32xi1>, vector<9x32xf32>
    %739 = arith.addf %730, %738 : vector<9x32xf32>
    %740 = vector.extract_strided_slice %459 {offsets = [0, 31], sizes = [9, 1], strides = [1, 1]} : vector<9x32xi32> to vector<9x1xi32>
    %741 = vector.broadcast %740 : vector<9x1xi32> to vector<9x32xi32>
    %742 = arith.cmpi eq, %741, %74 : vector<9x32xi32>
    %743 = vector.extract_strided_slice %73 {offsets = [0, 31], sizes = [9, 1], strides = [1, 1]} : vector<9x32xf32> to vector<9x1xf32>
    %cst_53 = arith.constant 0.000000e+00 : f32
    %744 = vector.shape_cast %743 : vector<9x1xf32> to vector<9x1xf32>
    %745 = vector.broadcast %744 : vector<9x1xf32> to vector<9x32xf32>
    %746 = vector.broadcast %cst_53 : f32 to vector<9x32xf32>
    %747 = arith.select %742, %745, %746 : vector<9x32xi1>, vector<9x32xf32>
    %748 = arith.addf %739, %747 : vector<9x32xf32>
    %c0_54 = arith.constant 0 : index
    %c0_55 = arith.constant 0 : index
    %749 = vector.load %arg3[%c0_54, %c0_55] : memref<32x72xf32, #tpu.memory_space<vmem>>, vector<32x72xf32>
    %cst_56 = arith.constant dense<0.000000e+00> : vector<9x72xf32>
    %750 = tpu.matmul %748, %749, %cst_56 {dimension_numbers = #tpu.dot_dimension_numbers<[1], [0], [0], [1], [0, 0, 1, 1], [], []>} : vector<9x32xf32>, vector<32x72xf32>, vector<9x72xf32> -> vector<9x72xf32>
    %751 = tpu.iota {dimensions = array<i32: 0>} : vector<9x72xi32>
    %752 = tpu.iota {dimensions = array<i32: 1>} : vector<9x72xi32>
    %c8_i32_57 = arith.constant 8 : i32
    %753 = vector.broadcast %c8_i32_57 : i32 to vector<9x72xi32>
    %754 = arith.muli %751, %753 : vector<9x72xi32>
    %755 = arith.cmpi sge, %752, %754 : vector<9x72xi32>
    %c8_i32_58 = arith.constant 8 : i32
    %756 = vector.broadcast %c8_i32_58 : i32 to vector<9x72xi32>
    %757 = arith.muli %751, %756 : vector<9x72xi32>
    %c8_i32_59 = arith.constant 8 : i32
    %758 = vector.broadcast %c8_i32_59 : i32 to vector<9x72xi32>
    %759 = arith.addi %757, %758 : vector<9x72xi32>
    %760 = arith.cmpi slt, %752, %759 : vector<9x72xi32>
    %761 = arith.andi %755, %760 : vector<9x72xi1>
    %cst_60 = arith.constant 0.000000e+00 : f32
    %762 = vector.broadcast %cst_60 : f32 to vector<9x72xf32>
    %763 = arith.select %761, %750, %762 : vector<9x72xi1>, vector<9x72xf32>
    %cst_61 = arith.constant dense<0.000000e+00> : vector<72xf32>
    %764 = vector.multi_reduction <add>, %763, %cst_61 [0] : vector<9x72xf32> to vector<72xf32>
    %765 = vector.shape_cast %764 : vector<72xf32> to vector<1x72xf32>
    %c0_62 = arith.constant 0 : index
    %c0_63 = arith.constant 0 : index
    %766 = vector.load %arg4[%c0_62, %c0_63] : memref<1x8xf32, #tpu.memory_space<vmem>>, vector<1x8xf32>
    %767 = vector.extract_strided_slice %765 {offsets = [0, 0], sizes = [1, 8], strides = [1, 1]} : vector<1x72xf32> to vector<1x8xf32>
    %768 = arith.addf %766, %767 : vector<1x8xf32>
    %769 = vector.extract_strided_slice %765 {offsets = [0, 8], sizes = [1, 8], strides = [1, 1]} : vector<1x72xf32> to vector<1x8xf32>
    %770 = arith.addf %768, %769 : vector<1x8xf32>
    %771 = vector.extract_strided_slice %765 {offsets = [0, 16], sizes = [1, 8], strides = [1, 1]} : vector<1x72xf32> to vector<1x8xf32>
    %772 = arith.addf %770, %771 : vector<1x8xf32>
    %773 = vector.extract_strided_slice %765 {offsets = [0, 24], sizes = [1, 8], strides = [1, 1]} : vector<1x72xf32> to vector<1x8xf32>
    %774 = arith.addf %772, %773 : vector<1x8xf32>
    %775 = vector.extract_strided_slice %765 {offsets = [0, 32], sizes = [1, 8], strides = [1, 1]} : vector<1x72xf32> to vector<1x8xf32>
    %776 = arith.addf %774, %775 : vector<1x8xf32>
    %777 = vector.extract_strided_slice %765 {offsets = [0, 40], sizes = [1, 8], strides = [1, 1]} : vector<1x72xf32> to vector<1x8xf32>
    %778 = arith.addf %776, %777 : vector<1x8xf32>
    %779 = vector.extract_strided_slice %765 {offsets = [0, 48], sizes = [1, 8], strides = [1, 1]} : vector<1x72xf32> to vector<1x8xf32>
    %780 = arith.addf %778, %779 : vector<1x8xf32>
    %781 = vector.extract_strided_slice %765 {offsets = [0, 56], sizes = [1, 8], strides = [1, 1]} : vector<1x72xf32> to vector<1x8xf32>
    %782 = arith.addf %780, %781 : vector<1x8xf32>
    %783 = vector.extract_strided_slice %765 {offsets = [0, 64], sizes = [1, 8], strides = [1, 1]} : vector<1x72xf32> to vector<1x8xf32>
    %784 = arith.addf %782, %783 : vector<1x8xf32>
    %c0_64 = arith.constant 0 : index
    %c0_65 = arith.constant 0 : index
    %c0_66 = arith.constant 0 : index
    %785 = vector.load %arg5[%c0_64, %c0_65, %c0_66] : memref<1x1x8xf32, #tpu.memory_space<vmem>>, vector<1x1x8xf32>
    %786 = vector.shape_cast %785 : vector<1x1x8xf32> to vector<1x8xf32>
    %787 = vector.shape_cast %784 : vector<1x8xf32> to vector<1x1x8xf32>
    tpu.vector_store %arg5[%c0_64, %c0_65, %c0_66], %787 {strides = array<i32>} : memref<1x1x8xf32, #tpu.memory_space<vmem>>, vector<1x1x8xf32>,
    return
  }
  func.func @transform_0(%arg0: i32) -> (i32, i32, i32) {
    %c0_i32 = arith.constant 0 : i32
    %c0_i32_0 = arith.constant 0 : i32
    %c0_i32_1 = arith.constant 0 : i32
    return %arg0, %c0_i32, %c0_i32_0 : i32, i32, i32
  }
  func.func @transform_1(%arg0: i32) -> (i32, i32, i32) {
    %c0_i32 = arith.constant 0 : i32
    %c0_i32_0 = arith.constant 0 : i32
    %c0_i32_1 = arith.constant 0 : i32
    return %arg0, %c0_i32, %c0_i32_0 : i32, i32, i32
  }
  func.func @transform_2(%arg0: i32) -> (i32, i32) {
    %c0_i32 = arith.constant 0 : i32
    %c0_i32_0 = arith.constant 0 : i32
    %c0_i32_1 = arith.constant 0 : i32
    return %c0_i32, %c0_i32_0 : i32, i32
  }
  func.func @transform_3(%arg0: i32) -> (i32, i32) {
    %c0_i32 = arith.constant 0 : i32
    %c0_i32_0 = arith.constant 0 : i32
    %c0_i32_1 = arith.constant 0 : i32
    return %c0_i32, %c0_i32_0 : i32, i32
  }
  func.func @transform_4(%arg0: i32) -> (i32, i32, i32) {
    %c0_i32 = arith.constant 0 : i32
    %c0_i32_0 = arith.constant 0 : i32
    %c0_i32_1 = arith.constant 0 : i32
    return %arg0, %c0_i32, %c0_i32_0 : i32, i32, i32
  }
}

</mosaic_0001>

<bundles_post_ra>
// kernel: tpu_custom_call.1
= control target key start
LH: loop header
LB: loop body
LE: loop exit
PB: predicated region body
PF: predicated region fallthrough
CT: control target
= control target key end

     0   :  { %9 = vsyncpa [#allocation3], 0  ;;  %s3571_s0 = inlined_call_operand.vmem [shape: f32[2,48,32], index: 0, kind: input, shape index: {}]   ;;  %s3572_s1 = inlined_call_operand.vmem [shape: f32[2,32,48], index: 1, kind: input, shape index: {}]   ;;  %s3573_s2 = inlined_call_operand.vmem [shape: f32[32,72], index: 2, kind: input, shape index: {}]   ;;  %s3574_s3 = inlined_call_operand.vmem [shape: f32[1,8], index: 3, kind: input, shape index: {}]   ;;  %s3575_s4 = inlined_call_operand.hbm [shape: f32[2,1,8], index: 4, kind: output, shape index: {}]  }
   0x1   :  { %11 = vsyncpa [#allocation3 + $0x1], 0  ;;  %s2278_s15 = smov 0   ;;  %s2280_s16 = smov 0  }
   0x2   :  { %s2282_s17 = smov 0   ;;  %s2284_s18 = smov 0  }
   0x3 LB: > { %s2299_s19 = sadd.s32 4294967295, %s2208_s18   ;;  %s1847_s20 = sadd.s32 4294967294, %s2208_s18   ;;  %s2208_s18 = sphi %s2284_s18, %s3822_s18   ;;  %s2204_s17 = sphi %s2282_s17, %s3821_s17   ;;  %s2200_s16 = sphi %s2280_s16, %s3820_s16   ;;  %s2196_s15 = sphi %s2278_s15, %s3819_s15  }
   0x4   : > { %s2303_s21 = sadd.s32 1, %s2208_s18   ;;  %s118_s22 = sadd.s32 1, %s2204_s17 }
   0x5   : > { %s115_s23 = ssub.s32 %s2208_s18, %s2303_s21  ;;  %p128_p0 = scmp.ne.s32.totalorder %s2204_s17, %s2200_s16 }
   0x6   : > { %p116_p1 = scmp.eq.s32.totalorder %s115_s23, 0  ;;  %p129_p2 = scmp.eq.s32.totalorder %s2299_s19, 1 }
   0x7   : > { %p134_p3 = scmp.ne.s32.totalorder %s2200_s16, %s2196_s15  ;;  %p135_p4 = scmp.eq.s32.totalorder %s1847_s20, 1 }
   0x8   : > { %s2314_s24 = scalar_select %p116_p1, %s2204_s17, %s118_s22  }
   0x9   : > { %p2316_p5 = por %p129_p2, %p128_p0  ;;  %p2320_p6 = por %p135_p4, %p134_p3 }
   0xa   : > { %p1850_p7 = scmp.ge.s32.totalorder %s2208_s18, 1  ;;  %p175_p8 = scmp.lt.s32.totalorder %s2208_s18, 3 }
   0xc   : > { %p176_p9 = pnand %p1850_p7, %p175_p8 }
   0xe   : > { %179 = sbr.rel (%p176_p9) target bundleno = 1402 (0x57a), region = 36 }
  0x15   : > { %p205_p10 = scmp.lt.s32.totalorder %s2299_s19, 1  ;;  %vm3576_vm0 = vcmask 261120   ;;  %v3648_v15 = vmov 4   ;;  %v2211_v16 = vmov 0   ;;  %vm244_vm1 = vcmask 392192   ;;  %s2246_s29 = smov 96  }
  0x16   : > { %2022 = vset.pattern.permute.xlu0 %v3648_v15  ;;  %2018 = vset.pattern.permute.xlu1 %v2211_v16  ;;  %v258_v30 = vlaneseq  ;;  %v2212_v36 = vmov 0.0   ;;  %v3629_v45 = vmov 17   ;;  %s2247_s30 = smov 104   ;;  %s2250_s7 = smov 64  }
  0x17   : > { %s2328_s27 = scalar_select %p205_p10, %s2299_s19, 1 }
  0x18   : > { %v2350_v32 = vand.u32 127, %v258_v30  ;;  %v2354_v35 = vshrl.u32 %v258_v30, 7  ;;  %v3591_v30 = vmov 19   ;;  %s2251_s8 = smov 72   ;;  %s203_s11 = sand.u32 1, %s2200_s16  }
  0x19   : > { %s1936_s28 = smul.u32 48, %s2328_s27  ;;  %s1875_s6 = sshll.u32 %s2328_s27, 5 }
  0x1a   : > { %s214_s9 = scalar_lea.vmem %s3572_s1, %s1875_s6  ;;  %vm315_vm2 = vcmp.ge.s32.totalorder %v2350_v32, 16  ;;  %vm319_vm3 = vcmp.ge.s32.totalorder %v2350_v32, 32  ;;  %3692 = vst [vmem:[#allocation5_spill] sm:$0xff] %v2354_v35  ;;  %v261_v41 = vadd.s32 16, %v2354_v35  ;;  %vm341_vm4 = vcmp.lt.s32.totalorder %v2354_v35, %v2350_v32  ;;  %s2244_s27 = smov 112  }
  0x1b   : > { %s209_s5 = scalar_lea.vmem %s3571_s0, %s1936_s28  ;;  %v221_v17 = vld [vmem:[%s214_s9] sm:$0xff]  ;;  %v222_v18 = vld [vmem:[%s214_s9 + $0x8] sm:$0xff]  ;;  %v223_v19 = vld [vmem:[%s214_s9 + $0x10] sm:$0xff]  ;;  %v1854_v37 = vsel %vm315_vm2, 1.0, %v2212_v36  ;;  %v1855_v38 = vsel %vm319_vm3, 1.0, %v2212_v36  ;;  %v2369_v44 = vadd.s32 8, %v2354_v35 }
  0x1c   : > { %v215_v0 = vld [vmem:[%s209_s5] sm:$0xff]  ;;  %v217_v1 = vld [vmem:[%s209_s5 + $0x10] sm:$0xff]  ;;  %v216_v4 = vld [vmem:[%s209_s5 + $0x8] sm:$0xff]  ;;  %v245_v21 = vsel %vm244_vm1, %v221_v17, -inf  ;;  %v246_v22 = vsel %vm244_vm1, %v222_v18, -inf  ;;  %v247_v23 = vsel %vm244_vm1, %v223_v19, -inf  ;;  %v2360_v40 = vadd.f32 %v1855_v38, %v1854_v37 }
  0x1d   : > { %v226_v2 = vsel %vm3576_vm0, %v215_v0, -inf  ;;  %v232_v3 = vsel %vm3576_vm0, %v217_v1, -inf  ;;  %v218_v5 = vld [vmem:[%s209_s5 + $0x18] sm:$0xff]  ;;  %v229_v6 = vsel %vm3576_vm0, %v216_v4, -inf  ;;  %v219_v8 = vld [vmem:[%s209_s5 + $0x20] sm:$0xff]  ;;  %v220_v9 = vld [vmem:[%s209_s5 + $0x28] sm:$0xff]  ;;  %v1916_v13 = vpack.c.bf16 %v216_v4, %v215_v0 }
  0x1e   : > { %227 = vmax.xlane.f32.xlu0 %v226_v2  ;;  %233 = vmax.xlane.f32.xlu1 %v232_v3  ;;  %v235_v7 = vsel %vm3576_vm0, %v218_v5, -inf  ;;  %v238_v10 = vsel %vm3576_vm0, %v219_v8, -inf  ;;  %v241_v11 = vsel %vm3576_vm0, %v220_v9, -inf  ;;  %v1920_v12 = vpack.c.bf16 %v218_v5, %v217_v1  ;;  %v224_v20 = vld [vmem:[%s214_s9 + $0x18] sm:$0xff]  ;;  %3693 = vst [vmem:[#allocation6_spill] sm:$0xff] %v2369_v44  ;;  %s2245_s28 = smov 120  }
  0x1f   : > { %1917 = vmatprep.subr.bf16.mxu0 %v1916_v13  ;;  %v1924_v14 = vpack.c.bf16 %v220_v9, %v219_v8  ;;  %v248_v24 = vsel %vm244_vm1, %v224_v20, -inf  ;;  %v249_v25 = vmax.f32 %v245_v21, %v246_v22  ;;  %vm1856_vm5 = vcmp.eq.f32.partialorder %v2360_v40, 0.0  ;;  %s2248_s5 = smov 80   ;;  %s2249_s6 = smov 88  }
  0x20   : > { %1919 = vmatpush3.bf16.msra.mxu0 %v1916_v13  ;;  %v250_v26 = vmax.f32 %v247_v23, %v248_v24  ;;  %vm343_vm9 = vcmp.lt.s32.totalorder %v261_v41, %v2350_v32  ;;  %vm1858_vm14 = vcmp.eq.f32.partialorder %v2360_v40, 1.0  ;;  %v262_v47 = vadd.s32 24, %v2354_v35  ;;  %s1872_s12 = sshll.u32 %s2299_s19, 4  ;;  %s204_s13 = scalar_lea.vmem [#allocation2], %s203_s11 }
  0x21   : > { %1921 = vmatprep.subr.bf16.mxu0 %v1920_v12  ;;  %vm342_vm2 = vcmp.lt.s32.totalorder %v2369_v44, %v2350_v32  ;;  %v263_v49 = vadd.s32 32, %v2354_v35  ;;  %v264_v52 = vadd.s32 40, %v2354_v35  ;;  %v394_v13 = vcvt.s32.f32 %v2354_v35  ;;  %s1780_s14 = sshll.u32 %s204_s13, 4  ;;  %s3529_s23 = scalar_lea.hbm %s3575_s4, %s1872_s12  ;;  %s3531_s14 = int_to_ptr.vmem [resolvable:$true] %s1780_s14 }
  0x22   : > { %230 = vmax.xlane.f32.xlu0 %v229_v6  ;;  %236 = vmax.xlane.f32.xlu1 %v235_v7  ;;  %v251_v27 = vmax.f32 %v249_v25, %v250_v26  ;;  %v3640_v22 = vmov 7   ;;  %v3633_v23 = vmov 1   ;;  %v3631_v24 = vmov 10   ;;  %s2252_s19 = smov [#allocation2]  }
  0x23   : > { %v3651_v25 = vmov 2   ;;  %v3601_v26 = vmov 13   ;;  %v3636_v37 = vmov 9   ;;  %v3638_v38 = vmov 11  }
  0x24   : > { %1923 = vmatpush3.bf16.msra.mxu0 %v1920_v12  ;;  %v252_v28 = vrot.slane %v251_v27, 4  ;;  %v3634_v41 = vmov 14  }
  0x25   : > { %1925 = vmatprep.subr.bf16.mxu0 %v1924_v14 }
  0x26   : > { %239 = vmax.xlane.f32.xlu0 %v238_v10  ;;  %242 = vmax.xlane.f32.xlu1 %v241_v11  ;;  %v253_v29 = vmax.f32 %v251_v27, %v252_v28  ;;  %v396_v11 = vmul.f32 3.0, %v2360_v40  ;;  %v3650_v27 = vmov 3   ;;  %v3597_v28 = vmov 16  }
  0x28   : > { %1927 = vmatpush3.bf16.msra.mxu0 %v1924_v14  ;;  %v254_v31 = vrot.slane %v253_v29, 2  ;;  %v395_v14 = vcvt.s32.f32 %v2369_v44  ;;  %v3731_v44 = vmov 11  }
  0x2a   : > { %v255_v33 = vmax.f32 %v253_v29, %v254_v31  ;;  %v3646_v29 = vmov 5   ;;  %v3644_v31 = vmov 6  }
  0x2c   : > { %v256_v34 = vrot.slane %v255_v33, 1 }
  0x2e   : > { %v2358_v39 = vmax.f32 %v255_v33, %v256_v34  ;;  %v3603_v33 = vmov 22   ;;  %v3642_v34 = vmov 8  }
  0xab   : > { %v228_v42 = vpop.xlane.xlu0 %227  ;;  %v234_v43 = vpop.xlane.xlu1 %233 }
  0xac   : > { %vm329_vm6 = vcmp.gt.f32.partialorder %v228_v42, %v2358_v39  ;;  %vm335_vm7 = vcmp.eq.f32.partialorder %v228_v42, %v2358_v39  ;;  %vm337_vm10 = vcmp.eq.f32.partialorder %v234_v43, %v2358_v39  ;;  %vm331_vm12 = vcmp.gt.f32.partialorder %v234_v43, %v2358_v39 }
  0xad   : > { %vm347_vm8 = vmand %vm335_vm7, %vm341_vm4  ;;  %v3627_v42 = vmov 31   ;;  %v3599_v43 = vmov 15  }
  0xae   : > { %vm353_vm11 = vmor %vm329_vm6, %vm347_vm8 }
  0xaf   : > { %vm2376_vm13 = vmand %vm353_vm11, %vm1856_vm5  ;;  %v231_v46 = vpop.xlane.xlu0 %230  ;;  %v237_v48 = vpop.xlane.xlu1 %236  ;;  %vm344_vm11 = vcmp.lt.s32.totalorder %v262_v47, %v2350_v32  ;;  %v3616_v47 = vmov 20  }
  0xb0   : > { %vm349_vm15 = vmand %vm337_vm10, %vm343_vm9  ;;  %vm336_vm3 = vcmp.eq.f32.partialorder %v231_v46, %v2358_v39  ;;  %vm330_vm6 = vcmp.gt.f32.partialorder %v231_v46, %v2358_v39  ;;  %vm338_vm0 = vcmp.eq.f32.partialorder %v237_v48, %v2358_v39  ;;  %v1862_v51 = vsel %vm2376_vm13, 1.0, %v2212_v36 }
  0xb1   : > { %vm355_vm4 = vmor %vm331_vm12, %vm349_vm15  ;;  %vm332_vm10 = vcmp.gt.f32.partialorder %v237_v48, %v2358_v39  ;;  %v377_v56 = vsel %vm244_vm1, %v1862_v51, 0.0  ;;  %v3595_v46 = vmov 18   ;;  %v3589_v48 = vmov 21  }
  0xb2   : > { %vm361_vm7 = vmand %vm355_vm4, %vm1858_vm14  ;;  %v3614_v51 = vmov 26  }
  0xb3   : > { %vm348_vm8 = vmand %vm336_vm3, %vm342_vm2  ;;  %v240_v50 = vpop.xlane.xlu0 %239  ;;  %v1864_v53 = vsel %vm361_vm7, 1.0, %v2212_v36  ;;  %vm345_vm2 = vcmp.lt.s32.totalorder %v263_v49, %v2350_v32  ;;  %v243_v55 = vpop.xlane.xlu1 %242  ;;  %vm346_vm7 = vcmp.lt.s32.totalorder %v264_v52, %v2350_v32  ;;  %v3605_v49 = vmov 23  }
  0xb4   : > { %vm354_vm9 = vmor %vm330_vm6, %vm348_vm8  ;;  %vm339_vm3 = vcmp.eq.f32.partialorder %v240_v50, %v2358_v39  ;;  %vm333_vm4 = vcmp.gt.f32.partialorder %v240_v50, %v2358_v39  ;;  %vm1860_vm6 = vcmp.eq.f32.partialorder %v2360_v40, 2.0  ;;  %v380_v59 = vsel %vm244_vm1, %v1864_v53, 0.0 }
  0xb5   : > { %vm360_vm12 = vmand %vm354_vm9, %vm1856_vm5  ;;  %vm340_vm8 = vcmp.eq.f32.partialorder %v243_v55, %v2358_v39  ;;  %vm334_vm9 = vcmp.gt.f32.partialorder %v243_v55, %v2358_v39  ;;  %v3618_v39 = vmov 12   ;;  %v3622_v40 = vmov 28  }
  0xb6   : > { %v1863_v54 = vsel %vm360_vm12, 1.0, %v2212_v36  ;;  %vm350_vm15 = vmand %vm338_vm0, %vm344_vm11  ;;  %v3587_v50 = vmov 24   ;;  %v3584_v52 = vmov 27   ;;  %v3582_v53 = vmov 30  }
  0xb7   : > { %v378_v57 = vsel %vm244_vm1, %v1863_v54, 0.0  ;;  %vm356_vm13 = vmor %vm332_vm10, %vm350_vm15  ;;  %v3624_v54 = vmov 29  }
  0xb8   : > { %v379_v58 = vadd.f32 %v378_v57, %v377_v56  ;;  %vm362_vm5 = vmand %vm356_vm13, %vm1858_vm14 }
  0xb9   : > { %v1865_v60 = vsel %vm362_vm5, 1.0, %v2212_v36  ;;  %vm351_vm0 = vmand %vm339_vm3, %vm345_vm2 }
  0xba   : > { %v381_v61 = vadd.f32 %v380_v59, %v379_v58  ;;  %v382_v62 = vsel %vm244_vm1, %v1865_v60, 0.0  ;;  %vm357_vm11 = vmor %vm333_vm4, %vm351_vm0 }
  0xbb   : > { %vm363_vm14 = vmand %vm357_vm11, %vm1860_vm6  ;;  %vm3594_vm11 = vcmp.gt.s32.totalorder %v2350_v32, 7 }
  0xbc   : > { %v383_v63 = vadd.f32 %v382_v62, %v381_v61  ;;  %v1866_v0 = vsel %vm363_vm14, 1.0, %v2212_v36  ;;  %vm352_vm10 = vmand %vm340_vm8, %vm346_vm7 }
  0xbd   : > { %v384_v1 = vsel %vm244_vm1, %v1866_v0, 0.0  ;;  %vm358_vm12 = vmor %vm334_vm9, %vm352_vm10 }
  0xbe   : > { %v385_v2 = vadd.f32 %v384_v1, %v383_v63  ;;  %vm364_vm15 = vmand %vm358_vm12, %vm1860_vm6  ;;  %vm525_vm12 = vcmp.gt.s32.totalorder %v2350_v32, 1 }
  0xbf   : > { %v1867_v3 = vsel %vm364_vm15, 1.0, %v2212_v36 }
  0xc0   : > { %v386_v4 = vsel %vm244_vm1, %v1867_v3, 0.0 }
  0xc1   : > { %v387_v5 = vadd.f32 %v386_v4, %v385_v2 }
  0xc3   : > { %v388_v6 = vrot.slane %v387_v5, 4 }
  0xc5   : > { %v389_v7 = vadd.f32 %v388_v6, %v387_v5 }
  0xc7   : > { %v390_v8 = vrot.slane %v389_v7, 2 }
  0xc9   : > { %v391_v9 = vadd.f32 %v390_v8, %v389_v7 }
  0xcb   : > { %v392_v10 = vrot.slane %v391_v9, 1 }
  0xcd   : > { %v393_v12 = vadd.f32 %v392_v10, %v391_v9 }
  0xcf   : > { %v397_v17 = vadd.f32 %v396_v11, %v393_v12  ;;  %vm400_vm13 = vcmp.lt.f32.partialorder %v393_v12, 3.0 }
  0xd1   : > { %vm398_vm2 = vcmp.eq.f32.partialorder %v394_v13, %v397_v17  ;;  %vm399_vm3 = vcmp.eq.f32.partialorder %v395_v14, %v397_v17 }
  0xd2   : > { %vm403_vm4 = vmand %vm398_vm2, %vm400_vm13 }
  0xd3   : > { %vm404_vm5 = vmand %vm399_vm3, %vm400_vm13  ;;  %v405_v18 = vsel %vm403_vm4, 1.0, %v2212_v36  ;;  %vm3581_vm13 = vcmp.gt.s32.totalorder %v2350_v32, 10 }
  0xd4   : > { %1902 = vmatprep.mubr.msk.f32.mxu0 %vm244_vm1, %v405_v18  ;;  %v406_v19 = vsel %vm404_vm5, 1.0, %v2212_v36  ;;  %v3612_v36 = vmov 25  }
  0xd5   : > { %1903 = vmatmul.mubr.msk.f32.vlgmr.msra.gmra.mrb[0].mxu0 %vm244_vm1, %v406_v19  ;;  %vm3611_vm1 = vcmp.gt.s32.totalorder %v2350_v32, 4 }
 0x1a8   : > { %v2429_v20 = vpop.f32.mrb[0].mxu0 }
 0x1a9   : > { %585 = vperm.xlu0 %2022, %v2429_v20   ;;  %495 = vperm.xlu1 %2018, %v2429_v20   ;;  %v2433_v21 = vpop.f32.mrb[1].mxu0 }
 0x1ad   : > { %2025 = vset.pattern.permute.xlu0 %v3640_v22  ;;  %2019 = vset.pattern.permute.xlu1 %v3633_v23 }
 0x1ae   : > { %654 = vperm.xlu0 %2025, %v2429_v20   ;;  %516 = vperm.xlu1 %2019, %v2429_v20  }
 0x1b2   : > { %2028 = vset.pattern.permute.xlu0 %v3631_v24  ;;  %2020 = vset.pattern.permute.xlu1 %v3651_v25 }
 0x1b3   : > { %723 = vperm.xlu0 %2028, %v2429_v20   ;;  %539 = vperm.xlu1 %2020, %v2429_v20  }
 0x1b7   : > { %2031 = vset.pattern.permute.xlu0 %v3601_v26  ;;  %2021 = vset.pattern.permute.xlu1 %v3650_v27 }
 0x1b8   : > { %792 = vperm.xlu0 %2031, %v2429_v20   ;;  %562 = vperm.xlu1 %2021, %v2429_v20  }
 0x1bc   : > { %2034 = vset.pattern.permute.xlu0 %v3597_v28  ;;  %2023 = vset.pattern.permute.xlu1 %v3646_v29 }
 0x1bd   : > { %861 = vperm.xlu0 %2034, %v2429_v20   ;;  %608 = vperm.xlu1 %2023, %v2429_v20  }
 0x1c1   : > { %2037 = vset.pattern.permute.xlu0 %v3591_v30  ;;  %2024 = vset.pattern.permute.xlu1 %v3644_v31 }
 0x1c2   : > { %930 = vperm.xlu0 %2037, %v2429_v20   ;;  %631 = vperm.xlu1 %2024, %v2429_v20  }
 0x1c6   : > { %2040 = vset.pattern.permute.xlu0 %v3603_v33  ;;  %2026 = vset.pattern.permute.xlu1 %v3642_v34 }
 0x1c7   : > { %999 = vperm.xlu0 %2040, %v2429_v20   ;;  %677 = vperm.xlu1 %2026, %v2429_v20  }
 0x1cb   : > { %2043 = vset.pattern.permute.xlu0 %v3612_v36  ;;  %2027 = vset.pattern.permute.xlu1 %v3636_v37 }
 0x1cc   : > { %1068 = vperm.xlu0 %2043, %v2429_v20   ;;  %700 = vperm.xlu1 %2027, %v2429_v20  }
 0x1d0   : > { %2046 = vset.pattern.permute.xlu0 %v2211_v16  ;;  %2029 = vset.pattern.permute.xlu1 %v3638_v38 }
 0x1d1   : > { %746 = vperm.xlu1 %2029, %v2429_v20   ;;  %490 = vperm.xlu0 %2046, %v2433_v21  }
 0x1d5   : > { %2030 = vset.pattern.permute.xlu1 %v3618_v39  ;;  %2047 = vset.pattern.permute.xlu0 %v3622_v40 }
 0x1d6   : > { %769 = vperm.xlu1 %2030, %v2429_v20   ;;  %1137 = vperm.xlu0 %2047, %v2429_v20  }
 0x1da   : > { %2032 = vset.pattern.permute.xlu1 %v3634_v41  ;;  %2050 = vset.pattern.permute.xlu0 %v3627_v42 }
 0x1db   : > { %815 = vperm.xlu1 %2032, %v2429_v20   ;;  %1206 = vperm.xlu0 %2050, %v2429_v20  }
 0x1df   : > { %2033 = vset.pattern.permute.xlu1 %v3599_v43  ;;  %2056 = vset.pattern.permute.xlu0 %v3644_v31 }
 0x1e0   : > { %838 = vperm.xlu1 %2033, %v2429_v20   ;;  %627 = vperm.xlu0 %2056, %v2433_v21  }
 0x1e4   : > { %2035 = vset.pattern.permute.xlu1 %v3629_v45  ;;  %2059 = vset.pattern.permute.xlu0 %v3636_v37 }
 0x1e5   : > { %884 = vperm.xlu1 %2035, %v2429_v20   ;;  %696 = vperm.xlu0 %2059, %v2433_v21  }
 0x1e9   : > { %2036 = vset.pattern.permute.xlu1 %v3595_v46  ;;  %2062 = vset.pattern.permute.xlu0 %v3618_v39 }
 0x1ea   : > { %907 = vperm.xlu1 %2036, %v2429_v20   ;;  %765 = vperm.xlu0 %2062, %v2433_v21  }
 0x1ee   : > { %2038 = vset.pattern.permute.xlu1 %v3616_v47  ;;  %2065 = vset.pattern.permute.xlu0 %v3599_v43 }
 0x1ef   : > { %953 = vperm.xlu1 %2038, %v2429_v20   ;;  %834 = vperm.xlu0 %2065, %v2433_v21  }
 0x1f3   : > { %2039 = vset.pattern.permute.xlu1 %v3589_v48  ;;  %2068 = vset.pattern.permute.xlu0 %v3595_v46 }
 0x1f4   : > { %976 = vperm.xlu1 %2039, %v2429_v20   ;;  %903 = vperm.xlu0 %2068, %v2433_v21  }
 0x1f8   : > { %2041 = vset.pattern.permute.xlu1 %v3605_v49  ;;  %2071 = vset.pattern.permute.xlu0 %v3589_v48 }
 0x1f9   : > { %1022 = vperm.xlu1 %2041, %v2429_v20   ;;  %972 = vperm.xlu0 %2071, %v2433_v21  }
 0x1fd   : > { %2042 = vset.pattern.permute.xlu1 %v3587_v50  ;;  %2074 = vset.pattern.permute.xlu0 %v3587_v50 }
 0x1fe   : > { %1045 = vperm.xlu1 %2042, %v2429_v20   ;;  %1041 = vperm.xlu0 %2074, %v2433_v21  }
 0x202   : > { %2044 = vset.pattern.permute.xlu1 %v3614_v51  ;;  %2077 = vset.pattern.permute.xlu0 %v3584_v52 }
 0x203   : > { %1091 = vperm.xlu1 %2044, %v2429_v20   ;;  %1110 = vperm.xlu0 %2077, %v2433_v21  }
 0x207   : > { %2045 = vset.pattern.permute.xlu1 %v3584_v52  ;;  %2080 = vset.pattern.permute.xlu0 %v3582_v53 }
 0x208   : > { %1114 = vperm.xlu1 %2045, %v2429_v20   ;;  %1179 = vperm.xlu0 %2080, %v2433_v21  }
 0x20c   : > { %2048 = vset.pattern.permute.xlu1 %v3624_v54  ;;  %2082 = vset.pattern.permute.xlu0 %v2211_v16 }
 0x20d   : > { %1160 = vperm.xlu1 %2048, %v2429_v20  }
 0x211   : > { %2049 = vset.pattern.permute.xlu1 %v3582_v53 }
 0x212   : > { %1183 = vperm.xlu1 %2049, %v2429_v20  }
 0x216   : > { %2051 = vset.pattern.permute.xlu1 %v3633_v23 }
 0x217   : > { %512 = vperm.xlu1 %2051, %v2433_v21  }
 0x21b   : > { %2052 = vset.pattern.permute.xlu1 %v3651_v25 }
 0x21c   : > { %535 = vperm.xlu1 %2052, %v2433_v21  }
 0x220   : > { %2053 = vset.pattern.permute.xlu1 %v3650_v27 }
 0x221   : > { %558 = vperm.xlu1 %2053, %v2433_v21  }
 0x225   : > { %2054 = vset.pattern.permute.xlu1 %v3648_v15 }
 0x226   : > { %581 = vperm.xlu1 %2054, %v2433_v21  }
 0x228   : > { %v2525_v55 = vpop.permute.xlu0 %585  ;;  %v2527_v56 = vpop.permute.xlu1 %495 }
 0x229   : > { %vm589_vm6 = vcmp.lt.f32.partialorder %v2525_v55, %v2429_v20  ;;  %vm593_vm0 = vcmp.eq.f32.partialorder %v2525_v55, %v2429_v20  ;;  %vm499_vm8 = vcmp.lt.f32.partialorder %v2527_v56, %v2429_v20 }
 0x22a   : > { %v591_v57 = vsel %vm589_vm6, 1, %v2211_v16  ;;  %vm596_vm7 = vmand %vm593_vm0, %vm3611_vm1  ;;  %2055 = vset.pattern.permute.xlu1 %v3646_v29  ;;  %v501_v60 = vsel %vm499_vm8, 1, %v2211_v16  ;;  %vm548_vm0 = vcmp.gt.s32.totalorder %v2350_v32, 2 }
 0x22b   : > { %v598_v58 = vsel %vm596_vm7, 1, %v2211_v16  ;;  %604 = vperm.xlu1 %2055, %v2433_v21  }
 0x22c   : > { %v510_v59 = vadd.s32 %v598_v58, %v591_v57 }
 0x22d   : > { %v2543_v61 = vpop.permute.xlu0 %654  ;;  %v2545_v62 = vpop.permute.xlu1 %516 }
 0x22e   : > { %v531_v63 = vadd.s32 %v510_v59, %v501_v60  ;;  %vm658_vm9 = vcmp.lt.f32.partialorder %v2543_v61, %v2429_v20  ;;  %vm662_vm14 = vcmp.eq.f32.partialorder %v2543_v61, %v2429_v20  ;;  %vm524_vm15 = vcmp.eq.f32.partialorder %v2545_v62, %v2429_v20 }
 0x22f   : > { %v660_v0 = vsel %vm658_vm9, 1, %v2211_v16  ;;  %vm665_vm10 = vmand %vm662_vm14, %vm3594_vm11  ;;  %2057 = vset.pattern.permute.xlu1 %v3640_v22  ;;  %vm520_vm2 = vcmp.lt.f32.partialorder %v2545_v62, %v2429_v20  ;;  %vm3580_vm14 = vcmp.gt.s32.totalorder %v2350_v32, 13 }
 0x230   : > { %v533_v1 = vadd.s32 %v660_v0, %v531_v63  ;;  %v667_v2 = vsel %vm665_vm10, 1, %v2211_v16  ;;  %650 = vperm.xlu1 %2057, %v2433_v21   ;;  %vm527_vm3 = vmand %vm524_vm15, %vm525_vm12  ;;  %v522_v6 = vsel %vm520_vm2, 1, %v2211_v16 }
 0x231   : > { %v529_v8 = vsel %vm527_vm3, 1, %v2211_v16  ;;  %vm3621_vm3 = vcmp.gt.s32.totalorder %v2350_v32, 3 }
 0x232   : > { %v554_v3 = vadd.s32 %v667_v2, %v533_v1  ;;  %v2564_v4 = vpop.permute.xlu0 %723  ;;  %v2566_v5 = vpop.permute.xlu1 %539 }
 0x233   : > { %vm731_vm4 = vcmp.eq.f32.partialorder %v2564_v4, %v2429_v20  ;;  %vm727_vm5 = vcmp.lt.f32.partialorder %v2564_v4, %v2429_v20  ;;  %vm547_vm7 = vcmp.eq.f32.partialorder %v2566_v5, %v2429_v20  ;;  %vm543_vm8 = vcmp.lt.f32.partialorder %v2566_v5, %v2429_v20 }
 0x234   : > { %v556_v7 = vadd.s32 %v554_v3, %v522_v6  ;;  %2058 = vset.pattern.permute.xlu1 %v3642_v34  ;;  %vm734_vm6 = vmand %vm731_vm4, %vm3581_vm13  ;;  %v729_v10 = vsel %vm727_vm5, 1, %v2211_v16  ;;  %v545_v18 = vsel %vm543_vm8, 1, %v2211_v16 }
 0x235   : > { %673 = vperm.xlu1 %2058, %v2433_v21   ;;  %v736_v14 = vsel %vm734_vm6, 1, %v2211_v16  ;;  %vm550_vm9 = vmand %vm547_vm7, %vm548_vm0  ;;  %vm3579_vm7 = vcmp.gt.s32.totalorder %v2350_v32, 16 }
 0x236   : > { %v577_v9 = vadd.s32 %v556_v7, %v529_v8  ;;  %v552_v59 = vsel %vm550_vm9, 1, %v2211_v16 }
 0x237   : > { %v2583_v11 = vpop.permute.xlu0 %792  ;;  %v2585_v12 = vpop.permute.xlu1 %562 }
 0x238   : > { %v579_v13 = vadd.s32 %v729_v10, %v577_v9  ;;  %vm800_vm10 = vcmp.eq.f32.partialorder %v2583_v11, %v2429_v20  ;;  %vm796_vm15 = vcmp.lt.f32.partialorder %v2583_v11, %v2429_v20  ;;  %vm570_vm4 = vcmp.eq.f32.partialorder %v2585_v12, %v2429_v20 }
 0x239   : > { %2060 = vset.pattern.permute.xlu1 %v3631_v24  ;;  %vm803_vm2 = vmand %vm800_vm10, %vm3580_vm14  ;;  %v798_v63 = vsel %vm796_vm15, 1, %v2211_v16  ;;  %vm566_vm5 = vcmp.lt.f32.partialorder %v2585_v12, %v2429_v20  ;;  %vm3610_vm15 = vcmp.gt.s32.totalorder %v2350_v32, 5 }
 0x23a   : > { %v600_v17 = vadd.s32 %v736_v14, %v579_v13  ;;  %719 = vperm.xlu1 %2060, %v2433_v21   ;;  %v805_v1 = vsel %vm803_vm2, 1, %v2211_v16  ;;  %vm573_vm6 = vmand %vm570_vm4, %vm3621_vm3  ;;  %v568_v7 = vsel %vm566_vm5, 1, %v2211_v16 }
 0x23b   : > { %v575_v9 = vsel %vm573_vm6, 1, %v2211_v16  ;;  %vm3577_vm6 = vcmp.gt.s32.totalorder %v2350_v32, 19 }
 0x23c   : > { %v602_v19 = vadd.s32 %v600_v17, %v545_v18  ;;  %v2600_v57 = vpop.permute.xlu0 %861  ;;  %v2602_v58 = vpop.permute.xlu1 %608 }
 0x23d   : > { %vm869_vm8 = vcmp.eq.f32.partialorder %v2600_v57, %v2429_v20  ;;  %vm865_vm9 = vcmp.lt.f32.partialorder %v2600_v57, %v2429_v20  ;;  %vm616_vm2 = vcmp.eq.f32.partialorder %v2602_v58, %v2429_v20  ;;  %vm612_vm4 = vcmp.lt.f32.partialorder %v2602_v58, %v2429_v20 }
 0x23e   : > { %v623_v60 = vadd.s32 %v602_v19, %v552_v59  ;;  %2061 = vset.pattern.permute.xlu1 %v3638_v38  ;;  %vm872_vm10 = vmand %vm869_vm8, %vm3579_vm7  ;;  %v867_v17 = vsel %vm865_vm9, 1, %v2211_v16 }
 0x23f   : > { %742 = vperm.xlu1 %2061, %v2433_v21   ;;  %v874_v19 = vsel %vm872_vm10, 1, %v2211_v16  ;;  %vm619_vm5 = vmand %vm616_vm2, %vm3610_vm15 }
 0x240   : > { %v625_v0 = vadd.s32 %v798_v63, %v623_v60  ;;  %v614_v60 = vsel %vm612_vm4, 1, %v2211_v16  ;;  %vm3578_vm4 = vcmp.gt.s32.totalorder %v2350_v32, 22 }
 0x241   : > { %v2616_v2 = vpop.permute.xlu0 %930  ;;  %v2618_v3 = vpop.permute.xlu1 %631 }
 0x242   : > { %v646_v6 = vadd.s32 %v805_v1, %v625_v0  ;;  %vm938_vm8 = vcmp.eq.f32.partialorder %v2616_v2, %v2429_v20  ;;  %vm934_vm9 = vcmp.lt.f32.partialorder %v2616_v2, %v2429_v20  ;;  %vm635_vm2 = vcmp.lt.f32.partialorder %v2618_v3, %v2429_v20 }
 0x243   : > { %2063 = vset.pattern.permute.xlu1 %v3601_v26  ;;  %vm941_vm10 = vmand %vm938_vm8, %vm3577_vm6  ;;  %vm639_vm15 = vcmp.eq.f32.partialorder %v2618_v3, %v2429_v20 }
 0x244   : > { %v648_v8 = vadd.s32 %v646_v6, %v568_v7  ;;  %788 = vperm.xlu1 %2063, %v2433_v21   ;;  %v621_v6 = vsel %vm619_vm5, 1, %v2211_v16 }
 0x246   : > { %v669_v10 = vadd.s32 %v648_v8, %v575_v9  ;;  %v2633_v13 = vpop.permute.xlu0 %999  ;;  %v2635_v14 = vpop.permute.xlu1 %677  ;;  %v936_v8 = vsel %vm934_vm9, 1, %v2211_v16 }
 0x247   : > { %vm1007_vm5 = vcmp.eq.f32.partialorder %v2633_v13, %v2429_v20  ;;  %vm1003_vm8 = vcmp.lt.f32.partialorder %v2633_v13, %v2429_v20  ;;  %vm685_vm6 = vcmp.eq.f32.partialorder %v2635_v14, %v2429_v20 }
 0x248   : > { %v671_v18 = vadd.s32 %v867_v17, %v669_v10  ;;  %2064 = vset.pattern.permute.xlu1 %v3634_v41  ;;  %vm1010_vm9 = vmand %vm1007_vm5, %vm3578_vm4  ;;  %vm3593_vm4 = vcmp.gt.s32.totalorder %v2350_v32, 25 }
 0x249   : > { %811 = vperm.xlu1 %2064, %v2433_v21  }
 0x24a   : > { %v692_v59 = vadd.s32 %v874_v19, %v671_v18  ;;  %v943_v18 = vsel %vm941_vm10, 1, %v2211_v16  ;;  %vm3586_vm10 = vcmp.gt.s32.totalorder %v2350_v32, 8 }
 0x24b   : > { %v2652_v63 = vpop.permute.xlu0 %1068  ;;  %v2654_v0 = vpop.permute.xlu1 %700 }
 0x24c   : > { %v694_v1 = vadd.s32 %v692_v59, %v614_v60  ;;  %v637_v59 = vsel %vm635_vm2, 1, %v2211_v16  ;;  %vm681_vm2 = vcmp.lt.f32.partialorder %v2635_v14, %v2429_v20  ;;  %vm1076_vm7 = vcmp.eq.f32.partialorder %v2652_v63, %v2429_v20 }
 0x24d   : > { %2066 = vset.pattern.permute.xlu1 %v3597_v28  ;;  %vm1072_vm14 = vcmp.lt.f32.partialorder %v2652_v63, %v2429_v20 }
 0x24e   : > { %v715_v7 = vadd.s32 %v694_v1, %v621_v6  ;;  %857 = vperm.xlu1 %2066, %v2433_v21   ;;  %v1005_v1 = vsel %vm1003_vm8, 1, %v2211_v16  ;;  %vm688_vm8 = vmand %vm685_vm6, %vm3586_vm10 }
 0x250   : > { %v717_v9 = vadd.s32 %v936_v8, %v715_v7  ;;  %v2666_v10 = vpop.permute.xlu1 %746  ;;  %v2668_v17 = vpop.permute.xlu0 %490 }
 0x251   : > { %3696 = vst [vmem:[#allocation7_spill] sm:$0xff] %v2668_v17  ;;  %vm502_vm5 = vcmp.eq.f32.partialorder %v2668_v17, %v2433_v21  ;;  %vm498_vm13 = vcmp.lt.f32.partialorder %v2668_v17, %v2433_v21  ;;  %vm754_vm10 = vcmp.eq.f32.partialorder %v2666_v10, %v2429_v20  ;;  %v3765_v17 = vmov 22  }
 0x252   : > { %v738_v19 = vadd.s32 %v943_v18, %v717_v9  ;;  %2067 = vset.pattern.permute.xlu1 %v3629_v45  ;;  %v1012_v9 = vsel %vm1010_vm9, 1, %v2211_v16  ;;  %vm504_vm9 = vcmp.gt.s32.totalorder %v2350_v32, 0 }
 0x253   : > { %880 = vperm.xlu1 %2067, %v2433_v21   ;;  %vm505_vm6 = vmand %vm502_vm5, %vm504_vm9  ;;  %vm704_vm5 = vcmp.lt.f32.partialorder %v2654_v0, %v2429_v20 }
 0x254   : > { %v740_v60 = vadd.s32 %v738_v19, %v637_v59  ;;  %v683_v19 = vsel %vm681_vm2, 1, %v2211_v16  ;;  %vm1079_vm2 = vmand %vm1076_vm7, %vm3593_vm4  ;;  %v507_v53 = vsel %vm505_vm6, 1, %v2211_v16  ;;  %vm503_vm6 = vcmp.eq.f32.partialorder %v2527_v56, %v2429_v20 }
 0x255   : > { %v2685_v6 = vpop.permute.xlu1 %769  ;;  %v2687_v7 = vpop.permute.xlu0 %1137 }
 0x256   : > { %3697 = vst [vmem:[#allocation8_spill] sm:$0xff] %v2687_v7  ;;  %v761_v8 = vadd.s32 %v1005_v1, %v740_v60 }
 0x257   : > { %2069 = vset.pattern.permute.xlu1 %v3591_v30 }
 0x258   : > { %v763_v18 = vadd.s32 %v1012_v9, %v761_v8  ;;  %926 = vperm.xlu1 %2069, %v2433_v21   ;;  %v690_v8 = vsel %vm688_vm8, 1, %v2211_v16  ;;  %vm3607_vm8 = vcmp.gt.s32.totalorder %v2350_v32, 11 }
 0x25a   : > { %v784_v59 = vadd.s32 %v763_v18, %v683_v19  ;;  %v2709_v60 = vpop.permute.xlu1 %815  ;;  %v2711_v1 = vpop.permute.xlu0 %1206  ;;  %v1074_v18 = vsel %vm1072_vm14, 1, %v2211_v16  ;;  %v500_v19 = vsel %vm498_vm13, 1, %v2211_v16  ;;  %vm640_vm14 = vcmp.gt.s32.totalorder %v2350_v32, 6 }
 0x25b   : > { %3698 = vst [vmem:[#allocation9_spill] sm:$0xff] %v2711_v1  ;;  %vm750_vm13 = vcmp.lt.f32.partialorder %v2666_v10, %v2429_v20 }
 0x25c   : > { %v786_v9 = vadd.s32 %v784_v59, %v690_v8  ;;  %2070 = vset.pattern.permute.xlu1 %v3616_v47  ;;  %v1081_v59 = vsel %vm1079_vm2, 1, %v2211_v16  ;;  %vm757_vm2 = vmand %vm754_vm10, %vm3607_vm8 }
 0x25d   : > { %949 = vperm.xlu1 %2070, %v2433_v21   ;;  %vm506_vm10 = vmand %vm503_vm6, %vm504_vm9  ;;  %vm3608_vm9 = vcmp.gt.s32.totalorder %v2350_v32, 28 }
 0x25e   : > { %v807_v52 = vadd.s32 %v1074_v18, %v786_v9  ;;  %v509_v9 = vadd.s32 %v507_v53, %v500_v19  ;;  %v706_v18 = vsel %vm704_vm5, 1, %v2211_v16  ;;  %v752_v19 = vsel %vm750_vm13, 1, %v2211_v16 }
 0x25f   : > { %v2727_v8 = vpop.permute.xlu1 %838  ;;  %v2730_v50 = vpop.permute.xlu0 %627  ;;  %vm709_vm13 = vcmp.gt.s32.totalorder %v2350_v32, 9 }
 0x260   : > { %3699 = vst [vmem:[#allocation10_spill] sm:$0xff] %v2730_v50  ;;  %v809_v48 = vadd.s32 %v1081_v59, %v807_v52  ;;  %vm634_vm7 = vcmp.lt.f32.partialorder %v2730_v50, %v2433_v21  ;;  %vm638_vm4 = vcmp.eq.f32.partialorder %v2730_v50, %v2433_v21 }
 0x261   : > { %v636_v30 = vsel %vm634_vm7, 1, %v2211_v16  ;;  %2072 = vset.pattern.permute.xlu1 %v3603_v33  ;;  %vm641_vm11 = vmand %vm638_vm4, %vm640_vm14  ;;  %vm1145_vm7 = vcmp.eq.f32.partialorder %v2687_v7, %v2429_v20 }
 0x262   : > { %v830_v52 = vadd.s32 %v809_v48, %v706_v18  ;;  %v530_v53 = vadd.s32 %v636_v30, %v509_v9  ;;  %995 = vperm.xlu1 %2072, %v2433_v21   ;;  %v643_v59 = vsel %vm641_vm11, 1, %v2211_v16  ;;  %v759_v30 = vsel %vm757_vm2, 1, %v2211_v16 }
 0x263   : > { %vm773_vm11 = vcmp.lt.f32.partialorder %v2685_v6, %v2429_v20  ;;  %v508_v18 = vsel %vm506_vm10, 1, %v2211_v16  ;;  %vm1141_vm2 = vcmp.lt.f32.partialorder %v2687_v7, %v2429_v20  ;;  %vm1148_vm10 = vmand %vm1145_vm7, %vm3608_vm9  ;;  %vm819_vm7 = vcmp.lt.f32.partialorder %v2709_v60, %v2429_v20 }
 0x264   : > { %v832_v46 = vadd.s32 %v830_v52, %v752_v19  ;;  %v532_v28 = vadd.s32 %v643_v59, %v530_v53  ;;  %v2752_v43 = vpop.permute.xlu1 %884  ;;  %v2754_v26 = vpop.permute.xlu0 %696  ;;  %v775_v19 = vsel %vm773_vm11, 1, %v2211_v16  ;;  %vm823_vm11 = vcmp.eq.f32.partialorder %v2709_v60, %v2429_v20 }
 0x265   : > { %3700 = vst [vmem:[#allocation11_spill] sm:$0xff] %v2754_v26  ;;  %vm703_vm4 = vcmp.lt.f32.partialorder %v2754_v26, %v2433_v21  ;;  %vm707_vm5 = vcmp.eq.f32.partialorder %v2754_v26, %v2433_v21  ;;  %v3774_v7 = vmov 28  }
 0x266   : > { %v853_v48 = vadd.s32 %v832_v46, %v759_v30  ;;  %v705_v9 = vsel %vm703_vm4, 1, %v2211_v16  ;;  %2073 = vset.pattern.permute.xlu1 %v3605_v49  ;;  %vm710_vm6 = vmand %vm707_vm5, %vm709_vm13  ;;  %vm3609_vm4 = vcmp.gt.s32.totalorder %v2350_v32, 14  ;;  %vm778_vm5 = vcmp.gt.s32.totalorder %v2350_v32, 12 }
 0x267   : > { %v553_v52 = vadd.s32 %v705_v9, %v532_v28  ;;  %1018 = vperm.xlu1 %2073, %v2433_v21   ;;  %v712_v53 = vsel %vm710_vm6, 1, %v2211_v16  ;;  %v1143_v28 = vsel %vm1141_vm2, 1, %v2211_v16  ;;  %vm3620_vm2 = vcmp.gt.s32.totalorder %v2350_v32, 31 }
 0x268   : > { %v855_v46 = vadd.s32 %v853_v48, %v508_v18 }
 0x269   : > { %v555_v59 = vadd.s32 %v712_v53, %v553_v52  ;;  %v2777_v30 = vpop.permute.xlu1 %907  ;;  %v2779_v33 = vpop.permute.xlu0 %765  ;;  %v1150_v52 = vsel %vm1148_vm10, 1, %v2211_v16 }
 0x26a   : > { %3701 = vst [vmem:[#allocation12_spill] sm:$0xff] %v2779_v33  ;;  %v876_v49 = vadd.s32 %v855_v46, %v775_v19  ;;  %vm772_vm8 = vcmp.lt.f32.partialorder %v2779_v33, %v2433_v21  ;;  %vm776_vm6 = vcmp.eq.f32.partialorder %v2779_v33, %v2433_v21 }
 0x26b   : > { %v774_v48 = vsel %vm772_vm8, 1, %v2211_v16  ;;  %2075 = vset.pattern.permute.xlu1 %v3612_v36  ;;  %vm779_vm9 = vmand %vm776_vm6, %vm778_vm5  ;;  %vm1214_vm6 = vcmp.eq.f32.partialorder %v2711_v1, %v2429_v20 }
 0x26c   : > { %v878_v9 = vadd.s32 %v1143_v28, %v876_v49  ;;  %v576_v18 = vadd.s32 %v774_v48, %v555_v59  ;;  %1064 = vperm.xlu1 %2075, %v2433_v21   ;;  %v781_v46 = vsel %vm779_vm9, 1, %v2211_v16  ;;  %vm826_vm8 = vmand %vm823_vm11, %vm3609_vm4  ;;  %v821_v59 = vsel %vm819_vm7, 1, %v2211_v16 }
 0x26d   : > { %vm1210_vm11 = vcmp.lt.f32.partialorder %v2711_v1, %v2429_v20  ;;  %vm847_vm4 = vcmp.gt.s32.totalorder %v2350_v32, 15  ;;  %vm1217_vm1 = vmand %vm1214_vm6, %vm3620_vm2  ;;  %vm985_vm2 = vcmp.gt.s32.totalorder %v2350_v32, 21 }
 0x26e   : > { %v899_v53 = vadd.s32 %v1150_v52, %v878_v9  ;;  %v578_v49 = vadd.s32 %v781_v46, %v576_v18  ;;  %v2804_v19 = vpop.permute.xlu1 %953  ;;  %v2806_v28 = vpop.permute.xlu0 %834  ;;  %v828_v18 = vsel %vm826_vm8, 1, %v2211_v16  ;;  %vm842_vm8 = vcmp.lt.f32.partialorder %v2727_v8, %v2429_v20  ;;  %vm2841_vm6 = vmand %vm639_vm15, %vm640_vm14 }
 0x26f   : > { %3702 = vst [vmem:[#allocation13_spill] sm:$0xff] %v2806_v28  ;;  %vm841_vm10 = vcmp.lt.f32.partialorder %v2806_v28, %v2433_v21  ;;  %vm845_vm9 = vcmp.eq.f32.partialorder %v2806_v28, %v2433_v21  ;;  %vm3626_vm15 = vcmp.gt.s32.totalorder %v2350_v32, 17  ;;  %vm892_vm14 = vcmp.eq.f32.partialorder %v2752_v43, %v2429_v20 }
 0x270   : > { %v901_v48 = vadd.s32 %v899_v53, %v821_v59  ;;  %v843_v9 = vsel %vm841_vm10, 1, %v2211_v16  ;;  %2076 = vset.pattern.permute.xlu1 %v3614_v51  ;;  %vm848_vm7 = vmand %vm845_vm9, %vm847_vm4  ;;  %v1212_v59 = vsel %vm1210_vm11, 1, %v2211_v16  ;;  %vm916_vm9 = vcmp.gt.s32.totalorder %v2350_v32, 18 }
 0x271   : > { %v599_v52 = vadd.s32 %v843_v9, %v578_v49  ;;  %1087 = vperm.xlu1 %2076, %v2433_v21   ;;  %v850_v53 = vsel %vm848_vm7, 1, %v2211_v16  ;;  %vm888_vm7 = vcmp.lt.f32.partialorder %v2752_v43, %v2429_v20 }
 0x272   : > { %v922_v46 = vadd.s32 %v901_v48, %v828_v18  ;;  %v1219_v48 = vsel %vm1217_vm1, 1, %v2211_v16 }
 0x273   : > { %v601_v36 = vadd.s32 %v850_v53, %v599_v52  ;;  %v2830_v51 = vpop.permute.xlu1 %976  ;;  %v2832_v49 = vpop.permute.xlu0 %903 }
 0x274   : > { %3703 = vst [vmem:[#allocation14_spill] sm:$0xff] %v2832_v49  ;;  %v924_v9 = vadd.s32 %v1212_v59, %v922_v46  ;;  %vm910_vm10 = vcmp.lt.f32.partialorder %v2832_v49, %v2433_v21  ;;  %vm914_vm11 = vcmp.eq.f32.partialorder %v2832_v49, %v2433_v21  ;;  %v844_v59 = vsel %vm842_vm8, 1, %v2211_v16 }
 0x275   : > { %v912_v52 = vsel %vm910_vm10, 1, %v2211_v16  ;;  %2078 = vset.pattern.permute.xlu1 %v3622_v40  ;;  %vm917_vm1 = vmand %vm914_vm11, %vm916_vm9  ;;  %vm708_vm10 = vcmp.eq.f32.partialorder %v2654_v0, %v2429_v20  ;;  %v3739_v49 = vmov 17  }
 0x276   : > { %v945_v46 = vadd.s32 %v1219_v48, %v924_v9  ;;  %v622_v53 = vadd.s32 %v912_v52, %v601_v36  ;;  %1133 = vperm.xlu1 %2078, %v2433_v21   ;;  %v919_v47 = vsel %vm917_vm1, 1, %v2211_v16  ;;  %v644_v52 = vsel %vm2841_vm6, 1, %v2211_v16  ;;  %vm895_vm1 = vmand %vm892_vm14, %vm3626_vm15 }
 0x277   : > { %vm711_vm3 = vmand %vm708_vm10, %vm709_vm13  ;;  %vm777_vm14 = vcmp.eq.f32.partialorder %v2685_v6, %v2429_v20  ;;  %vm957_vm15 = vcmp.lt.f32.partialorder %v2804_v19, %v2429_v20 }
 0x278   : > { %v947_v39 = vadd.s32 %v945_v46, %v844_v59  ;;  %v624_v9 = vadd.s32 %v919_v47, %v622_v53  ;;  %v2860_v36 = vpop.permute.xlu1 %1022  ;;  %v2862_v48 = vpop.permute.xlu0 %972  ;;  %v890_v53 = vsel %vm888_vm7, 1, %v2211_v16  ;;  %vm911_vm7 = vcmp.lt.f32.partialorder %v2777_v30, %v2429_v20 }
 0x279   : > { %3706 = vst [vmem:[#allocation15_spill] sm:$0xff] %v2862_v48  ;;  %vm979_vm8 = vcmp.lt.f32.partialorder %v2862_v48, %v2433_v21  ;;  %vm983_vm11 = vcmp.eq.f32.partialorder %v2862_v48, %v2433_v21 }
 0x27a   : > { %v968_v46 = vadd.s32 %v947_v39, %v644_v52  ;;  %v981_v47 = vsel %vm979_vm8, 1, %v2211_v16  ;;  %2079 = vset.pattern.permute.xlu1 %v3624_v54  ;;  %vm986_vm6 = vmand %vm983_vm11, %vm985_vm2  ;;  %v897_v52 = vsel %vm895_vm1, 1, %v2211_v16  ;;  %vm1054_vm8 = vcmp.gt.s32.totalorder %v2350_v32, 24 }
 0x27b   : > { %v645_v18 = vadd.s32 %v981_v47, %v624_v9  ;;  %1156 = vperm.xlu1 %2079, %v2433_v21   ;;  %v988_v39 = vsel %vm986_vm6, 1, %v2211_v16  ;;  %vm780_vm11 = vmand %vm777_vm14, %vm778_vm5  ;;  %vm962_vm1 = vcmp.gt.s32.totalorder %v2350_v32, 20  ;;  %vm846_vm5 = vcmp.eq.f32.partialorder %v2727_v8, %v2429_v20 }
 0x27c   : > { %v970_v59 = vadd.s32 %v968_v46, %v890_v53  ;;  %v713_v46 = vsel %vm711_vm3, 1, %v2211_v16  ;;  %vm961_vm3 = vcmp.eq.f32.partialorder %v2804_v19, %v2429_v20 }
 0x27d   : > { %v2888_v40 = vpop.permute.xlu1 %1045  ;;  %v2890_v54 = vpop.permute.xlu0 %1041  ;;  %v647_v47 = vadd.s32 %v988_v39, %v645_v18  ;;  %vm964_vm14 = vmand %vm961_vm3, %vm962_vm1  ;;  %vm915_vm3 = vcmp.eq.f32.partialorder %v2777_v30, %v2429_v20 }
 0x27e   : > { %3707 = vst [vmem:[#allocation16_spill] sm:$0xff] %v2890_v54  ;;  %v991_v9 = vadd.s32 %v970_v59, %v897_v52  ;;  %vm1048_vm13 = vcmp.lt.f32.partialorder %v2890_v54, %v2433_v21  ;;  %vm1052_vm10 = vcmp.eq.f32.partialorder %v2890_v54, %v2433_v21  ;;  %v913_v52 = vsel %vm911_vm7, 1, %v2211_v16 }
 0x27f   : > { %2081 = vset.pattern.permute.xlu1 %v3627_v42  ;;  %v1050_v59 = vsel %vm1048_vm13, 1, %v2211_v16  ;;  %vm1055_vm6 = vmand %vm1052_vm10, %vm1054_vm8  ;;  %vm1123_vm10 = vcmp.gt.s32.totalorder %v2350_v32, 27 }
 0x280   : > { %v993_v53 = vadd.s32 %v991_v9, %v713_v46  ;;  %1202 = vperm.xlu1 %2081, %v2433_v21   ;;  %v782_v46 = vsel %vm780_vm11, 1, %v2211_v16  ;;  %v668_v42 = vadd.s32 %v1050_v59, %v647_v47  ;;  %v1057_v24 = vsel %vm1055_vm6, 1, %v2211_v16  ;;  %vm849_vm13 = vmand %vm846_vm5, %vm847_vm4 }
 0x281   : > { %v966_v47 = vsel %vm964_vm14, 1, %v2211_v16  ;;  %vm918_vm6 = vmand %vm915_vm3, %vm916_vm9  ;;  %vm1031_vm5 = vcmp.gt.s32.totalorder %v2350_v32, 23  ;;  %vm1030_vm14 = vcmp.eq.f32.partialorder %v2860_v36, %v2429_v20  ;;  %vm984_vm9 = vcmp.eq.f32.partialorder %v2830_v51, %v2429_v20 }
 0x282   : > { %v1014_v18 = vadd.s32 %v993_v53, %v913_v52  ;;  %v2913_v39 = vpop.permute.xlu1 %1091  ;;  %v2915_v9 = vpop.permute.xlu0 %1110  ;;  %v959_v53 = vsel %vm957_vm15, 1, %v2211_v16  ;;  %v670_v59 = vadd.s32 %v1057_v24, %v668_v42  ;;  %vm980_vm15 = vcmp.lt.f32.partialorder %v2830_v51, %v2429_v20 }
 0x283   : > { %3708 = vst [vmem:[#allocation17_spill] sm:$0xff] %v2915_v9  ;;  %vm1117_vm7 = vcmp.lt.f32.partialorder %v2915_v9, %v2433_v21  ;;  %vm1121_vm11 = vcmp.eq.f32.partialorder %v2915_v9, %v2433_v21  ;;  %v982_v24 = vsel %vm980_vm15, 1, %v2211_v16  ;;  %vm1192_vm3 = vcmp.gt.s32.totalorder %v2350_v32, 30 }
 0x284   : > { %v1016_v45 = vadd.s32 %v1014_v18, %v782_v46  ;;  %2083 = vset.pattern.permute.xlu1 %v3633_v23  ;;  %vm1124_vm4 = vmand %vm1121_vm11, %vm1123_vm10  ;;  %v3735_v9 = vmov 14  }
 0x285   : > { %vm1033_vm11 = vmand %vm1030_vm14, %vm1031_vm5 }
 0x286   : > { %v1037_v52 = vadd.s32 %v1016_v45, %v959_v53  ;;  %v1119_v45 = vsel %vm1117_vm7, 1, %v2211_v16  ;;  %v851_v53 = vsel %vm849_vm13, 1, %v2211_v16  ;;  %vm1026_vm7 = vcmp.lt.f32.partialorder %v2860_v36, %v2429_v20 }
 0x287   : > { %v2935_v18 = vpop.permute.xlu1 %1114  ;;  %v2945_v41 = vpop.permute.xlu0 %1179  ;;  %v691_v42 = vadd.s32 %v1119_v45, %v670_v59  ;;  %v1035_v38 = vsel %vm1033_vm11, 1, %v2211_v16  ;;  %vm1095_vm11 = vcmp.lt.f32.partialorder %v2913_v39, %v2429_v20 }
 0x288   : > { %v1039_v46 = vadd.s32 %v1037_v52, %v966_v47  ;;  %3709 = vst [vmem:[#allocation18_spill] sm:$0xff] %v2945_v41  ;;  %v1126_v47 = vsel %vm1124_vm4, 1, %v2211_v16  ;;  %vm1186_vm13 = vcmp.lt.f32.partialorder %v2945_v41, %v2433_v21  ;;  %vm1190_vm15 = vcmp.eq.f32.partialorder %v2945_v41, %v2433_v21  ;;  %vm987_vm4 = vmand %vm984_vm9, %vm985_vm2 }
 0x289   : > { %v693_v59 = vadd.s32 %v1126_v47, %v691_v42  ;;  %vm1193_vm14 = vmand %vm1190_vm15, %vm1192_vm3  ;;  %vm1100_vm9 = vcmp.gt.s32.totalorder %v2350_v32, 26 }
 0x28a   : > { %v1060_v23 = vadd.s32 %v1039_v46, %v851_v53  ;;  %v920_v53 = vsel %vm918_vm6, 1, %v2211_v16  ;;  %vm1053_vm6 = vcmp.eq.f32.partialorder %v2888_v40, %v2429_v20 }
 0x28b   : > { %vm1056_vm2 = vmand %vm1053_vm6, %vm1054_vm8 }
 0x28c   : > { %v1062_v52 = vadd.s32 %v1060_v23, %v982_v24  ;;  %v2954_v46 = vpop.permute.xlu1 %1160  ;;  %v1028_v23 = vsel %vm1026_vm7, 1, %v2211_v16  ;;  %v1188_v24 = vsel %vm1186_vm13, 1, %v2211_v16  ;;  %vm1049_vm7 = vcmp.lt.f32.partialorder %v2888_v40, %v2429_v20 }
 0x28d   : > { %3710 = vst [vmem:[#allocation19_spill] sm:$0xff] %v2954_v46  ;;  %v714_v42 = vadd.s32 %v1188_v24, %v693_v59  ;;  %vm1099_vm13 = vcmp.eq.f32.partialorder %v2913_v39, %v2429_v20  ;;  %v1051_v22 = vsel %vm1049_vm7, 1, %v2211_v16  ;;  %v1058_v59 = vsel %vm1056_vm2, 1, %v2211_v16 }
 0x28e   : > { %v1083_v37 = vadd.s32 %v1062_v52, %v920_v53  ;;  %vm1102_vm8 = vmand %vm1099_vm13, %vm1100_vm9  ;;  %vm1118_vm7 = vcmp.lt.f32.partialorder %v2935_v18, %v2429_v20 }
 0x28f   : > { %v1104_v34 = vsel %vm1102_vm8, 1, %v2211_v16  ;;  %vm1168_vm8 = vcmp.eq.f32.partialorder %v2954_v46, %v2429_v20 }
 0x290   : > { %v1085_v45 = vadd.s32 %v1083_v37, %v1028_v23  ;;  %v989_v37 = vsel %vm987_vm4, 1, %v2211_v16  ;;  %v1195_v23 = vsel %vm1193_vm14, 1, %v2211_v16  ;;  %vm1122_vm14 = vcmp.eq.f32.partialorder %v2935_v18, %v2429_v20 }
 0x291   : > { %v2975_v52 = vpop.permute.xlu1 %1183  ;;  %v716_v24 = vadd.s32 %v1195_v23, %v714_v42 }
 0x292   : > { %3711 = vst [vmem:[#allocation20_spill] sm:$0xff] %v2975_v52  ;;  %v1106_v53 = vadd.s32 %v1085_v45, %v1035_v38 }
 0x294   : > { %v1108_v47 = vadd.s32 %v1106_v53, %v989_v37  ;;  %v1097_v37 = vsel %vm1095_vm11, 1, %v2211_v16  ;;  %vm1169_vm11 = vcmp.gt.s32.totalorder %v2350_v32, 29 }
 0x296   : > { %v1129_v38 = vadd.s32 %v1108_v47, %v1051_v22  ;;  %v2989_v45 = vpop.permute.xlu1 %512 }
 0x297   : > { %3712 = vst [vmem:[#allocation21_spill] sm:$0xff] %v2989_v45  ;;  %vm519_vm15 = vcmp.lt.f32.partialorder %v2989_v45, %v2433_v21  ;;  %vm523_vm4 = vcmp.eq.f32.partialorder %v2989_v45, %v2433_v21  ;;  %v3767_v45 = vmov 24  }
 0x298   : > { %v1131_v53 = vadd.s32 %v1129_v38, %v1058_v59  ;;  %v521_v22 = vsel %vm519_vm15, 1, %v2211_v16  ;;  %vm526_vm6 = vmand %vm523_vm4, %vm525_vm12 }
 0x299   : > { %v737_v47 = vadd.s32 %v716_v24, %v521_v22  ;;  %v528_v42 = vsel %vm526_vm6, 1, %v2211_v16  ;;  %vm1125_vm12 = vmand %vm1122_vm14, %vm1123_vm10  ;;  %v1120_v24 = vsel %vm1118_vm7, 1, %v2211_v16  ;;  %vm1164_vm10 = vcmp.lt.f32.partialorder %v2954_v46, %v2429_v20 }
 0x29a   : > { %v1152_v23 = vadd.s32 %v1131_v53, %v1097_v37  ;;  %vm1171_vm4 = vmand %vm1168_vm8, %vm1169_vm11  ;;  %v1166_v15 = vsel %vm1164_vm10, 1, %v2211_v16  ;;  %vm1187_vm7 = vcmp.lt.f32.partialorder %v2975_v52, %v2429_v20  ;;  %vm3717_vm10 = vcmp.gt.s32.totalorder %v2350_v32, 4 }
 0x29b   : > { %v739_v38 = vadd.s32 %v737_v47, %v528_v42  ;;  %v3008_v59 = vpop.permute.xlu1 %535  ;;  %v1127_v47 = vsel %vm1125_vm12, 1, %v2211_v16  ;;  %vm3715_vm12 = vcmp.gt.s32.totalorder %v2350_v32, 3  ;;  %v3772_v46 = vmov 27  }
 0x29c   : > { %3713 = vst [vmem:[#allocation22_spill] sm:$0xff] %v3008_v59  ;;  %v1154_v31 = vadd.s32 %v1152_v23, %v1104_v34  ;;  %vm542_vm2 = vcmp.lt.f32.partialorder %v3008_v59, %v2433_v21  ;;  %vm546_vm13 = vcmp.eq.f32.partialorder %v3008_v59, %v2433_v21  ;;  %v3762_v59 = vmov 21  }
 0x29d   : > { %v544_v53 = vsel %vm542_vm2, 1, %v2211_v16  ;;  %vm549_vm15 = vmand %vm546_vm13, %vm548_vm0  ;;  %vm1191_vm0 = vcmp.eq.f32.partialorder %v2975_v52, %v2429_v20  ;;  %v3770_v52 = vmov 25  }
 0x29e   : > { %v1175_v34 = vadd.s32 %v1154_v31, %v1120_v24  ;;  %v760_v22 = vadd.s32 %v739_v38, %v544_v53  ;;  %v551_v37 = vsel %vm549_vm15, 1, %v2211_v16  ;;  %v1173_v24 = vsel %vm1171_vm4, 1, %v2211_v16  ;;  %vm1194_vm13 = vmand %vm1191_vm0, %vm1192_vm3 }
 0x2a0   : > { %v1177_v42 = vadd.s32 %v1175_v34, %v1127_v47  ;;  %v762_v23 = vadd.s32 %v760_v22, %v551_v37  ;;  %v3029_v29 = vpop.permute.xlu1 %558  ;;  %v1189_v37 = vsel %vm1187_vm7, 1, %v2211_v16 }
 0x2a1   : > { %3714 = vst [vmem:[#allocation23_spill] sm:$0xff] %v3029_v29  ;;  %vm565_vm6 = vcmp.lt.f32.partialorder %v3029_v29, %v2433_v21  ;;  %vm569_vm14 = vcmp.eq.f32.partialorder %v3029_v29, %v2433_v21 }
 0x2a2   : > { %v1198_v31 = vadd.s32 %v1177_v42, %v1166_v15  ;;  %v567_v38 = vsel %vm565_vm6, 1, %v2211_v16  ;;  %vm572_vm2 = vmand %vm569_vm14, %vm3715_vm12  ;;  %v1196_v42 = vsel %vm1194_vm13, 1, %v2211_v16  ;;  %vm3719_vm6 = vcmp.gt.s32.totalorder %v2350_v32, 5 }
 0x2a3   : > { %v783_v53 = vadd.s32 %v762_v23, %v567_v38  ;;  %v574_v34 = vsel %vm572_vm2, 1, %v2211_v16  ;;  %vm3721_vm2 = vcmp.gt.s32.totalorder %v2350_v32, 7 }
 0x2a4   : > { %v1200_v22 = vadd.s32 %v1198_v31, %v1173_v24 }
 0x2a5   : > { %v785_v15 = vadd.s32 %v783_v53, %v574_v34  ;;  %v3048_v47 = vpop.permute.xlu1 %581 }
 0x2a6   : > { %3716 = vst [vmem:[#allocation24_spill] sm:$0xff] %v3048_v47  ;;  %v1221_v20 = vadd.s32 %v1200_v22, %v1189_v37  ;;  %vm588_vm8 = vcmp.lt.f32.partialorder %v3048_v47, %v2433_v21  ;;  %vm592_vm15 = vcmp.eq.f32.partialorder %v3048_v47, %v2433_v21 }
 0x2a7   : > { %v590_v23 = vsel %vm588_vm8, 1, %v2211_v16  ;;  %vm595_vm4 = vmand %vm592_vm15, %vm3717_vm10  ;;  %vm3725_vm10 = vcmp.gt.s32.totalorder %v2350_v32, 8 }
 0x2a8   : > { %v3058_v31 = vadd.s32 %v1221_v20, %v1196_v42  ;;  %v806_v38 = vadd.s32 %v785_v15, %v590_v23  ;;  %v597_v24 = vsel %vm595_vm4, 1, %v2211_v16 }
 0x2aa   : > { %v808_v53 = vadd.s32 %v806_v38, %v597_v24  ;;  %v3061_v34 = vpop.permute.xlu1 %604  ;;  %1240 = vperm.xlu1 %2083, %v3058_v31   ;;  %1228 = vperm.xlu0 %2082, %v3058_v31  }
 0x2ab   : > { %3718 = vst [vmem:[#allocation25_spill] sm:$0xff] %v3061_v34  ;;  %vm611_vm3 = vcmp.lt.f32.partialorder %v3061_v34, %v2433_v21  ;;  %vm615_vm0 = vcmp.eq.f32.partialorder %v3061_v34, %v2433_v21 }
 0x2ac   : > { %v613_v22 = vsel %vm611_vm3, 1, %v2211_v16  ;;  %vm618_vm14 = vmand %vm615_vm0, %vm3719_vm6  ;;  %vm3729_vm6 = vcmp.gt.s32.totalorder %v2350_v32, 10 }
 0x2ad   : > { %v829_v37 = vadd.s32 %v808_v53, %v613_v22  ;;  %v620_v15 = vsel %vm618_vm14, 1, %v2211_v16  ;;  %v3722_v53 = vmov 4   ;;  %v3723_v22 = vmov 5  }
 0x2ae   : > { %2085 = vset.pattern.permute.xlu1 %v3650_v27  ;;  %2084 = vset.pattern.permute.xlu0 %v3651_v25  ;;  %v3727_v27 = vmov 8  }
 0x2af   : > { %v831_v20 = vadd.s32 %v829_v37, %v620_v15  ;;  %v3075_v42 = vpop.permute.xlu1 %650  ;;  %1264 = vperm.xlu1 %2085, %v3058_v31   ;;  %1252 = vperm.xlu0 %2084, %v3058_v31  }
 0x2b0   : > { %3720 = vst [vmem:[#allocation26_spill] sm:$0xff] %v3075_v42  ;;  %vm657_vm7 = vcmp.lt.f32.partialorder %v3075_v42, %v2433_v21  ;;  %vm661_vm12 = vcmp.eq.f32.partialorder %v3075_v42, %v2433_v21 }
 0x2b1   : > { %v659_v23 = vsel %vm657_vm7, 1, %v2211_v16  ;;  %vm664_vm13 = vmand %vm661_vm12, %vm3721_vm2  ;;  %vm3733_vm2 = vcmp.gt.s32.totalorder %v2350_v32, 11 }
 0x2b2   : > { %v852_v38 = vadd.s32 %v831_v20, %v659_v23  ;;  %v666_v24 = vsel %vm664_vm13, 1, %v2211_v16 }
 0x2b3   : > { %2086 = vset.pattern.permute.xlu1 %v3722_v53  ;;  %2087 = vset.pattern.permute.xlu0 %v3723_v22 }
 0x2b4   : > { %v854_v37 = vadd.s32 %v852_v38, %v666_v24  ;;  %v3089_v15 = vpop.permute.xlu1 %673  ;;  %1276 = vperm.xlu1 %2086, %v3058_v31   ;;  %1288 = vperm.xlu0 %2087, %v3058_v31   ;;  %v3726_v24 = vmov 6  }
 0x2b5   : > { %3724 = vst [vmem:[#allocation27_spill] sm:$0xff] %v3089_v15  ;;  %vm680_vm8 = vcmp.lt.f32.partialorder %v3089_v15, %v2433_v21  ;;  %vm684_vm15 = vcmp.eq.f32.partialorder %v3089_v15, %v2433_v21 }
 0x2b6   : > { %v682_v20 = vsel %vm680_vm8, 1, %v2211_v16  ;;  %vm687_vm4 = vmand %vm684_vm15, %vm3725_vm10  ;;  %vm3737_vm10 = vcmp.gt.s32.totalorder %v2350_v32, 13 }
 0x2b7   : > { %v875_v23 = vadd.s32 %v854_v37, %v682_v20  ;;  %v689_v38 = vsel %vm687_vm4, 1, %v2211_v16 }
 0x2b8   : > { %2088 = vset.pattern.permute.xlu1 %v3726_v24  ;;  %2090 = vset.pattern.permute.xlu0 %v3727_v27 }
 0x2b9   : > { %v877_v25 = vadd.s32 %v875_v23, %v689_v38  ;;  %v3103_v35 = vpop.permute.xlu1 %719  ;;  %1300 = vperm.xlu1 %2088, %v3058_v31   ;;  %1324 = vperm.xlu0 %2090, %v3058_v31   ;;  %v3730_v38 = vmov 7  }
 0x2ba   : > { %3728 = vst [vmem:[#allocation28_spill] sm:$0xff] %v3103_v35  ;;  %vm726_vm3 = vcmp.lt.f32.partialorder %v3103_v35, %v2433_v21  ;;  %vm730_vm0 = vcmp.eq.f32.partialorder %v3103_v35, %v2433_v21 }
 0x2bb   : > { %v728_v37 = vsel %vm726_vm3, 1, %v2211_v16  ;;  %vm733_vm14 = vmand %vm730_vm0, %vm3729_vm6  ;;  %vm3741_vm6 = vcmp.gt.s32.totalorder %v2350_v32, 14 }
 0x2bc   : > { %v898_v20 = vadd.s32 %v877_v25, %v728_v37  ;;  %v735_v23 = vsel %vm733_vm14, 1, %v2211_v16 }
 0x2bd   : > { %2089 = vset.pattern.permute.xlu1 %v3730_v38  ;;  %2093 = vset.pattern.permute.xlu0 %v3731_v44 }
 0x2be   : > { %v900_v1 = vadd.s32 %v898_v20, %v735_v23  ;;  %v3117_v41 = vpop.permute.xlu1 %742  ;;  %1312 = vperm.xlu1 %2089, %v3058_v31   ;;  %1360 = vperm.xlu0 %2093, %v3058_v31   ;;  %v3734_v23 = vmov 9  }
 0x2bf   : > { %3732 = vst [vmem:[#allocation29_spill] sm:$0xff] %v3117_v41  ;;  %vm749_vm7 = vcmp.lt.f32.partialorder %v3117_v41, %v2433_v21  ;;  %vm753_vm12 = vcmp.eq.f32.partialorder %v3117_v41, %v2433_v21 }
 0x2c0   : > { %v751_v25 = vsel %vm749_vm7, 1, %v2211_v16  ;;  %vm756_vm13 = vmand %vm753_vm12, %vm3733_vm2  ;;  %vm3745_vm2 = vcmp.gt.s32.totalorder %v2350_v32, 16 }
 0x2c1   : > { %v921_v37 = vadd.s32 %v900_v1, %v751_v25  ;;  %v758_v20 = vsel %vm756_vm13, 1, %v2211_v16 }
 0x2c2   : > { %2091 = vset.pattern.permute.xlu1 %v3734_v23  ;;  %2096 = vset.pattern.permute.xlu0 %v3735_v9 }
 0x2c3   : > { %v923_v54 = vadd.s32 %v921_v37, %v758_v20  ;;  %v3131_v48 = vpop.permute.xlu1 %788  ;;  %1336 = vperm.xlu1 %2091, %v3058_v31   ;;  %1396 = vperm.xlu0 %2096, %v3058_v31   ;;  %v3738_v20 = vmov 10  }
 0x2c4   : > { %3736 = vst [vmem:[#allocation30_spill] sm:$0xff] %v3131_v48  ;;  %vm795_vm8 = vcmp.lt.f32.partialorder %v3131_v48, %v2433_v21  ;;  %vm799_vm15 = vcmp.eq.f32.partialorder %v3131_v48, %v2433_v21  ;;  %v3743_v48 = vmov 20  }
 0x2c5   : > { %v797_v1 = vsel %vm795_vm8, 1, %v2211_v16  ;;  %vm802_vm4 = vmand %vm799_vm15, %vm3737_vm10  ;;  %vm3749_vm10 = vcmp.gt.s32.totalorder %v2350_v32, 17 }
 0x2c6   : > { %v944_v25 = vadd.s32 %v923_v54, %v797_v1  ;;  %v804_v37 = vsel %vm802_vm4, 1, %v2211_v16 }
 0x2c7   : > { %2092 = vset.pattern.permute.xlu1 %v3738_v20  ;;  %2099 = vset.pattern.permute.xlu0 %v3739_v49 }
 0x2c8   : > { %v946_v28 = vadd.s32 %v944_v25, %v804_v37  ;;  %v3145_v33 = vpop.permute.xlu1 %811  ;;  %1348 = vperm.xlu1 %2092, %v3058_v31   ;;  %1432 = vperm.xlu0 %2099, %v3058_v31   ;;  %v3742_v37 = vmov 12  }
 0x2c9   : > { %3740 = vst [vmem:[#allocation31_spill] sm:$0xff] %v3145_v33  ;;  %vm818_vm3 = vcmp.lt.f32.partialorder %v3145_v33, %v2433_v21  ;;  %vm822_vm0 = vcmp.eq.f32.partialorder %v3145_v33, %v2433_v21  ;;  %v3747_v33 = vmov 23  }
 0x2ca   : > { %v820_v54 = vsel %vm818_vm3, 1, %v2211_v16  ;;  %vm825_vm14 = vmand %vm822_vm0, %vm3741_vm6  ;;  %vm3753_vm6 = vcmp.gt.s32.totalorder %v2350_v32, 19 }
 0x2cb   : > { %v967_v1 = vadd.s32 %v946_v28, %v820_v54  ;;  %v827_v25 = vsel %vm825_vm14, 1, %v2211_v16 }
 0x2cc   : > { %2094 = vset.pattern.permute.xlu1 %v3742_v37  ;;  %2102 = vset.pattern.permute.xlu0 %v3743_v48 }
 0x2cd   : > { %v969_v41 = vadd.s32 %v967_v1, %v827_v25  ;;  %v3159_v35 = vpop.permute.xlu1 %857  ;;  %1372 = vperm.xlu1 %2094, %v3058_v31   ;;  %1468 = vperm.xlu0 %2102, %v3058_v31   ;;  %v3746_v25 = vmov 13  }
 0x2ce   : > { %3744 = vst [vmem:[#allocation32_spill] sm:$0xff] %v3159_v35  ;;  %vm864_vm7 = vcmp.lt.f32.partialorder %v3159_v35, %v2433_v21  ;;  %vm868_vm12 = vcmp.eq.f32.partialorder %v3159_v35, %v2433_v21  ;;  %v3751_v35 = vmov 26  }
 0x2cf   : > { %v866_v28 = vsel %vm864_vm7, 1, %v2211_v16  ;;  %vm871_vm13 = vmand %vm868_vm12, %vm3745_vm2 }
 0x2d0   : > { %v990_v54 = vadd.s32 %v969_v41, %v866_v28  ;;  %v873_v1 = vsel %vm871_vm13, 1, %v2211_v16 }
 0x2d1   : > { %2095 = vset.pattern.permute.xlu1 %v3746_v25  ;;  %2105 = vset.pattern.permute.xlu0 %v3747_v33 }
 0x2d2   : > { %v992_v26 = vadd.s32 %v990_v54, %v873_v1  ;;  %v3173_v15 = vpop.permute.xlu1 %880  ;;  %1384 = vperm.xlu1 %2095, %v3058_v31   ;;  %1504 = vperm.xlu0 %2105, %v3058_v31   ;;  %v3750_v1 = vmov 15  }
 0x2d3   : > { %3748 = vst [vmem:[#allocation33_spill] sm:$0xff] %v3173_v15  ;;  %vm887_vm8 = vcmp.lt.f32.partialorder %v3173_v15, %v2433_v21  ;;  %vm891_vm15 = vcmp.eq.f32.partialorder %v3173_v15, %v2433_v21  ;;  %v3755_v15 = vmov 29  }
 0x2d4   : > { %v889_v41 = vsel %vm887_vm8, 1, %v2211_v16  ;;  %vm894_vm4 = vmand %vm891_vm15, %vm3749_vm10 }
 0x2d5   : > { %v1013_v28 = vadd.s32 %v992_v26, %v889_v41  ;;  %v896_v54 = vsel %vm894_vm4, 1, %v2211_v16 }
 0x2d6   : > { %2097 = vset.pattern.permute.xlu1 %v3750_v1  ;;  %2108 = vset.pattern.permute.xlu0 %v3751_v35 }
 0x2d7   : > { %v1015_v42 = vadd.s32 %v1013_v28, %v896_v54  ;;  %v3187_v50 = vpop.permute.xlu1 %926  ;;  %1408 = vperm.xlu1 %2097, %v3058_v31   ;;  %1540 = vperm.xlu0 %2108, %v3058_v31   ;;  %v3754_v54 = vmov 16  }
 0x2d8   : > { %3752 = vst [vmem:[#allocation34_spill] sm:$0xff] %v3187_v50  ;;  %vm933_vm3 = vcmp.lt.f32.partialorder %v3187_v50, %v2433_v21  ;;  %vm937_vm0 = vcmp.eq.f32.partialorder %v3187_v50, %v2433_v21 }
 0x2d9   : > { %v935_v26 = vsel %vm933_vm3, 1, %v2211_v16  ;;  %vm940_vm14 = vmand %vm937_vm0, %vm3753_vm6 }
 0x2da   : > { %v1036_v41 = vadd.s32 %v1015_v42, %v935_v26  ;;  %v942_v28 = vsel %vm940_vm14, 1, %v2211_v16 }
 0x2db   : > { %2098 = vset.pattern.permute.xlu1 %v3754_v54  ;;  %2111 = vset.pattern.permute.xlu0 %v3755_v15 }
 0x2dc   : > { %v1038_v34 = vadd.s32 %v1036_v41, %v942_v28  ;;  %v3201_v47 = vpop.permute.xlu1 %949  ;;  %1420 = vperm.xlu1 %2098, %v3058_v31   ;;  %1576 = vperm.xlu0 %2111, %v3058_v31   ;;  %v3757_v28 = vmov 18  }
 0x2dd   : > { %3756 = vst [vmem:[#allocation35_spill] sm:$0xff] %v3201_v47  ;;  %vm956_vm7 = vcmp.lt.f32.partialorder %v3201_v47, %v2433_v21  ;;  %vm960_vm12 = vcmp.eq.f32.partialorder %v3201_v47, %v2433_v21 }
 0x2de   : > { %v958_v42 = vsel %vm956_vm7, 1, %v2211_v16  ;;  %vm963_vm2 = vmand %vm960_vm12, %vm962_vm1  ;;  %vm3759_vm1 = vcmp.gt.s32.totalorder %v2350_v32, 22 }
 0x2df   : > { %v1059_v26 = vadd.s32 %v1038_v34, %v958_v42  ;;  %v965_v41 = vsel %vm963_vm2, 1, %v2211_v16 }
 0x2e0   : > { %2100 = vset.pattern.permute.xlu1 %v3757_v28  ;;  %2117 = vset.pattern.permute.xlu0 %v3722_v53  ;;  %v3760_v53 = vmov 19  }
 0x2e1   : > { %v1061_v50 = vadd.s32 %v1059_v26, %v965_v41  ;;  %v3215_v29 = vpop.permute.xlu1 %995  ;;  %1444 = vperm.xlu1 %2100, %v3058_v31  }
 0x2e2   : > { %3758 = vst [vmem:[#allocation36_spill] sm:$0xff] %v3215_v29  ;;  %vm1002_vm13 = vcmp.lt.f32.partialorder %v3215_v29, %v2433_v21  ;;  %vm1006_vm8 = vcmp.eq.f32.partialorder %v3215_v29, %v2433_v21 }
 0x2e3   : > { %v1004_v47 = vsel %vm1002_vm13, 1, %v2211_v16  ;;  %vm1009_vm15 = vmand %vm1006_vm8, %vm3759_vm1 }
 0x2e4   : > { %v1082_v34 = vadd.s32 %v1061_v50, %v1004_v47  ;;  %v1011_v42 = vsel %vm1009_vm15, 1, %v2211_v16 }
 0x2e5   : > { %2101 = vset.pattern.permute.xlu1 %v3760_v53 }
 0x2e6   : > { %v1084_v26 = vadd.s32 %v1082_v34, %v1011_v42  ;;  %v3227_v41 = vpop.permute.xlu1 %1018  ;;  %1456 = vperm.xlu1 %2101, %v3058_v31  }
 0x2e7   : > { %3761 = vst [vmem:[#allocation37_spill] sm:$0xff] %v3227_v41  ;;  %vm1025_vm10 = vcmp.lt.f32.partialorder %v3227_v41, %v2433_v21  ;;  %vm1029_vm4 = vcmp.eq.f32.partialorder %v3227_v41, %v2433_v21 }
 0x2e8   : > { %v1027_v29 = vsel %vm1025_vm10, 1, %v2211_v16  ;;  %vm1032_vm3 = vmand %vm1029_vm4, %vm1031_vm5  ;;  %vm3764_vm5 = vcmp.gt.s32.totalorder %v2350_v32, 25 }
 0x2e9   : > { %v1105_v50 = vadd.s32 %v1084_v26, %v1027_v29  ;;  %v1034_v47 = vsel %vm1032_vm3, 1, %v2211_v16 }
 0x2ea   : > { %2103 = vset.pattern.permute.xlu1 %v3762_v59 }
 0x2eb   : > { %v1107_v34 = vadd.s32 %v1105_v50, %v1034_v47  ;;  %v3239_v42 = vpop.permute.xlu1 %1064  ;;  %1480 = vperm.xlu1 %2103, %v3058_v31  }
 0x2ec   : > { %3763 = vst [vmem:[#allocation38_spill] sm:$0xff] %v3239_v42  ;;  %vm1071_vm0 = vcmp.lt.f32.partialorder %v3239_v42, %v2433_v21  ;;  %vm1075_vm6 = vcmp.eq.f32.partialorder %v3239_v42, %v2433_v21 }
 0x2ed   : > { %v1073_v41 = vsel %vm1071_vm0, 1, %v2211_v16  ;;  %vm1078_vm14 = vmand %vm1075_vm6, %vm3764_vm5 }
 0x2ee   : > { %v1128_v29 = vadd.s32 %v1107_v34, %v1073_v41  ;;  %v1080_v26 = vsel %vm1078_vm14, 1, %v2211_v16 }
 0x2ef   : > { %2104 = vset.pattern.permute.xlu1 %v3765_v17 }
 0x2f0   : > { %v1130_v50 = vadd.s32 %v1128_v29, %v1080_v26  ;;  %v3251_v47 = vpop.permute.xlu1 %1087  ;;  %1492 = vperm.xlu1 %2104, %v3058_v31  }
 0x2f1   : > { %3766 = vst [vmem:[#allocation39_spill] sm:$0xff] %v3251_v47  ;;  %vm1094_vm7 = vcmp.lt.f32.partialorder %v3251_v47, %v2433_v21  ;;  %vm1098_vm12 = vcmp.eq.f32.partialorder %v3251_v47, %v2433_v21 }
 0x2f2   : > { %v1096_v42 = vsel %vm1094_vm7, 1, %v2211_v16  ;;  %vm1101_vm2 = vmand %vm1098_vm12, %vm1100_vm9  ;;  %vm3769_vm9 = vcmp.gt.s32.totalorder %v2350_v32, 28 }
 0x2f3   : > { %v1151_v41 = vadd.s32 %v1130_v50, %v1096_v42  ;;  %v1103_v34 = vsel %vm1101_vm2, 1, %v2211_v16 }
 0x2f4   : > { %2106 = vset.pattern.permute.xlu1 %v3767_v45 }
 0x2f5   : > { %v1153_v29 = vadd.s32 %v1151_v41, %v1103_v34  ;;  %v3263_v26 = vpop.permute.xlu1 %1133  ;;  %1516 = vperm.xlu1 %2106, %v3058_v31  }
 0x2f6   : > { %3768 = vst [vmem:[#allocation40_spill] sm:$0xff] %v3263_v26  ;;  %vm1140_vm13 = vcmp.lt.f32.partialorder %v3263_v26, %v2433_v21  ;;  %vm1144_vm8 = vcmp.eq.f32.partialorder %v3263_v26, %v2433_v21 }
 0x2f7   : > { %v1142_v47 = vsel %vm1140_vm13, 1, %v2211_v16  ;;  %vm1147_vm1 = vmand %vm1144_vm8, %vm3769_vm9 }
 0x2f8   : > { %v1174_v42 = vadd.s32 %v1153_v29, %v1142_v47  ;;  %v1149_v50 = vsel %vm1147_vm1, 1, %v2211_v16 }
 0x2f9   : > { %2107 = vset.pattern.permute.xlu1 %v3770_v52 }
 0x2fa   : > { %v1176_v41 = vadd.s32 %v1174_v42, %v1149_v50  ;;  %v3275_v34 = vpop.permute.xlu1 %1156  ;;  %1528 = vperm.xlu1 %2107, %v3058_v31  }
 0x2fb   : > { %3771 = vst [vmem:[#allocation41_spill] sm:$0xff] %v3275_v34  ;;  %vm1163_vm15 = vcmp.lt.f32.partialorder %v3275_v34, %v2433_v21  ;;  %vm1167_vm10 = vcmp.eq.f32.partialorder %v3275_v34, %v2433_v21 }
 0x2fc   : > { %v1165_v26 = vsel %vm1163_vm15, 1, %v2211_v16  ;;  %vm1170_vm4 = vmand %vm1167_vm10, %vm1169_vm11  ;;  %vm3773_vm11 = vcmp.gt.s32.totalorder %v2350_v32, 31 }
 0x2fd   : > { %v1197_v47 = vadd.s32 %v1176_v41, %v1165_v26  ;;  %v1172_v29 = vsel %vm1170_vm4, 1, %v2211_v16 }
 0x2fe   : > { %2109 = vset.pattern.permute.xlu1 %v3772_v46 }
 0x2ff   : > { %v1199_v42 = vadd.s32 %v1197_v47, %v1172_v29  ;;  %v3287_v50 = vpop.permute.xlu1 %1202  ;;  %1552 = vperm.xlu1 %2109, %v3058_v31   ;;  %v3775_v29 = vmov 30  }
 0x300   : > { %vm1209_vm3 = vcmp.lt.f32.partialorder %v3287_v50, %v2433_v21  ;;  %vm1213_vm0 = vcmp.eq.f32.partialorder %v3287_v50, %v2433_v21  ;;  %v3776_v21 = vmov 1  }
 0x301   : > { %v1211_v34 = vsel %vm1209_vm3, 1, %v2211_v16  ;;  %vm1216_vm6 = vmand %vm1213_vm0, %vm3773_vm11 }
 0x302   : > { %v1220_v26 = vadd.s32 %v1211_v34, %v1199_v42  ;;  %v1218_v41 = vsel %vm1216_vm6, 1, %v2211_v16  ;;  %v3777_v34 = vmov 2  }
 0x303   : > { %2110 = vset.pattern.permute.xlu1 %v3774_v7 }
 0x304   : > { %v3299_v47 = vadd.s32 %v1220_v26, %v1218_v41  ;;  %1564 = vperm.xlu1 %2110, %v3058_v31  }
 0x306   : > { %1273 = vperm.xlu0 %2117, %v3299_v47  }
 0x308   : > { %2112 = vset.pattern.permute.xlu1 %v3775_v29 }
 0x309   : > { %1588 = vperm.xlu1 %2112, %v3058_v31  }
 0x30a   : > { %2120 = vset.pattern.permute.xlu0 %v3730_v38 }
 0x30b   : > { %1309 = vperm.xlu0 %2120, %v3299_v47  }
 0x30d   : > { %2113 = vset.pattern.permute.xlu1 %v2211_v16  ;;  %v3778_v16 = vmov 3  }
 0x30e   : > { %1225 = vperm.xlu1 %2113, %v3299_v47  }
 0x30f   : > { %2123 = vset.pattern.permute.xlu0 %v3738_v20 }
 0x310   : > { %1345 = vperm.xlu0 %2123, %v3299_v47  }
 0x312   : > { %2114 = vset.pattern.permute.xlu1 %v3776_v21 }
 0x313   : > { %1237 = vperm.xlu1 %2114, %v3299_v47  }
 0x314   : > { %2126 = vset.pattern.permute.xlu0 %v3746_v25 }
 0x315   : > { %1381 = vperm.xlu0 %2126, %v3299_v47  }
 0x317   : > { %2115 = vset.pattern.permute.xlu1 %v3777_v34 }
 0x318   : > { %1249 = vperm.xlu1 %2115, %v3299_v47  }
 0x319   : > { %2129 = vset.pattern.permute.xlu0 %v3754_v54 }
 0x31a   : > { %1417 = vperm.xlu0 %2129, %v3299_v47  }
 0x31c   : > { %2116 = vset.pattern.permute.xlu1 %v3778_v16 }
 0x31d   : > { %1261 = vperm.xlu1 %2116, %v3299_v47  }
 0x31e   : > { %2132 = vset.pattern.permute.xlu0 %v3760_v53 }
 0x31f   : > { %1453 = vperm.xlu0 %2132, %v3299_v47  }
 0x321   : > { %2118 = vset.pattern.permute.xlu1 %v3723_v22 }
 0x322   : > { %1285 = vperm.xlu1 %2118, %v3299_v47  }
 0x323   : > { %2135 = vset.pattern.permute.xlu0 %v3765_v17 }
 0x324   : > { %1489 = vperm.xlu0 %2135, %v3299_v47  }
 0x326   : > { %2119 = vset.pattern.permute.xlu1 %v3726_v24 }
 0x327   : > { %1297 = vperm.xlu1 %2119, %v3299_v47  }
 0x328   : > { %2138 = vset.pattern.permute.xlu0 %v3770_v52 }
 0x329   : > { %v1241_v38 = vpop.permute.xlu1 %1240  ;;  %v1229_v20 = vpop.permute.xlu0 %1228  ;;  %1525 = vperm.xlu0 %2138, %v3299_v47  }
 0x32a   : > { %vm1243_vm5 = vcmp.eq.s32.totalorder %v1241_v38, %v2350_v32  ;;  %vm1231_vm14 = vcmp.eq.s32.totalorder %v1229_v20, %v2350_v32 }
 0x32b   : > { %2121 = vset.pattern.permute.xlu1 %v3727_v27  ;;  %v1245_v17 = vsel %vm1243_vm5, %v2545_v62, 0.0  ;;  %v1233_v22 = vsel %vm1231_vm14, %v2527_v56, 0.0  ;;  %v3779_v62 = vmov 31  }
 0x32c   : > { %1321 = vperm.xlu1 %2121, %v3299_v47   ;;  %v1247_v25 = vadd.f32 %v1245_v17, %v1233_v22 }
 0x32d   : > { %2141 = vset.pattern.permute.xlu0 %v3774_v7 }
 0x32e   : > { %v1265_v24 = vpop.permute.xlu1 %1264  ;;  %v1253_v52 = vpop.permute.xlu0 %1252  ;;  %1561 = vperm.xlu0 %2141, %v3299_v47  }
 0x32f   : > { %vm1267_vm7 = vcmp.eq.s32.totalorder %v1265_v24, %v2350_v32  ;;  %vm1255_vm12 = vcmp.eq.s32.totalorder %v1253_v52, %v2350_v32 }
 0x330   : > { %v1257_v54 = vsel %vm1255_vm12, %v2566_v5, 0.0  ;;  %2122 = vset.pattern.permute.xlu1 %v3734_v23  ;;  %v1269_v56 = vsel %vm1267_vm7, %v2585_v12, 0.0 }
 0x331   : > { %v1259_v27 = vadd.f32 %v1257_v54, %v1247_v25  ;;  %1333 = vperm.xlu1 %2122, %v3299_v47  }
 0x332   : > { %2144 = vset.pattern.permute.xlu0 %v3779_v62 }
 0x333   : > { %v1277_v7 = vpop.permute.xlu1 %1276  ;;  %v1271_v53 = vadd.f32 %v1269_v56, %v1259_v27  ;;  %v1289_v42 = vpop.permute.xlu0 %1288  ;;  %1597 = vperm.xlu0 %2144, %v3299_v47  }
 0x334   : > { %vm1279_vm2 = vcmp.eq.s32.totalorder %v1277_v7, %v2350_v32  ;;  %vm1291_vm13 = vcmp.eq.s32.totalorder %v1289_v42, %v2350_v32 }
 0x335   : > { %v1281_v5 = vsel %vm1279_vm2, %v2525_v55, 0.0  ;;  %2124 = vset.pattern.permute.xlu1 %v3731_v44  ;;  %v1293_v12 = vsel %vm1291_vm13, %v2602_v58, 0.0 }
 0x336   : > { %v1283_v23 = vadd.f32 %v1281_v5, %v1271_v53  ;;  %1357 = vperm.xlu1 %2124, %v3299_v47  }
 0x338   : > { %v1295_v26 = vadd.f32 %v1293_v12, %v1283_v23  ;;  %v1301_v41 = vpop.permute.xlu1 %1300  ;;  %v1325_v16 = vpop.permute.xlu0 %1324 }
 0x339   : > { %vm1303_vm8 = vcmp.eq.s32.totalorder %v1301_v41, %v2350_v32  ;;  %vm1327_vm9 = vcmp.eq.s32.totalorder %v1325_v16, %v2350_v32 }
 0x33a   : > { %v1305_v21 = vsel %vm1303_vm8, %v2618_v3, 0.0  ;;  %2125 = vset.pattern.permute.xlu1 %v3742_v37  ;;  %v1329_v3 = vsel %vm1327_vm9, %v2635_v14, 0.0 }
 0x33b   : > { %v1307_v34 = vadd.f32 %v1305_v21, %v1295_v26  ;;  %1369 = vperm.xlu1 %2125, %v3299_v47  }
 0x33d   : > { %v1313_v55 = vpop.permute.xlu1 %1312  ;;  %v1361_v17 = vpop.permute.xlu0 %1360 }
 0x33e   : > { %vm1315_vm1 = vcmp.eq.s32.totalorder %v1313_v55, %v2350_v32  ;;  %vm1363_vm10 = vcmp.eq.s32.totalorder %v1361_v17, %v2350_v32 }
 0x33f   : > { %v1317_v44 = vsel %vm1315_vm1, %v2543_v61, 0.0  ;;  %2127 = vset.pattern.permute.xlu1 %v3735_v9 }
 0x340   : > { %v1319_v58 = vadd.f32 %v1317_v44, %v1307_v34  ;;  %1393 = vperm.xlu1 %2127, %v3299_v47   ;;  %v1608_v44 = vld [vmem:[%s3573_s2] sm:$0xff] }
 0x342   : > { %v1337_v38 = vpop.permute.xlu1 %1336  ;;  %v1331_v37 = vadd.f32 %v1329_v3, %v1319_v58  ;;  %v1397_v25 = vpop.permute.xlu0 %1396 }
 0x343   : > { %vm1339_vm15 = vcmp.eq.s32.totalorder %v1337_v38, %v2350_v32  ;;  %vm1399_vm0 = vcmp.eq.s32.totalorder %v1397_v25, %v2350_v32  ;;  %v3782_v25 = vld [vmem:[#allocation20_spill] sm:$0xff] }
 0x344   : > { %v1341_v20 = vsel %vm1339_vm15, %v2654_v0, 0.0  ;;  %2128 = vset.pattern.permute.xlu1 %v3750_v1  ;;  %v1365_v0 = vsel %vm1363_vm10, %v2666_v10, 0.0 }
 0x345   : > { %v1343_v22 = vadd.f32 %v1341_v20, %v1331_v37  ;;  %1405 = vperm.xlu1 %2128, %v3299_v47  }
 0x347   : > { %v1349_v61 = vpop.permute.xlu1 %1348  ;;  %v1433_v7 = vpop.permute.xlu0 %1432 }
 0x348   : > { %vm1351_vm4 = vcmp.eq.s32.totalorder %v1349_v61, %v2350_v32  ;;  %vm1435_vm5 = vcmp.eq.s32.totalorder %v1433_v7, %v2350_v32  ;;  %v3785_v7 = vld [vmem:[#allocation22_spill] sm:$0xff] }
 0x349   : > { %v1353_v9 = vsel %vm1351_vm4, %v2564_v4, 0.0  ;;  %2130 = vset.pattern.permute.xlu1 %v3739_v49 }
 0x34a   : > { %v1355_v14 = vadd.f32 %v1353_v9, %v1343_v22  ;;  %1429 = vperm.xlu1 %2130, %v3299_v47  }
 0x34c   : > { %v1373_v24 = vpop.permute.xlu1 %1372  ;;  %v1367_v1 = vadd.f32 %v1365_v0, %v1355_v14  ;;  %v1469_v23 = vpop.permute.xlu0 %1468 }
 0x34d   : > { %vm1375_vm3 = vcmp.eq.s32.totalorder %v1373_v24, %v2350_v32  ;;  %vm1471_vm12 = vcmp.eq.s32.totalorder %v1469_v23, %v2350_v32  ;;  %v3781_v24 = vld [vmem:[#allocation19_spill] sm:$0xff] }
 0x34e   : > { %v1377_v52 = vsel %vm1375_vm3, %v2685_v6, 0.0  ;;  %2131 = vset.pattern.permute.xlu1 %v3757_v28  ;;  %v1401_v6 = vsel %vm1399_vm0, %v2709_v60, 0.0 }
 0x34f   : > { %v1379_v54 = vadd.f32 %v1377_v52, %v1367_v1  ;;  %1441 = vperm.xlu1 %2131, %v3299_v47  }
 0x351   : > { %v1385_v4 = vpop.permute.xlu1 %1384  ;;  %v1505_v21 = vpop.permute.xlu0 %1504 }
 0x352   : > { %vm1387_vm11 = vcmp.eq.s32.totalorder %v1385_v4, %v2350_v32  ;;  %vm1507_vm8 = vcmp.eq.s32.totalorder %v1505_v21, %v2350_v32  ;;  %v3789_v21 = vld [vmem:[#allocation10_spill] sm:$0xff] }
 0x353   : > { %v1389_v49 = vsel %vm1387_vm11, %v2583_v11, 0.0  ;;  %2133 = vset.pattern.permute.xlu1 %v3743_v48 }
 0x354   : > { %v1391_v10 = vadd.f32 %v1389_v49, %v1379_v54  ;;  %1465 = vperm.xlu1 %2133, %v3299_v47  }
 0x356   : > { %v1409_v27 = vpop.permute.xlu1 %1408  ;;  %v1403_v28 = vadd.f32 %v1401_v6, %v1391_v10  ;;  %v3783_v6 = vld [vmem:[#allocation21_spill] sm:$0xff] }
 0x357   : > { %vm1411_vm6 = vcmp.eq.s32.totalorder %v1409_v27, %v2350_v32 }
 0x358   : > { %v1413_v56 = vsel %vm1411_vm6, %v2727_v8, 0.0  ;;  %2134 = vset.pattern.permute.xlu1 %v3762_v59  ;;  %v1437_v8 = vsel %vm1435_vm5, %v2752_v43, 0.0 }
 0x359   : > { %v1415_v53 = vadd.f32 %v1413_v56, %v1403_v28  ;;  %1477 = vperm.xlu1 %2134, %v3299_v47   ;;  %v3784_v28 = vld [vmem:[#allocation7_spill] sm:$0xff] }
 0x35b   : > { %v1421_v11 = vpop.permute.xlu1 %1420 }
 0x35c   : > { %vm1423_vm14 = vcmp.eq.s32.totalorder %v1421_v11, %v2350_v32 }
 0x35d   : > { %v1425_v48 = vsel %vm1423_vm14, %v2600_v57, 0.0  ;;  %2136 = vset.pattern.permute.xlu1 %v3747_v33 }
 0x35e   : > { %v1427_v60 = vadd.f32 %v1425_v48, %v1415_v53  ;;  %1501 = vperm.xlu1 %2136, %v3299_v47  }
 0x360   : > { %v1445_v42 = vpop.permute.xlu1 %1444  ;;  %v1439_v59 = vadd.f32 %v1437_v8, %v1427_v60 }
 0x361   : > { %vm1447_vm7 = vcmp.eq.s32.totalorder %v1445_v42, %v2350_v32  ;;  %v3786_v42 = vld [vmem:[#allocation23_spill] sm:$0xff] }
 0x362   : > { %v1449_v5 = vsel %vm1447_vm7, %v2777_v30, 0.0  ;;  %2137 = vset.pattern.permute.xlu1 %v3767_v45  ;;  %v1473_v30 = vsel %vm1471_vm12, %v2804_v19, 0.0 }
 0x363   : > { %v1451_v12 = vadd.f32 %v1449_v5, %v1439_v59  ;;  %1513 = vperm.xlu1 %2137, %v3299_v47  }
 0x365   : > { %v1457_v57 = vpop.permute.xlu1 %1456 }
 0x366   : > { %vm1459_vm2 = vcmp.eq.s32.totalorder %v1457_v57, %v2350_v32 }
 0x367   : > { %v1461_v33 = vsel %vm1459_vm2, %v2616_v2, 0.0  ;;  %2139 = vset.pattern.permute.xlu1 %v3751_v35 }
 0x368   : > { %v1463_v43 = vadd.f32 %v1461_v33, %v1451_v12  ;;  %1537 = vperm.xlu1 %2139, %v3299_v47   ;;  %v3787_v12 = vld [vmem:[#allocation24_spill] sm:$0xff] }
 0x36a   : > { %v1481_v26 = vpop.permute.xlu1 %1480  ;;  %v1475_v45 = vadd.f32 %v1473_v30, %v1463_v43  ;;  %v3788_v43 = vld [vmem:[#allocation25_spill] sm:$0xff] }
 0x36b   : > { %vm1483_vm13 = vcmp.eq.s32.totalorder %v1481_v26, %v2350_v32 }
 0x36c   : > { %v1485_v41 = vsel %vm1483_vm13, %v2830_v51, 0.0  ;;  %2140 = vset.pattern.permute.xlu1 %v3772_v46  ;;  %v1509_v51 = vsel %vm1507_vm8, %v2860_v36, 0.0 }
 0x36d   : > { %v1487_v34 = vadd.f32 %v1485_v41, %v1475_v45  ;;  %1549 = vperm.xlu1 %2140, %v3299_v47  }
 0x36f   : > { %v1493_v2 = vpop.permute.xlu1 %1492 }
 0x370   : > { %vm1495_vm9 = vcmp.eq.s32.totalorder %v1493_v2, %v2350_v32 }
 0x371   : > { %v1497_v35 = vsel %vm1495_vm9, %v2633_v13, 0.0  ;;  %2142 = vset.pattern.permute.xlu1 %v3755_v15  ;;  %v1609_v13 = vld [vmem:[%s3573_s2 + $0x8] sm:$0xff]  ;;  %v1541_v15 = vpop.permute.xlu0 %1540 }
 0x372   : > { %v1499_v19 = vadd.f32 %v1497_v35, %v1487_v34  ;;  %1573 = vperm.xlu1 %2142, %v3299_v47   ;;  %v1928_v36 = vpack.c.bf16 %v1609_v13, %v1608_v44  ;;  %vm1543_vm15 = vcmp.eq.s32.totalorder %v1541_v15, %v2350_v32 }
 0x373   : > { %v1545_v20 = vsel %vm1543_vm15, %v2913_v39, 0.0 }
 0x374   : > { %v1517_v16 = vpop.permute.xlu1 %1516  ;;  %v1511_v46 = vadd.f32 %v1509_v51, %v1499_v19  ;;  %1929 = vmatprep.subr.bf16.mxu1 %v1928_v36  ;;  %v3790_v19 = vld [vmem:[#allocation26_spill] sm:$0xff] }
 0x375   : > { %vm1519_vm1 = vcmp.eq.s32.totalorder %v1517_v16, %v2350_v32  ;;  %1931 = vmatpush3.bf16.msra.mxu1 %v1928_v36  ;;  %v1577_v9 = vpop.permute.xlu0 %1576 }
 0x376   : > { %v1521_v55 = vsel %vm1519_vm1, %v2888_v40, 0.0  ;;  %2143 = vset.pattern.permute.xlu1 %v3775_v29  ;;  %v1610_v40 = vld [vmem:[%s3573_s2 + $0x10] sm:$0xff]  ;;  %v1611_v29 = vld [vmem:[%s3573_s2 + $0x18] sm:$0xff]  ;;  %vm1579_vm3 = vcmp.eq.s32.totalorder %v1577_v9, %v2350_v32 }
 0x377   : > { %v1523_v58 = vadd.f32 %v1521_v55, %v1511_v46  ;;  %1585 = vperm.xlu1 %2143, %v3299_v47   ;;  %v1932_v47 = vpack.c.bf16 %v1611_v29, %v1610_v40  ;;  %v1581_v39 = vsel %vm1579_vm3, %v3781_v24, 0.0  ;;  %v3791_v46 = vld [vmem:[#allocation27_spill] sm:$0xff]  ;;  %v3793_v29 = vld [vmem:[#allocation28_spill] sm:$0xff] }
 0x378   : > { %v3795_v9 = vld [vmem:[#allocation12_spill] sm:$0xff] }
 0x379   : > { %v1529_v3 = vpop.permute.xlu1 %1528  ;;  %1933 = vmatprep.subr.bf16.mxu1 %v1932_v47 }
 0x37a   : > { %vm1531_vm10 = vcmp.eq.s32.totalorder %v1529_v3, %v2350_v32  ;;  %1935 = vmatpush3.bf16.msra.mxu1 %v1932_v47 }
 0x37b   : > { %v1533_v38 = vsel %vm1531_vm10, %v2652_v63, 0.0  ;;  %2145 = vset.pattern.permute.xlu1 %v3779_v62  ;;  %v3780_v63 = vld [vmem:[#allocation8_spill] sm:$0xff] }
 0x37c   : > { %v1535_v37 = vadd.f32 %v1533_v38, %v1523_v58  ;;  %1600 = vperm.xlu1 %2145, %v3058_v31   ;;  %v3792_v58 = vld [vmem:[#allocation11_spill] sm:$0xff] }
 0x37e   : > { %v1553_v17 = vpop.permute.xlu1 %1552  ;;  %v1547_v22 = vadd.f32 %v1545_v20, %v1535_v37  ;;  %v3794_v37 = vld [vmem:[#allocation29_spill] sm:$0xff] }
 0x37f   : > { %vm1555_vm4 = vcmp.eq.s32.totalorder %v1553_v17, %v2350_v32 }
 0x380   : > { %v1557_v61 = vsel %vm1555_vm4, %v2935_v18, 0.0 }
 0x381   : > { %v1559_v14 = vadd.f32 %v1557_v61, %v1547_v22 }
 0x383   : > { %v1565_v0 = vpop.permute.xlu1 %1564 }
 0x384   : > { %vm1567_vm0 = vcmp.eq.s32.totalorder %v1565_v0, %v2350_v32 }
 0x385   : > { %v1569_v62 = vsel %vm1567_vm0, %v3780_v63, 0.0  ;;  %v1274_v48 = vpop.permute.xlu0 %1273 }
 0x386   : > { %v1571_v31 = vadd.f32 %v1569_v62, %v1559_v14  ;;  %vm1278_vm12 = vcmp.eq.s32.totalorder %v1274_v48, %v2350_v32  ;;  %v3796_v62 = vld [vmem:[#allocation30_spill] sm:$0xff] }
 0x387   : > { %v1280_v57 = vsel %vm1278_vm12, %v3787_v12, 0.0 }
 0x388   : > { %v1589_v1 = vpop.permute.xlu1 %1588  ;;  %v1583_v52 = vadd.f32 %v1581_v39, %v1571_v31  ;;  %v3797_v39 = vld [vmem:[#allocation31_spill] sm:$0xff] }
 0x389   : > { %vm1591_vm11 = vcmp.eq.s32.totalorder %v1589_v1, %v2350_v32 }
 0x38a   : > { %v1593_v54 = vsel %vm1591_vm11, %v3782_v25, 0.0  ;;  %v1310_v26 = vpop.permute.xlu0 %1309 }
 0x38b   : > { %v3443_v4 = vadd.f32 %v1593_v54, %v1583_v52  ;;  %vm1314_vm8 = vcmp.eq.s32.totalorder %v1310_v26, %v2350_v32 }
 0x38c   : > { %v1316_v51 = vsel %vm1314_vm8, %v3790_v19, 0.0 }
 0x38d   : > { %v1226_v18 = vpop.permute.xlu1 %1225 }
 0x38e   : > { %vm1230_vm5 = vcmp.eq.s32.totalorder %v1226_v18, %v2350_v32  ;;  %v3798_v18 = vld [vmem:[#allocation13_spill] sm:$0xff] }
 0x38f   : > { %v1232_v56 = vsel %vm1230_vm5, %v3784_v28, 0.0  ;;  %v1346_v44 = vpop.permute.xlu0 %1345 }
 0x390   : > { %vm1350_vm15 = vcmp.eq.s32.totalorder %v1346_v44, %v2350_v32 }
 0x391   : > { %v1352_v38 = vsel %vm1350_vm15, %v3793_v29, 0.0 }
 0x392   : > { %v1238_v49 = vpop.permute.xlu1 %1237 }
 0x393   : > { %vm1242_vm6 = vcmp.eq.s32.totalorder %v1238_v49, %v2350_v32 }
 0x394   : > { %v1244_v27 = vsel %vm1242_vm6, %v3783_v6, 0.0  ;;  %v1382_v17 = vpop.permute.xlu0 %1381 }
 0x395   : > { %v1246_v11 = vadd.f32 %v1244_v27, %v1232_v56  ;;  %vm1386_vm3 = vcmp.eq.s32.totalorder %v1382_v17, %v2350_v32  ;;  %v3799_v27 = vld [vmem:[#allocation32_spill] sm:$0xff] }
 0x396   : > { %v1388_v31 = vsel %vm1386_vm3, %v3796_v62, 0.0 }
 0x397   : > { %v1250_v10 = vpop.permute.xlu1 %1249 }
 0x398   : > { %vm1254_vm14 = vcmp.eq.s32.totalorder %v1250_v10, %v2350_v32 }
 0x399   : > { %v1256_v53 = vsel %vm1254_vm14, %v3785_v7, 0.0  ;;  %v1418_v52 = vpop.permute.xlu0 %1417  ;;  %v3800_v7 = vld [vmem:[#allocation33_spill] sm:$0xff] }
 0x39a   : > { %v1258_v8 = vadd.f32 %v1256_v53, %v1246_v11  ;;  %vm1422_vm6 = vcmp.eq.s32.totalorder %v1418_v52, %v2350_v32 }
 0x39b   : > { %v1424_v28 = vsel %vm1422_vm6, %v3799_v27, 0.0 }
 0x39c   : > { %v1262_v60 = vpop.permute.xlu1 %1261 }
 0x39d   : > { %vm1266_vm7 = vcmp.eq.s32.totalorder %v1262_v60, %v2350_v32 }
 0x39e   : > { %v1268_v59 = vsel %vm1266_vm7, %v3786_v42, 0.0  ;;  %v1454_v11 = vpop.permute.xlu0 %1453 }
 0x39f   : > { %v1270_v5 = vadd.f32 %v1268_v59, %v1258_v8  ;;  %v3801_v8 = vld [vmem:[#allocation14_spill] sm:$0xff]  ;;  %vm1458_vm7 = vcmp.eq.s32.totalorder %v1454_v11, %v2350_v32 }
 0x3a1   : > { %v1286_v23 = vpop.permute.xlu1 %1285  ;;  %v1282_v33 = vadd.f32 %v1280_v57, %v1270_v5 }
 0x3a2   : > { %vm1290_vm2 = vcmp.eq.s32.totalorder %v1286_v23, %v2350_v32  ;;  %v3802_v23 = vld [vmem:[#allocation34_spill] sm:$0xff] }
 0x3a3   : > { %v1292_v30 = vsel %vm1290_vm2, %v3788_v43, 0.0  ;;  %v1460_v12 = vsel %vm1458_vm7, %v3802_v23, 0.0 }
 0x3a4   : > { %v1294_v41 = vadd.f32 %v1292_v30, %v1282_v33  ;;  %v3803_v33 = vld [vmem:[#allocation35_spill] sm:$0xff]  ;;  %v1490_v30 = vpop.permute.xlu0 %1489 }
 0x3a6   : > { %v1298_v45 = vpop.permute.xlu1 %1297 }
 0x3a7   : > { %vm1302_vm13 = vcmp.eq.s32.totalorder %v1298_v45, %v2350_v32 }
 0x3a8   : > { %v1304_v34 = vsel %vm1302_vm13, %v3789_v21, 0.0  ;;  %vm1494_vm13 = vcmp.eq.s32.totalorder %v1490_v30, %v2350_v32 }
 0x3a9   : > { %v1306_v2 = vadd.f32 %v1304_v34, %v1294_v41  ;;  %v3804_v41 = vld [vmem:[#allocation15_spill] sm:$0xff] }
 0x3ab   : > { %v1322_v35 = vpop.permute.xlu1 %1321  ;;  %v1318_v16 = vadd.f32 %v1316_v51, %v1306_v2 }
 0x3ac   : > { %vm1326_vm9 = vcmp.eq.s32.totalorder %v1322_v35, %v2350_v32  ;;  %v3805_v35 = vld [vmem:[#allocation36_spill] sm:$0xff] }
 0x3ad   : > { %v1328_v55 = vsel %vm1326_vm9, %v3791_v46, 0.0  ;;  %v1496_v19 = vsel %vm1494_vm13, %v3805_v35, 0.0 }
 0x3ae   : > { %v1330_v15 = vadd.f32 %v1328_v55, %v1318_v16  ;;  %v3806_v16 = vld [vmem:[#allocation37_spill] sm:$0xff]  ;;  %v1526_v55 = vpop.permute.xlu0 %1525 }
 0x3b0   : > { %v1334_v13 = vpop.permute.xlu1 %1333 }
 0x3b1   : > { %vm1338_vm1 = vcmp.eq.s32.totalorder %v1334_v13, %v2350_v32 }
 0x3b2   : > { %v1340_v36 = vsel %vm1338_vm1, %v3792_v58, 0.0  ;;  %vm1530_vm1 = vcmp.eq.s32.totalorder %v1526_v55, %v2350_v32 }
 0x3b3   : > { %v1342_v3 = vadd.f32 %v1340_v36, %v1330_v15  ;;  %v3807_v15 = vld [vmem:[#allocation16_spill] sm:$0xff] }
 0x3b5   : > { %v1358_v40 = vpop.permute.xlu1 %1357  ;;  %v1354_v47 = vadd.f32 %v1352_v38, %v1342_v3 }
 0x3b6   : > { %vm1362_vm10 = vcmp.eq.s32.totalorder %v1358_v40, %v2350_v32  ;;  %v3808_v40 = vld [vmem:[#allocation38_spill] sm:$0xff] }
 0x3b7   : > { %v1364_v20 = vsel %vm1362_vm10, %v3794_v37, 0.0  ;;  %v1532_v29 = vsel %vm1530_vm1, %v3808_v40, 0.0 }
 0x3b8   : > { %v1366_v61 = vadd.f32 %v1364_v20, %v1354_v47  ;;  %v3809_v47 = vld [vmem:[#allocation39_spill] sm:$0xff]  ;;  %v1562_v20 = vpop.permute.xlu0 %1561 }
 0x3ba   : > { %v1370_v22 = vpop.permute.xlu1 %1369 }
 0x3bb   : > { %vm1374_vm4 = vcmp.eq.s32.totalorder %v1370_v22, %v2350_v32 }
 0x3bc   : > { %v1376_v14 = vsel %vm1374_vm4, %v3795_v9, 0.0  ;;  %vm1566_vm4 = vcmp.eq.s32.totalorder %v1562_v20, %v2350_v32 }
 0x3bd   : > { %v1378_v0 = vadd.f32 %v1376_v14, %v1366_v61  ;;  %v3810_v61 = vld [vmem:[#allocation17_spill] sm:$0xff] }
 0x3bf   : > { %v1394_v63 = vpop.permute.xlu1 %1393  ;;  %v1390_v24 = vadd.f32 %v1388_v31, %v1378_v0 }
 0x3c0   : > { %vm1398_vm0 = vcmp.eq.s32.totalorder %v1394_v63, %v2350_v32  ;;  %v3811_v63 = vld [vmem:[#allocation40_spill] sm:$0xff] }
 0x3c1   : > { %v1400_v1 = vsel %vm1398_vm0, %v3797_v39, 0.0  ;;  %v1568_v62 = vsel %vm1566_vm4, %v3811_v63, 0.0  ;;  %v3812_v39 = vld [vmem:[#allocation41_spill] sm:$0xff] }
 0x3c2   : > { %v1402_v54 = vadd.f32 %v1400_v1, %v1390_v24  ;;  %v1598_v24 = vpop.permute.xlu0 %1597 }
 0x3c3   : > { %vm1602_vm0 = vcmp.eq.s32.totalorder %v1598_v24, %v2350_v32 }
 0x3c4   : > { %v1406_v25 = vpop.permute.xlu1 %1405 }
 0x3c5   : > { %vm1410_vm11 = vcmp.eq.s32.totalorder %v1406_v25, %v2350_v32 }
 0x3c6   : > { %v1412_v49 = vsel %vm1410_vm11, %v3798_v18, 0.0 }
 0x3c7   : > { %v1414_v10 = vadd.f32 %v1412_v49, %v1402_v54  ;;  %v3813_v54 = vld [vmem:[#allocation18_spill] sm:$0xff] }
 0x3c9   : > { %v1430_v6 = vpop.permute.xlu1 %1429  ;;  %v1426_v56 = vadd.f32 %v1424_v28, %v1414_v10  ;;  %v1604_v10 = vsel %vm1602_vm0, %v3287_v50, 0.0  ;;  %v3814_v28 = vld [vmem:[#allocation9_spill] sm:$0xff] }
 0x3ca   : > { %vm1434_vm5 = vcmp.eq.s32.totalorder %v1430_v6, %v2350_v32 }
 0x3cb   : > { %v1436_v53 = vsel %vm1434_vm5, %v3800_v7, 0.0  ;;  %vm3815_vm5 = vcmask 261120  }
 0x3cc   : > { %v1438_v60 = vadd.f32 %v1436_v53, %v1426_v56  ;;  %v3817_v53 = vld [vmem:[#allocation6_spill] sm:$0xff] }
 0x3cd   : > { %v1694_v11 = vmul.u32 8, %v3817_v53 }
 0x3ce   : > { %v1442_v48 = vpop.permute.xlu1 %1441 }
 0x3cf   : > { %vm1446_vm14 = vcmp.eq.s32.totalorder %v1442_v48, %v2350_v32  ;;  %v3818_v48 = vld [vmem:[#allocation5_spill] sm:$0xff]  ;;  %vm1696_vm7 = vcmp.ge.s32.totalorder %v2350_v32, %v1694_v11 }
 0x3d0   : > { %v1448_v42 = vsel %vm1446_vm14, %v3801_v8, 0.0  ;;  %vm3816_vm14 = vmmov %vm3815_vm5  ;;  %v1698_v8 = vadd.s32 8, %v1694_v11 }
 0x3d1   : > { %v1450_v59 = vadd.f32 %v1448_v42, %v1438_v60  ;;  %v1693_v60 = vmul.u32 8, %v3818_v48 }
 0x3d3   : > { %v1466_v5 = vpop.permute.xlu1 %1465  ;;  %v1462_v57 = vadd.f32 %v1460_v12, %v1450_v59  ;;  %v1697_v42 = vadd.s32 8, %v1693_v60 }
 0x3d4   : > { %vm1470_vm12 = vcmp.eq.s32.totalorder %v1466_v5, %v2350_v32 }
 0x3d5   : > { %v1472_v43 = vsel %vm1470_vm12, %v3803_v33, 0.0  ;;  %vm1700_vm12 = vcmp.lt.s32.totalorder %v2350_v32, %v1698_v8  ;;  %vm1699_vm13 = vcmp.lt.s32.totalorder %v2350_v32, %v1697_v42 }
 0x3d6   : > { %v1474_v45 = vadd.f32 %v1472_v43, %v1462_v57  ;;  %v2243_v43 = vmov 1966171168  }
 0x3d7   : > { %v1720_v30 = vunpack.c.l.s4 %v2243_v43 }
 0x3d8   : > { %v1478_v26 = vpop.permute.xlu1 %1477 }
 0x3d9   : > { %vm1482_vm2 = vcmp.eq.s32.totalorder %v1478_v26, %v2350_v32 }
 0x3da   : > { %v1484_v21 = vsel %vm1482_vm2, %v3804_v41, 0.0  ;;  %vm1695_vm2 = vcmp.ge.s32.totalorder %v2350_v32, %v1693_v60  ;;  %v1721_v41 = vunpack.c.0.s8 %v1720_v30 }
 0x3db   : > { %v1486_v34 = vadd.f32 %v1484_v21, %v1474_v45  ;;  %vm1701_vm1 = vmand %vm1695_vm2, %vm1699_vm13 }
 0x3dd   : > { %v1502_v2 = vpop.permute.xlu1 %1501  ;;  %v1498_v51 = vadd.f32 %v1496_v19, %v1486_v34 }
 0x3de   : > { %vm1506_vm8 = vcmp.eq.s32.totalorder %v1502_v2, %v2350_v32 }
 0x3df   : > { %v1508_v46 = vsel %vm1506_vm8, %v3806_v16, 0.0  ;;  %vm1702_vm8 = vmand %vm1696_vm7, %vm1700_vm12 }
 0x3e0   : > { %v1510_v13 = vadd.f32 %v1508_v46, %v1498_v51  ;;  %v1716_v51 = vld [vmem:[%s3574_s3] sm:$0x1] }
 0x3e2   : > { %v1514_v44 = vpop.permute.xlu1 %1513 }
 0x3e3   : > { %vm1518_vm9 = vcmp.eq.s32.totalorder %v1514_v44, %v2350_v32 }
 0x3e4   : > { %v1520_v58 = vsel %vm1518_vm9, %v3807_v15, 0.0  ;;  %vm1707_vm9 = vcmask 581632  }
 0x3e5   : > { %v1522_v36 = vadd.f32 %v1520_v58, %v1510_v13 }
 0x3e7   : > { %v1538_v3 = vpop.permute.xlu1 %1537  ;;  %v1534_v38 = vadd.f32 %v1532_v29, %v1522_v36 }
 0x3e8   : > { %vm1542_vm15 = vcmp.eq.s32.totalorder %v1538_v3, %v2350_v32 }
 0x3e9   : > { %v1544_v37 = vsel %vm1542_vm15, %v3809_v47, 0.0  ;;  %vm1705_vm15 = vcmask 588800  }
 0x3ea   : > { %v1546_v22 = vadd.f32 %v1544_v37, %v1534_v38 }
 0x3ec   : > { %v1550_v17 = vpop.permute.xlu1 %1549 }
 0x3ed   : > { %vm1554_vm10 = vcmp.eq.s32.totalorder %v1550_v17, %v2350_v32 }
 0x3ee   : > { %v1556_v9 = vsel %vm1554_vm10, %v3810_v61, 0.0  ;;  %vm1765_vm10 = vcmask 57344  }
 0x3ef   : > { %v1558_v14 = vadd.f32 %v1556_v9, %v1546_v22 }
 0x3f1   : > { %v1574_v0 = vpop.permute.xlu1 %1573  ;;  %v1570_v31 = vadd.f32 %v1568_v62, %v1558_v14 }
 0x3f2   : > { %vm1578_vm3 = vcmp.eq.s32.totalorder %v1574_v0, %v2350_v32 }
 0x3f3   : > { %v1580_v1 = vsel %vm1578_vm3, %v3812_v39, 0.0 }
 0x3f4   : > { %v1582_v25 = vadd.f32 %v1580_v1, %v1570_v31 }
 0x3f6   : > { %v1586_v52 = vpop.permute.xlu1 %1585 }
 0x3f7   : > { %vm1590_vm11 = vcmp.eq.s32.totalorder %v1586_v52, %v2350_v32 }
 0x3f8   : > { %v1592_v18 = vsel %vm1590_vm11, %v3813_v54, 0.0 }
 0x3f9   : > { %v1594_v49 = vadd.f32 %v1592_v18, %v1582_v25 }
 0x3fb   : > { %v1601_v6 = vpop.permute.xlu1 %1600  ;;  %v1606_v27 = vadd.f32 %v1604_v10, %v1594_v49 }
 0x3fc   : > { %vm1603_vm6 = vcmp.eq.s32.totalorder %v1601_v6, %v2350_v32  ;;  %v1724_v32 = vsub.s32 %v1721_v41, %v3818_v48 }
 0x3fd   : > { %v1605_v56 = vsel %vm1603_vm6, %v3814_v28, 0.0  ;;  %1913 = vmatprep.mubr.msk.f32.mxu1 %vm3815_vm5, %v1606_v27 }
 0x3fe   : > { %v1607_v7 = vadd.f32 %v1605_v56, %v3443_v4 }
 0x400   : > { %1914 = vmatmul.mubr.msk.f32.vlgmr.msra.gmra.mrb[0].mxu1 %vm3816_vm14, %v1607_v7 }
 0x4d3   : > { %v1915_v50 = vpop.f32.mrb[0].mxu1 }
 0x4d4   : > { %v1704_v4 = vsel %vm1702_vm8, %v1915_v50, 0.0  ;;  %v1684_v59 = vpop.f32.mrb[1].mxu1 }
 0x4d5   : > { %v1708_v5 = vsel %vm1707_vm9, %v1704_v4, 0.0  ;;  %v1703_v23 = vsel %vm1701_vm1, %v1684_v59, 0.0 }
 0x4d6   : > { %v1706_v12 = vsel %vm1705_vm15, %v1703_v23, 0.0 }
 0x4d7   : > { %v1709_v57 = vadd.f32 %v1708_v5, %v1706_v12 }
 0x4d9   : > { %v1710_v33 = vrot.slane %v1709_v57, 4 }
 0x4db   : > { %v1711_v26 = vadd.f32 %v1710_v33, %v1709_v57 }
 0x4dd   : > { %v1712_v45 = vrot.slane %v1711_v26, 2 }
 0x4df   : > { %v1713_v21 = vadd.f32 %v1712_v45, %v1711_v26 }
 0x4e1   : > { %v1714_v34 = vrot.slane %v1713_v21, 1 }
 0x4e3   : > { %v1715_v2 = vadd.f32 %v1714_v34, %v1713_v21 }
 0x4e5   : > { %v1725_v35 = vrot.slane %v1715_v2, %v1724_v32  ;;  %v1717_v16 = vadd.f32 %v1716_v51, %v1715_v2 }
 0x4e7   : > { %v1732_v19 = vrot.slane %v1725_v35, %v1724_v32 }
 0x4e9   : > { %1737 = vrot.lane.b32.xlu0 %v1732_v19, %s2244_s27  ;;  %1733 = vrot.lane.b32.xlu1 %v1732_v19, %s2245_s28  ;;  %s1768_s27 = scalar_lea.sflag [#allocation3], %s203_s11  ;;  %s2146_s28 = scalar_lea.vmem %s3531_s14, 16 }
 0x4ea   : > { %p2147_p11 = scmp.ne.s32.totalorder %s3531_s14, %s2146_s28 }
 0x4ec   : > { %p2148_p12 = pnand %p2147_p11, %p2316_p5 }
 0x4ed   : > { %1745 = vrot.lane.b32.xlu0 %v1732_v19, %s2246_s29  ;;  %1741 = vrot.lane.b32.xlu1 %v1732_v19, %s2247_s30  ;;  %s2150_s29 = sshll.u32 %s2252_s19, 4  ;;  %s2151_s29 = int_to_ptr.vmem [resolvable:$false] %s2150_s29 }
 0x4ee   : > { %p2149_p13 = pneg %p2148_p12  ;;  %s2152_s30 = scalar_lea.vmem %s2151_s29, 32 }
 0x4ef   : > { %p2153_p0 = scmp.lt.s32.totalorder %s3531_s14, %s2151_s29  ;;  %p2154_p1 = scmp.lt.s32.totalorder %s2152_s30, %s2146_s28 }
 0x4f1   : > { %1753 = vrot.lane.b32.xlu0 %v1732_v19, %s2248_s5  ;;  %1749 = vrot.lane.b32.xlu1 %v1732_v19, %s2249_s6  ;;  %p2155_p2 = por %p2154_p1, %p2153_p0 }
 0x4f3   : > { %p2156_p3 = pnand %p2155_p2, %p2149_p13 }
 0x4f5   : > { %1761 = vrot.lane.b32.xlu0 %v1732_v19, %s2250_s7  ;;  %1757 = vrot.lane.b32.xlu1 %v1732_v19, %s2251_s8 }
 0x55b   : > { %v1738_v46 = vpop.permute.xlu0 %1737  ;;  %v1734_v55 = vpop.permute.xlu1 %1733 }
 0x55c   : > { %v1736_v44 = vadd.f32 %v1734_v55, %v1717_v16 }
 0x55e   : > { %v1740_v13 = vadd.f32 %v1738_v46, %v1736_v44 }
 0x55f   : > { %v1746_v15 = vpop.permute.xlu0 %1745  ;;  %v1742_v58 = vpop.permute.xlu1 %1741 }
 0x560   : > { %v1744_v36 = vadd.f32 %v1742_v58, %v1740_v13 }
 0x562   : > { %v1748_v3 = vadd.f32 %v1746_v15, %v1744_v36 }
 0x563   : > { %v1754_v40 = vpop.permute.xlu0 %1753  ;;  %v1750_v29 = vpop.permute.xlu1 %1749 }
 0x564   : > { %v1752_v38 = vadd.f32 %v1750_v29, %v1748_v3 }
 0x566   : > { %v1756_v47 = vadd.f32 %v1754_v40, %v1752_v38 }
 0x567   : > { %v1758_v37 = vpop.permute.xlu1 %1757  ;;  %v1762_v17 = vpop.permute.xlu0 %1761 }
 0x568   : > { %v1760_v20 = vadd.f32 %v1758_v37, %v1756_v47 }
 0x56a   : > { %v1764_v22 = vadd.f32 %v1762_v17, %v1760_v20 }
 0x56c   : > { %1766 = vst.msk [vmem:[%s204_s13] sm:$0x1] %vm1765_vm10, %v1764_v22 }
 0x56d   : > { %2159 = shalt.err (!%p2156_p3)
}
 0x56e   : > { %s2160_s5 = scalar_lea.hbm %s3529_s23, 16  ;;  %s2164_s8 = scalar_lea.hbm %s3575_s4, 32 }
 0x56f   : > { %p2161_p4 = scmp.ne.s32.totalorder %s3529_s23, %s2160_s5  ;;  %p2165_p9 = scmp.lt.u32.totalorder %s3529_s23, %s3575_s4 }
 0x570   : > { %p2166_p10 = scmp.lt.u32.totalorder %s2164_s8, %s2160_s5  ;;  %p2168_p12 = scmp.lt.u32.totalorder %s2160_s5, %s3529_s23 }
 0x571   : > { %p2162_p7 = pnand %p2161_p4, %p2316_p5 }
 0x572   : > { %p2167_p11 = por %p2166_p10, %p2165_p9 }
 0x573   : > { %p2163_p8 = pneg %p2162_p7 }
 0x574   : > { %p2169_p13 = por %p2168_p12, %p2167_p11 }
 0x576   : > { %p2170_p0 = pnand %p2169_p13, %p2163_p8 }
 0x578   : > { %2173 = shalt.err (!%p2170_p0)
}
 0x579   : > { %1937 = dma.vmem_to_hbm [thread:$0]  (%p2316_p5), %s3531_s14, 16, %s3529_s23, %s1768_s27  }
 0x57a PF: > { %p1943_p1 = scmp.ge.s32.totalorder %s2208_s18, 2  ;;  %s1792_s11 = sand.u32 1, %s2196_s15  }
 0x57b   : > { %s1793_s12 = scalar_lea.sflag [#allocation3], %s1792_s11 }
 0x57c   : > { %p1940_p2 = pnand %p1943_p1, %p2320_p6 }
 0x57e   : > { %2191 = dma.done.wait (!%p1940_p2), %s1793_s12, 16  }
 0x57f   : > { %2193 = vsyncadd (!%p1940_p2), %s1793_s12, 4294967280  ;;  %p14_p3 = scmp.ge.s32.totalorder %s2303_s21, 4   ;;  %s3819_s15 = smov %s2200_s16 }
 0x580   : > { %s3820_s16 = smov %s2204_s17  ;;  %s3821_s17 = smov %s2314_s24 }
 0x581   : > { %s3822_s18 = smov %s2303_s21  ;;  %16 = sbr.rel (!%p14_p3) target bundleno = 3 (0x3), region = 74 }
 0x588   :  { %1797 = vsyncpa [#allocation3], 1 }
 0x589   :  { %1799 = vsyncpa [#allocation3 + $0x1], 1 }

</bundles_post_ra>
